<compile_context>
chip_gen: v7x
topology: tpu7x:2x2x1
jax: 0.10.0
libtpu: 0.0.40
codegen_flags: <defaults>
</compile_context>

<pallas_src>
import numpy as np
import jax
import jax.numpy as jnp
from jax.experimental import pallas as pl
from jax.experimental.pallas import tpu as pltpu

# ----------------------------- model configuration -----------------------------
B = 2
IN_CHANNEL = 3
INPUT_SIZE = 16
N_CONV = 2
KSIZE = 3
MAX_CHANNEL = 8
N_HEADS = 2
DIM_FF = 32
N_VIT_LAYERS = 2
MAX_HIDDEN = 32
N_OUT = 3

EPS_LN = 1e-5
EPS_BN = 1e-5

CH = [int(c) for c in np.linspace(IN_CHANNEL, MAX_CHANNEL, N_CONV + 1, dtype=int)]  # [3, 5, 8]
H1 = INPUT_SIZE - KSIZE + 1          # 14 : conv1 output height/width
H2 = H1 - KSIZE + 1                  # 12 : conv2 output height/width
D_MODEL = CH[-1]                     # 8
HD = D_MODEL // N_HEADS              # 4
P = H2 * H2                          # 144 valid patches / tokens
S = INPUT_SIZE * INPUT_SIZE          # 256 per-batch token stride (128-lane aligned)
LANES = B * S                        # 512 stacked token lanes
TAP = (KSIZE - 1) * (INPUT_SIZE + 1)     # 34 : largest 3x3 tap offset on the flat grid
WY1 = LANES + 64                     # 576 conv1 output width (covers conv2 tap reads)
OFFS = tuple(ki * INPUT_SIZE + kj for ki in range(KSIZE) for kj in range(KSIZE))


# ----------------------------- the fused Pallas kernel -----------------------------
def _vit_kernel(x1_ref, w1_ref, b1_ref, w2_ref, b2_ref, pos_ref,
                wqkv_ref, bqkv_ref, hs_ref, wo_ref, bo_ref,
                ln1g_ref, ln1b_ref, wf1_ref, bf1_ref, wf2_ref, bf2_ref,
                ln2g_ref, ln2b_ref, whp_ref, bh_ref, wout_ref,
                out_ref, y1buf, hbuf):
    f32 = jnp.float32

    def layer_norm(v, g, b):
        # LayerNorm over the feature (sublane) axis, per token column.
        mu = jnp.mean(v, axis=0, keepdims=True)
        c = v - mu
        var = jnp.mean(c * c, axis=0, keepdims=True)
        return c * jax.lax.rsqrt(var + EPS_LN) * g + b

    # ---- conv1 (im2col prepared in glue): one matmul, folded BN, ReLU, staged for conv2 taps
    y1buf[...] = jnp.maximum(
        jnp.dot(w1_ref[...], x1_ref[...], preferred_element_type=f32) + b1_ref[...], 0.0)

    # ---- conv2: 9-tap accumulating matmul chain (first tap initializes), BN+ReLU, pos add
    y2 = jnp.dot(w2_ref[0], y1buf[:, pl.ds(OFFS[0], LANES)], preferred_element_type=f32)
    for t in range(1, KSIZE * KSIZE):
        y2 = y2 + jnp.dot(w2_ref[t], y1buf[:, pl.ds(OFFS[t], LANES)],
                          preferred_element_type=f32)
    h = jnp.maximum(y2 + b2_ref[...], 0.0) + pos_ref[...]          # (8, 512) stacked tokens

    # ---- TransformerEncoder: post-norm, attention mixes the L = batch axis (seq len 2)
    hs = hs_ref[...]                                               # (8,8) head mask * 1/sqrt(HD)
    for li in range(N_VIT_LAYERS):
        qkv = jnp.dot(wqkv_ref[li], h, preferred_element_type=f32) + bqkv_ref[li]   # (24,512)
        q = qkv[0:D_MODEL]
        k = qkv[D_MODEL:2 * D_MODEL]
        v = qkv[2 * D_MODEL:3 * D_MODEL]
        k_x = pltpu.roll(k, shift=S, axis=1)                       # swap batch halves (vreg perm)
        v_x = pltpu.roll(v, shift=S, axis=1)
        # per-head scores broadcast over head-dim rows via a tiny masked matmul
        s_same = jnp.dot(hs, q * k, preferred_element_type=f32)    # (8,512)
        s_cross = jnp.dot(hs, q * k_x, preferred_element_type=f32)
        # softmax over the two source positions == sigmoid of the score difference
        w_same = 1.0 / (1.0 + jnp.exp(s_cross - s_same))
        ctx = v_x + w_same * (v - v_x)                             # (8,512), heads stacked
        attn = jnp.dot(wo_ref[li], ctx, preferred_element_type=f32) + bo_ref[li]
        x1 = layer_norm(attn + h, ln1g_ref[li], ln1b_ref[li])
        f1 = jnp.maximum(jnp.dot(wf1_ref[li], x1, preferred_element_type=f32)
                         + bf1_ref[li], 0.0)
        f2 = jnp.dot(wf2_ref[li], f1, preferred_element_type=f32) + bf2_ref[li]
        h = layer_norm(x1 + f2, ln2g_ref[li], ln2b_ref[li])

    # ---- flatten(1) + hidden FC (ReLU) + output FC (no bias), both batches per matmul
    hbuf[...] = h
    acc = bh_ref[...]                                              # (1, 2*MAX_HIDDEN) bias
    for e in range(D_MODEL):
        acc = acc + jnp.dot(hbuf[pl.ds(e, 1), :], whp_ref[e],      # (1,512)@(512,64)
                            preferred_element_type=f32)
    hidden = jnp.maximum(acc, 0.0)
    out_ref[...] = jnp.dot(hidden, wout_ref[...], preferred_element_type=f32)   # (1, 2*N_OUT)


# ----------------------------- JAX glue (cheap one-shot XLA preprocessing) -----------------------------
def _prepare_inputs(x, params):
    f32 = jnp.float32

    # Conv weights with eval-mode BN folded in.
    (w1, b1, g1, be1, rm1, rv1) = params["convs"][0]
    (w2, b2, g2, be2, rm2, rv2) = params["convs"][1]
    s1 = g1 / jnp.sqrt(rv1 + EPS_BN)
    w1f = w1.astype(f32) * s1[:, None, None, None]
    b1f = ((b1 - rm1) * s1 + be1).astype(f32)[:, None]                       # (5,1)
    s2 = g2 / jnp.sqrt(rv2 + EPS_BN)
    w2f = w2.astype(f32) * s2[:, None, None, None]
    b2f = ((b2 - rm2) * s2 + be2).astype(f32)[:, None]                       # (8,1)
    w1k = w1f.reshape(CH[1], IN_CHANNEL * KSIZE * KSIZE)                     # (5,27)  (ci,ki,kj)
    w2k = w2f.transpose(2, 3, 0, 1).reshape(KSIZE * KSIZE, CH[2], CH[1])     # (9,8,5) (ki,kj)

    # Conv1 im2col: (Cin*9, B*S) tap-stacked, batch lane-stacked, junk taps zeroed.
    xf = x.astype(f32).reshape(B, IN_CHANNEL, S)
    xp = jnp.pad(xf, ((0, 0), (0, 0), (0, 64)))
    rows = []
    for c in range(IN_CHANNEL):
        for ki in range(KSIZE):
            for kj in range(KSIZE):
                off = ki * INPUT_SIZE + kj
                rows.append(xp[:, c, off:off + S])                           # (B, S)
    x1 = jnp.stack(rows, axis=0).reshape(IN_CHANNEL * KSIZE * KSIZE, LANES)
    x1 = jnp.pad(x1, ((0, 0), (0, WY1 - LANES)))                             # (27, 576)

    # Positional encoding (1,P,E) -> feature-major padded (E, S), tiled over both batches.
    pe = params["pos_enc"].astype(f32).reshape(H2, H2, D_MODEL)
    pe = jnp.pad(pe, ((0, INPUT_SIZE - H2), (0, INPUT_SIZE - H2), (0, 0)))
    pe = pe.transpose(2, 0, 1).reshape(D_MODEL, S)
    pe = jnp.tile(pe, (1, B))                                                # (8, 512)

    # Head block mask with the 1/sqrt(head_dim) scale folded in.
    hs = np.zeros((D_MODEL, D_MODEL), np.float32)
    for hh in range(N_HEADS):
        hs[hh * HD:(hh + 1) * HD, hh * HD:(hh + 1) * HD] = 1.0 / np.sqrt(HD)
    hs = jnp.asarray(hs)

    # Transformer layer weights, stacked over layers (torch (out,in) orientation is what
    # feature-major math needs; in_proj is used fused as (3E, E)).
    wqkv, bqkv, wo, bo = [], [], [], []
    l1g, l1b, wf1, bf1, wf2, bf2, l2g, l2b = [], [], [], [], [], [], [], []
    for lyr in params["layers"]:
        wqkv.append(lyr["in_proj_w"].astype(f32))                # (24, 8)
        bqkv.append(lyr["in_proj_b"].astype(f32)[:, None])       # (24, 1)
        wo.append(lyr["out_w"].astype(f32))                      # (8, 8)
        bo.append(lyr["out_b"].astype(f32)[:, None])
        l1g.append(lyr["ln1_g"].astype(f32)[:, None])
        l1b.append(lyr["ln1_b"].astype(f32)[:, None])
        wf1.append(lyr["ff1_w"].astype(f32))                     # (32, 8)
        bf1.append(lyr["ff1_b"].astype(f32)[:, None])
        wf2.append(lyr["ff2_w"].astype(f32))                     # (8, 32)
        bf2.append(lyr["ff2_b"].astype(f32)[:, None])
        l2g.append(lyr["ln2_g"].astype(f32)[:, None])
        l2b.append(lyr["ln2_b"].astype(f32)[:, None])
    stk = lambda xs: jnp.stack(xs, axis=0)

    # Hidden FC weight (MAX_HIDDEN, P*E): per-channel token-contraction weight on the padded
    # grid (junk ow/oh >= 12 columns get zero weight), block-diagonal over batch so one
    # matmul per channel produces both batches' hidden activations.
    wh, bh = params["hidden"][0]
    whp = wh.astype(f32).reshape(MAX_HIDDEN, H2, H2, D_MODEL)                # [n, oh, ow, e]
    whp = jnp.pad(whp, ((0, 0), (0, INPUT_SIZE - H2), (0, INPUT_SIZE - H2), (0, 0)))
    whp = whp.transpose(3, 1, 2, 0).reshape(D_MODEL, S, MAX_HIDDEN)          # (8, 256, 32)
    z = jnp.zeros_like(whp)
    whpb = jnp.concatenate([jnp.concatenate([whp, z], axis=2),
                            jnp.concatenate([z, whp], axis=2)], axis=1)      # (8, 512, 64)
    bhb = jnp.tile(bh.astype(f32)[None, :], (1, B))                          # (1, 64)
    woutT = params["w_out"].astype(f32).T                                    # (32, 3)
    zo = jnp.zeros_like(woutT)
    woutb = jnp.concatenate([jnp.concatenate([woutT, zo], axis=1),
                             jnp.concatenate([zo, woutT], axis=1)], axis=0)  # (64, 6)

    return (x1, w1k, b1f, w2k, b2f, pe,
            stk(wqkv), stk(bqkv), hs,
            stk(wo), stk(bo), stk(l1g), stk(l1b),
            stk(wf1), stk(bf1), stk(wf2), stk(bf2), stk(l2g), stk(l2b),
            whpb, bhb, woutb)


def vit_regressor_forward(x, params):
    inputs = _prepare_inputs(x, params)
    vspec = pl.BlockSpec(memory_space=pltpu.MemorySpace.VMEM)
    out = pl.pallas_call(
        _vit_kernel,
        out_shape=jax.ShapeDtypeStruct((1, B * N_OUT), jnp.float32),
        in_specs=[vspec] * len(inputs),
        out_specs=vspec,
        scratch_shapes=[
            pltpu.VMEM((CH[1], WY1), jnp.float32),       # conv1 activation staging (5, 576)
            pltpu.VMEM((D_MODEL, LANES), jnp.float32),   # final tokens for the FC head (8, 512)
        ],
    )(*inputs)
    return out.reshape(B, N_OUT)


# ----------------------------- parameter setup (torch-style orientation) -----------------------------
def init_params(key):
    def nrm(k, shape, std=0.05):
        return std * jax.random.normal(k, shape, jnp.float32)

    keys = iter(jax.random.split(key, 64))
    convs = []
    for i in range(N_CONV):
        cin, cout = CH[i], CH[i + 1]
        convs.append((
            nrm(next(keys), (cout, cin, KSIZE, KSIZE)),      # Conv2d.weight
            nrm(next(keys), (cout,)),                        # Conv2d.bias
            jnp.ones((cout,), jnp.float32),                  # BN gamma
            jnp.zeros((cout,), jnp.float32),                 # BN beta
            jnp.zeros((cout,), jnp.float32),                 # BN running_mean
            jnp.ones((cout,), jnp.float32),                  # BN running_var
        ))

    layers = []
    for _ in range(N_VIT_LAYERS):
        layers.append(dict(
            in_proj_w=nrm(next(keys), (3 * D_MODEL, D_MODEL)),
            in_proj_b=nrm(next(keys), (3 * D_MODEL,)),
            out_w=nrm(next(keys), (D_MODEL, D_MODEL)),
            out_b=nrm(next(keys), (D_MODEL,)),
            ln1_g=jnp.ones((D_MODEL,), jnp.float32),
            ln1_b=jnp.zeros((D_MODEL,), jnp.float32),
            ff1_w=nrm(next(keys), (DIM_FF, D_MODEL)),
            ff1_b=nrm(next(keys), (DIM_FF,)),
            ff2_w=nrm(next(keys), (D_MODEL, DIM_FF)),
            ff2_b=nrm(next(keys), (D_MODEL,)),
            ln2_g=jnp.ones((D_MODEL,), jnp.float32),
            ln2_b=jnp.zeros((D_MODEL,), jnp.float32),
        ))

    hidden = [(nrm(next(keys), (MAX_HIDDEN, D_MODEL * P)),   # Linear(1152 -> 32), torch (out,in)
               nrm(next(keys), (MAX_HIDDEN,)))]
    w_out = nrm(next(keys), (N_OUT, MAX_HIDDEN))             # output layer, bias=False

    return dict(convs=convs,
                pos_enc=jnp.zeros((1, P, D_MODEL), jnp.float32),  # matches torch.zeros init
                layers=layers,
                hidden=hidden,
                w_out=w_out)


if __name__ == "__main__":
    root = jax.random.PRNGKey(0)
    kx, kp = jax.random.split(root)
    x = jax.random.normal(kx, (B, IN_CHANNEL, INPUT_SIZE, INPUT_SIZE), jnp.float32)
    params = init_params(kp)

    fwd = jax.jit(vit_regressor_forward)
    y = jax.block_until_ready(fwd(x, params))
    assert y.shape == (B, N_OUT), y.shape
    assert bool(jnp.all(jnp.isfinite(y)))
    print("KERNEL_OK")
</pallas_src>

<mosaic_0001>
module attributes {stable_mosaic.version = 11 : i64} {
  func.func @_vit_kernel(%arg0: memref<27x576xf32, #tpu.memory_space<vmem>>, %arg1: memref<5x27xf32, #tpu.memory_space<vmem>>, %arg2: memref<5x1xf32, #tpu.memory_space<vmem>>, %arg3: memref<9x8x5xf32, #tpu.memory_space<vmem>>, %arg4: memref<8x1xf32, #tpu.memory_space<vmem>>, %arg5: memref<8x512xf32, #tpu.memory_space<vmem>>, %arg6: memref<2x24x8xf32, #tpu.memory_space<vmem>>, %arg7: memref<2x24x1xf32, #tpu.memory_space<vmem>>, %arg8: memref<8x8xf32, #tpu.memory_space<vmem>>, %arg9: memref<2x8x8xf32, #tpu.memory_space<vmem>>, %arg10: memref<2x8x1xf32, #tpu.memory_space<vmem>>, %arg11: memref<2x8x1xf32, #tpu.memory_space<vmem>>, %arg12: memref<2x8x1xf32, #tpu.memory_space<vmem>>, %arg13: memref<2x32x8xf32, #tpu.memory_space<vmem>>, %arg14: memref<2x32x1xf32, #tpu.memory_space<vmem>>, %arg15: memref<2x8x32xf32, #tpu.memory_space<vmem>>, %arg16: memref<2x8x1xf32, #tpu.memory_space<vmem>>, %arg17: memref<2x8x1xf32, #tpu.memory_space<vmem>>, %arg18: memref<2x8x1xf32, #tpu.memory_space<vmem>>, %arg19: memref<8x512x64xf32, #tpu.memory_space<vmem>>, %arg20: memref<1x64xf32, #tpu.memory_space<vmem>>, %arg21: memref<64x6xf32, #tpu.memory_space<vmem>>, %arg22: memref<1x6xf32, #tpu.memory_space<vmem>>, %arg23: memref<5x576xf32, #tpu.memory_space<vmem>>, %arg24: memref<8x512xf32, #tpu.memory_space<vmem>>) attributes {dimension_semantics = [], scalar_prefetch = 0 : i64, scratch_operands = 2 : i64, tpu.core_type = #tpu.core_type<tc>} {
    %c0 = arith.constant 0 : index
    %c0_0 = arith.constant 0 : index
    %0 = vector.load %arg1[%c0, %c0_0] : memref<5x27xf32, #tpu.memory_space<vmem>>, vector<5x27xf32>
    %c0_1 = arith.constant 0 : index
    %c0_2 = arith.constant 0 : index
    %1 = vector.load %arg0[%c0_1, %c0_2] : memref<27x576xf32, #tpu.memory_space<vmem>>, vector<27x576xf32>
    %cst = arith.constant dense<0.000000e+00> : vector<5x576xf32>
    %2 = tpu.matmul %0, %1, %cst {dimension_numbers = #tpu.dot_dimension_numbers<[1], [0], [0], [1], [0, 0, 1, 1], [], []>} : vector<5x27xf32>, vector<27x576xf32>, vector<5x576xf32> -> vector<5x576xf32>
    %c0_3 = arith.constant 0 : index
    %c0_4 = arith.constant 0 : index
    %3 = vector.load %arg2[%c0_3, %c0_4] : memref<5x1xf32, #tpu.memory_space<vmem>>, vector<5x1xf32>
    %4 = vector.broadcast %3 : vector<5x1xf32> to vector<5x576xf32>
    %5 = arith.addf %2, %4 : vector<5x576xf32>
    %cst_5 = arith.constant 0.000000e+00 : f32
    %6 = vector.broadcast %cst_5 : f32 to vector<5x576xf32>
    %7 = arith.maximumf %5, %6 : vector<5x576xf32>
    %c0_6 = arith.constant 0 : index
    %c0_7 = arith.constant 0 : index
    %8 = vector.load %arg23[%c0_6, %c0_7] : memref<5x576xf32, #tpu.memory_space<vmem>>, vector<5x576xf32>
    tpu.vector_store %arg23[%c0_6, %c0_7], %7 {strides = array<i32>} : memref<5x576xf32, #tpu.memory_space<vmem>>, vector<5x576xf32>,
    %c0_8 = arith.constant 0 : index
    %c0_9 = arith.constant 0 : index
    %c0_10 = arith.constant 0 : index
    %9 = vector.load %arg3[%c0_8, %c0_9, %c0_10] : memref<9x8x5xf32, #tpu.memory_space<vmem>>, vector<1x8x5xf32>
    %10 = vector.shape_cast %9 : vector<1x8x5xf32> to vector<8x5xf32>
    %c0_11 = arith.constant 0 : index
    %c0_12 = arith.constant 0 : index
    %11 = vector.load %arg23[%c0_11, %c0_12] : memref<5x576xf32, #tpu.memory_space<vmem>>, vector<5x512xf32>
    %cst_13 = arith.constant dense<0.000000e+00> : vector<8x512xf32>
    %12 = tpu.matmul %10, %11, %cst_13 {dimension_numbers = #tpu.dot_dimension_numbers<[1], [0], [0], [1], [0, 0, 1, 1], [], []>} : vector<8x5xf32>, vector<5x512xf32>, vector<8x512xf32> -> vector<8x512xf32>
    %c1 = arith.constant 1 : index
    %c0_14 = arith.constant 0 : index
    %c0_15 = arith.constant 0 : index
    %13 = vector.load %arg3[%c1, %c0_14, %c0_15] : memref<9x8x5xf32, #tpu.memory_space<vmem>>, vector<1x8x5xf32>
    %14 = vector.shape_cast %13 : vector<1x8x5xf32> to vector<8x5xf32>
    %c0_16 = arith.constant 0 : index
    %c1_17 = arith.constant 1 : index
    %15 = vector.load %arg23[%c0_16, %c1_17] : memref<5x576xf32, #tpu.memory_space<vmem>>, vector<5x512xf32>
    %cst_18 = arith.constant dense<0.000000e+00> : vector<8x512xf32>
    %16 = tpu.matmul %14, %15, %cst_18 {dimension_numbers = #tpu.dot_dimension_numbers<[1], [0], [0], [1], [0, 0, 1, 1], [], []>} : vector<8x5xf32>, vector<5x512xf32>, vector<8x512xf32> -> vector<8x512xf32>
    %17 = arith.addf %12, %16 : vector<8x512xf32>
    %c2 = arith.constant 2 : index
    %c0_19 = arith.constant 0 : index
    %c0_20 = arith.constant 0 : index
    %18 = vector.load %arg3[%c2, %c0_19, %c0_20] : memref<9x8x5xf32, #tpu.memory_space<vmem>>, vector<1x8x5xf32>
    %19 = vector.shape_cast %18 : vector<1x8x5xf32> to vector<8x5xf32>
    %c0_21 = arith.constant 0 : index
    %c2_22 = arith.constant 2 : index
    %20 = vector.load %arg23[%c0_21, %c2_22] : memref<5x576xf32, #tpu.memory_space<vmem>>, vector<5x512xf32>
    %cst_23 = arith.constant dense<0.000000e+00> : vector<8x512xf32>
    %21 = tpu.matmul %19, %20, %cst_23 {dimension_numbers = #tpu.dot_dimension_numbers<[1], [0], [0], [1], [0, 0, 1, 1], [], []>} : vector<8x5xf32>, vector<5x512xf32>, vector<8x512xf32> -> vector<8x512xf32>
    %22 = arith.addf %17, %21 : vector<8x512xf32>
    %c3 = arith.constant 3 : index
    %c0_24 = arith.constant 0 : index
    %c0_25 = arith.constant 0 : index
    %23 = vector.load %arg3[%c3, %c0_24, %c0_25] : memref<9x8x5xf32, #tpu.memory_space<vmem>>, vector<1x8x5xf32>
    %24 = vector.shape_cast %23 : vector<1x8x5xf32> to vector<8x5xf32>
    %c0_26 = arith.constant 0 : index
    %c16 = arith.constant 16 : index
    %25 = vector.load %arg23[%c0_26, %c16] : memref<5x576xf32, #tpu.memory_space<vmem>>, vector<5x512xf32>
    %cst_27 = arith.constant dense<0.000000e+00> : vector<8x512xf32>
    %26 = tpu.matmul %24, %25, %cst_27 {dimension_numbers = #tpu.dot_dimension_numbers<[1], [0], [0], [1], [0, 0, 1, 1], [], []>} : vector<8x5xf32>, vector<5x512xf32>, vector<8x512xf32> -> vector<8x512xf32>
    %27 = arith.addf %22, %26 : vector<8x512xf32>
    %c4 = arith.constant 4 : index
    %c0_28 = arith.constant 0 : index
    %c0_29 = arith.constant 0 : index
    %28 = vector.load %arg3[%c4, %c0_28, %c0_29] : memref<9x8x5xf32, #tpu.memory_space<vmem>>, vector<1x8x5xf32>
    %29 = vector.shape_cast %28 : vector<1x8x5xf32> to vector<8x5xf32>
    %c0_30 = arith.constant 0 : index
    %c17 = arith.constant 17 : index
    %30 = vector.load %arg23[%c0_30, %c17] : memref<5x576xf32, #tpu.memory_space<vmem>>, vector<5x512xf32>
    %cst_31 = arith.constant dense<0.000000e+00> : vector<8x512xf32>
    %31 = tpu.matmul %29, %30, %cst_31 {dimension_numbers = #tpu.dot_dimension_numbers<[1], [0], [0], [1], [0, 0, 1, 1], [], []>} : vector<8x5xf32>, vector<5x512xf32>, vector<8x512xf32> -> vector<8x512xf32>
    %32 = arith.addf %27, %31 : vector<8x512xf32>
    %c5 = arith.constant 5 : index
    %c0_32 = arith.constant 0 : index
    %c0_33 = arith.constant 0 : index
    %33 = vector.load %arg3[%c5, %c0_32, %c0_33] : memref<9x8x5xf32, #tpu.memory_space<vmem>>, vector<1x8x5xf32>
    %34 = vector.shape_cast %33 : vector<1x8x5xf32> to vector<8x5xf32>
    %c0_34 = arith.constant 0 : index
    %c18 = arith.constant 18 : index
    %35 = vector.load %arg23[%c0_34, %c18] : memref<5x576xf32, #tpu.memory_space<vmem>>, vector<5x512xf32>
    %cst_35 = arith.constant dense<0.000000e+00> : vector<8x512xf32>
    %36 = tpu.matmul %34, %35, %cst_35 {dimension_numbers = #tpu.dot_dimension_numbers<[1], [0], [0], [1], [0, 0, 1, 1], [], []>} : vector<8x5xf32>, vector<5x512xf32>, vector<8x512xf32> -> vector<8x512xf32>
    %37 = arith.addf %32, %36 : vector<8x512xf32>
    %c6 = arith.constant 6 : index
    %c0_36 = arith.constant 0 : index
    %c0_37 = arith.constant 0 : index
    %38 = vector.load %arg3[%c6, %c0_36, %c0_37] : memref<9x8x5xf32, #tpu.memory_space<vmem>>, vector<1x8x5xf32>
    %39 = vector.shape_cast %38 : vector<1x8x5xf32> to vector<8x5xf32>
    %c0_38 = arith.constant 0 : index
    %c32 = arith.constant 32 : index
    %40 = vector.load %arg23[%c0_38, %c32] : memref<5x576xf32, #tpu.memory_space<vmem>>, vector<5x512xf32>
    %cst_39 = arith.constant dense<0.000000e+00> : vector<8x512xf32>
    %41 = tpu.matmul %39, %40, %cst_39 {dimension_numbers = #tpu.dot_dimension_numbers<[1], [0], [0], [1], [0, 0, 1, 1], [], []>} : vector<8x5xf32>, vector<5x512xf32>, vector<8x512xf32> -> vector<8x512xf32>
    %42 = arith.addf %37, %41 : vector<8x512xf32>
    %c7 = arith.constant 7 : index
    %c0_40 = arith.constant 0 : index
    %c0_41 = arith.constant 0 : index
    %43 = vector.load %arg3[%c7, %c0_40, %c0_41] : memref<9x8x5xf32, #tpu.memory_space<vmem>>, vector<1x8x5xf32>
    %44 = vector.shape_cast %43 : vector<1x8x5xf32> to vector<8x5xf32>
    %c0_42 = arith.constant 0 : index
    %c33 = arith.constant 33 : index
    %45 = vector.load %arg23[%c0_42, %c33] : memref<5x576xf32, #tpu.memory_space<vmem>>, vector<5x512xf32>
    %cst_43 = arith.constant dense<0.000000e+00> : vector<8x512xf32>
    %46 = tpu.matmul %44, %45, %cst_43 {dimension_numbers = #tpu.dot_dimension_numbers<[1], [0], [0], [1], [0, 0, 1, 1], [], []>} : vector<8x5xf32>, vector<5x512xf32>, vector<8x512xf32> -> vector<8x512xf32>
    %47 = arith.addf %42, %46 : vector<8x512xf32>
    %c8 = arith.constant 8 : index
    %c0_44 = arith.constant 0 : index
    %c0_45 = arith.constant 0 : index
    %48 = vector.load %arg3[%c8, %c0_44, %c0_45] : memref<9x8x5xf32, #tpu.memory_space<vmem>>, vector<1x8x5xf32>
    %49 = vector.shape_cast %48 : vector<1x8x5xf32> to vector<8x5xf32>
    %c0_46 = arith.constant 0 : index
    %c34 = arith.constant 34 : index
    %50 = vector.load %arg23[%c0_46, %c34] : memref<5x576xf32, #tpu.memory_space<vmem>>, vector<5x512xf32>
    %cst_47 = arith.constant dense<0.000000e+00> : vector<8x512xf32>
    %51 = tpu.matmul %49, %50, %cst_47 {dimension_numbers = #tpu.dot_dimension_numbers<[1], [0], [0], [1], [0, 0, 1, 1], [], []>} : vector<8x5xf32>, vector<5x512xf32>, vector<8x512xf32> -> vector<8x512xf32>
    %52 = arith.addf %47, %51 : vector<8x512xf32>
    %c0_48 = arith.constant 0 : index
    %c0_49 = arith.constant 0 : index
    %53 = vector.load %arg4[%c0_48, %c0_49] : memref<8x1xf32, #tpu.memory_space<vmem>>, vector<8x1xf32>
    %54 = vector.broadcast %53 : vector<8x1xf32> to vector<8x512xf32>
    %55 = arith.addf %52, %54 : vector<8x512xf32>
    %cst_50 = arith.constant 0.000000e+00 : f32
    %56 = vector.broadcast %cst_50 : f32 to vector<8x512xf32>
    %57 = arith.maximumf %55, %56 : vector<8x512xf32>
    %c0_51 = arith.constant 0 : index
    %c0_52 = arith.constant 0 : index
    %58 = vector.load %arg5[%c0_51, %c0_52] : memref<8x512xf32, #tpu.memory_space<vmem>>, vector<8x512xf32>
    %59 = arith.addf %57, %58 : vector<8x512xf32>
    %c0_53 = arith.constant 0 : index
    %c0_54 = arith.constant 0 : index
    %60 = vector.load %arg8[%c0_53, %c0_54] : memref<8x8xf32, #tpu.memory_space<vmem>>, vector<8x8xf32>
    %c0_55 = arith.constant 0 : index
    %c0_56 = arith.constant 0 : index
    %c0_57 = arith.constant 0 : index
    %61 = vector.load %arg6[%c0_55, %c0_56, %c0_57] : memref<2x24x8xf32, #tpu.memory_space<vmem>>, vector<1x24x8xf32>
    %62 = vector.shape_cast %61 : vector<1x24x8xf32> to vector<24x8xf32>
    %cst_58 = arith.constant dense<0.000000e+00> : vector<24x512xf32>
    %63 = tpu.matmul %62, %59, %cst_58 {dimension_numbers = #tpu.dot_dimension_numbers<[1], [0], [0], [1], [0, 0, 1, 1], [], []>} : vector<24x8xf32>, vector<8x512xf32>, vector<24x512xf32> -> vector<24x512xf32>
    %c0_59 = arith.constant 0 : index
    %c0_60 = arith.constant 0 : index
    %c0_61 = arith.constant 0 : index
    %64 = vector.load %arg7[%c0_59, %c0_60, %c0_61] : memref<2x24x1xf32, #tpu.memory_space<vmem>>, vector<1x24x1xf32>
    %65 = vector.shape_cast %64 : vector<1x24x1xf32> to vector<24x1xf32>
    %66 = vector.broadcast %65 : vector<24x1xf32> to vector<24x512xf32>
    %67 = arith.addf %63, %66 : vector<24x512xf32>
    %68 = vector.extract_strided_slice %67 {offsets = [0, 0], sizes = [8, 512], strides = [1, 1]} : vector<24x512xf32> to vector<8x512xf32>
    %69 = vector.extract_strided_slice %67 {offsets = [8, 0], sizes = [8, 512], strides = [1, 1]} : vector<24x512xf32> to vector<8x512xf32>
    %70 = vector.extract_strided_slice %67 {offsets = [16, 0], sizes = [8, 512], strides = [1, 1]} : vector<24x512xf32> to vector<8x512xf32>
    %c256_i32 = arith.constant 256 : i32
    %71 = tpu.dynamic_rotate %69 by %c256_i32 dim 1 : vector<8x512xf32>, i32 -> vector<8x512xf32>
    %c256_i32_62 = arith.constant 256 : i32
    %72 = tpu.dynamic_rotate %70 by %c256_i32_62 dim 1 : vector<8x512xf32>, i32 -> vector<8x512xf32>
    %73 = arith.mulf %68, %69 : vector<8x512xf32>
    %cst_63 = arith.constant dense<0.000000e+00> : vector<8x512xf32>
    %74 = tpu.matmul %60, %73, %cst_63 {dimension_numbers = #tpu.dot_dimension_numbers<[1], [0], [0], [1], [0, 0, 1, 1], [], []>} : vector<8x8xf32>, vector<8x512xf32>, vector<8x512xf32> -> vector<8x512xf32>
    %75 = arith.mulf %68, %71 : vector<8x512xf32>
    %cst_64 = arith.constant dense<0.000000e+00> : vector<8x512xf32>
    %76 = tpu.matmul %60, %75, %cst_64 {dimension_numbers = #tpu.dot_dimension_numbers<[1], [0], [0], [1], [0, 0, 1, 1], [], []>} : vector<8x8xf32>, vector<8x512xf32>, vector<8x512xf32> -> vector<8x512xf32>
    %77 = arith.subf %76, %74 : vector<8x512xf32>
    %78 = math.exp %77 : vector<8x512xf32>
    %cst_65 = arith.constant 1.000000e+00 : f32
    %79 = vector.broadcast %cst_65 : f32 to vector<8x512xf32>
    %80 = arith.addf %79, %78 : vector<8x512xf32>
    %cst_66 = arith.constant 1.000000e+00 : f32
    %81 = vector.broadcast %cst_66 : f32 to vector<8x512xf32>
    %82 = arith.divf %81, %80 : vector<8x512xf32>
    %83 = arith.subf %70, %72 : vector<8x512xf32>
    %84 = arith.mulf %82, %83 : vector<8x512xf32>
    %85 = arith.addf %72, %84 : vector<8x512xf32>
    %c0_67 = arith.constant 0 : index
    %c0_68 = arith.constant 0 : index
    %c0_69 = arith.constant 0 : index
    %86 = vector.load %arg9[%c0_67, %c0_68, %c0_69] : memref<2x8x8xf32, #tpu.memory_space<vmem>>, vector<1x8x8xf32>
    %87 = vector.shape_cast %86 : vector<1x8x8xf32> to vector<8x8xf32>
    %cst_70 = arith.constant dense<0.000000e+00> : vector<8x512xf32>
    %88 = tpu.matmul %87, %85, %cst_70 {dimension_numbers = #tpu.dot_dimension_numbers<[1], [0], [0], [1], [0, 0, 1, 1], [], []>} : vector<8x8xf32>, vector<8x512xf32>, vector<8x512xf32> -> vector<8x512xf32>
    %c0_71 = arith.constant 0 : index
    %c0_72 = arith.constant 0 : index
    %c0_73 = arith.constant 0 : index
    %89 = vector.load %arg10[%c0_71, %c0_72, %c0_73] : memref<2x8x1xf32, #tpu.memory_space<vmem>>, vector<1x8x1xf32>
    %90 = vector.shape_cast %89 : vector<1x8x1xf32> to vector<8x1xf32>
    %91 = vector.broadcast %90 : vector<8x1xf32> to vector<8x512xf32>
    %92 = arith.addf %88, %91 : vector<8x512xf32>
    %93 = arith.addf %92, %59 : vector<8x512xf32>
    %c0_74 = arith.constant 0 : index
    %c0_75 = arith.constant 0 : index
    %c0_76 = arith.constant 0 : index
    %94 = vector.load %arg11[%c0_74, %c0_75, %c0_76] : memref<2x8x1xf32, #tpu.memory_space<vmem>>, vector<1x8x1xf32>
    %95 = vector.shape_cast %94 : vector<1x8x1xf32> to vector<8x1xf32>
    %c0_77 = arith.constant 0 : index
    %c0_78 = arith.constant 0 : index
    %c0_79 = arith.constant 0 : index
    %96 = vector.load %arg12[%c0_77, %c0_78, %c0_79] : memref<2x8x1xf32, #tpu.memory_space<vmem>>, vector<1x8x1xf32>
    %97 = vector.shape_cast %96 : vector<1x8x1xf32> to vector<8x1xf32>
    %cst_80 = arith.constant dense<0.000000e+00> : vector<512xf32>
    %98 = vector.multi_reduction <add>, %93, %cst_80 [0] : vector<8x512xf32> to vector<512xf32>
    %99 = vector.shape_cast %98 : vector<512xf32> to vector<1x512xf32>
    %cst_81 = arith.constant 8.000000e+00 : f32
    %100 = vector.broadcast %cst_81 : f32 to vector<1x512xf32>
    %101 = arith.divf %99, %100 : vector<1x512xf32>
    %102 = vector.broadcast %101 : vector<1x512xf32> to vector<8x512xf32>
    %103 = arith.subf %93, %102 : vector<8x512xf32>
    %104 = arith.mulf %103, %103 : vector<8x512xf32>
    %cst_82 = arith.constant dense<0.000000e+00> : vector<512xf32>
    %105 = vector.multi_reduction <add>, %104, %cst_82 [0] : vector<8x512xf32> to vector<512xf32>
    %106 = vector.shape_cast %105 : vector<512xf32> to vector<1x512xf32>
    %cst_83 = arith.constant 8.000000e+00 : f32
    %107 = vector.broadcast %cst_83 : f32 to vector<1x512xf32>
    %108 = arith.divf %106, %107 : vector<1x512xf32>
    %cst_84 = arith.constant 9.99999974E-6 : f32
    %109 = vector.broadcast %cst_84 : f32 to vector<1x512xf32>
    %110 = arith.addf %108, %109 : vector<1x512xf32>
    %111 = math.rsqrt %110 : vector<1x512xf32>
    %112 = vector.broadcast %111 : vector<1x512xf32> to vector<8x512xf32>
    %113 = arith.mulf %103, %112 : vector<8x512xf32>
    %114 = vector.broadcast %95 : vector<8x1xf32> to vector<8x512xf32>
    %115 = arith.mulf %113, %114 : vector<8x512xf32>
    %116 = vector.broadcast %97 : vector<8x1xf32> to vector<8x512xf32>
    %117 = arith.addf %115, %116 : vector<8x512xf32>
    %c0_85 = arith.constant 0 : index
    %c0_86 = arith.constant 0 : index
    %c0_87 = arith.constant 0 : index
    %118 = vector.load %arg13[%c0_85, %c0_86, %c0_87] : memref<2x32x8xf32, #tpu.memory_space<vmem>>, vector<1x32x8xf32>
    %119 = vector.shape_cast %118 : vector<1x32x8xf32> to vector<32x8xf32>
    %cst_88 = arith.constant dense<0.000000e+00> : vector<32x512xf32>
    %120 = tpu.matmul %119, %117, %cst_88 {dimension_numbers = #tpu.dot_dimension_numbers<[1], [0], [0], [1], [0, 0, 1, 1], [], []>} : vector<32x8xf32>, vector<8x512xf32>, vector<32x512xf32> -> vector<32x512xf32>
    %c0_89 = arith.constant 0 : index
    %c0_90 = arith.constant 0 : index
    %c0_91 = arith.constant 0 : index
    %121 = vector.load %arg14[%c0_89, %c0_90, %c0_91] : memref<2x32x1xf32, #tpu.memory_space<vmem>>, vector<1x32x1xf32>
    %122 = vector.shape_cast %121 : vector<1x32x1xf32> to vector<32x1xf32>
    %123 = vector.broadcast %122 : vector<32x1xf32> to vector<32x512xf32>
    %124 = arith.addf %120, %123 : vector<32x512xf32>
    %cst_92 = arith.constant 0.000000e+00 : f32
    %125 = vector.broadcast %cst_92 : f32 to vector<32x512xf32>
    %126 = arith.maximumf %124, %125 : vector<32x512xf32>
    %c0_93 = arith.constant 0 : index
    %c0_94 = arith.constant 0 : index
    %c0_95 = arith.constant 0 : index
    %127 = vector.load %arg15[%c0_93, %c0_94, %c0_95] : memref<2x8x32xf32, #tpu.memory_space<vmem>>, vector<1x8x32xf32>
    %128 = vector.shape_cast %127 : vector<1x8x32xf32> to vector<8x32xf32>
    %cst_96 = arith.constant dense<0.000000e+00> : vector<8x512xf32>
    %129 = tpu.matmul %128, %126, %cst_96 {dimension_numbers = #tpu.dot_dimension_numbers<[1], [0], [0], [1], [0, 0, 1, 1], [], []>} : vector<8x32xf32>, vector<32x512xf32>, vector<8x512xf32> -> vector<8x512xf32>
    %c0_97 = arith.constant 0 : index
    %c0_98 = arith.constant 0 : index
    %c0_99 = arith.constant 0 : index
    %130 = vector.load %arg16[%c0_97, %c0_98, %c0_99] : memref<2x8x1xf32, #tpu.memory_space<vmem>>, vector<1x8x1xf32>
    %131 = vector.shape_cast %130 : vector<1x8x1xf32> to vector<8x1xf32>
    %132 = vector.broadcast %131 : vector<8x1xf32> to vector<8x512xf32>
    %133 = arith.addf %129, %132 : vector<8x512xf32>
    %134 = arith.addf %117, %133 : vector<8x512xf32>
    %c0_100 = arith.constant 0 : index
    %c0_101 = arith.constant 0 : index
    %c0_102 = arith.constant 0 : index
    %135 = vector.load %arg17[%c0_100, %c0_101, %c0_102] : memref<2x8x1xf32, #tpu.memory_space<vmem>>, vector<1x8x1xf32>
    %136 = vector.shape_cast %135 : vector<1x8x1xf32> to vector<8x1xf32>
    %c0_103 = arith.constant 0 : index
    %c0_104 = arith.constant 0 : index
    %c0_105 = arith.constant 0 : index
    %137 = vector.load %arg18[%c0_103, %c0_104, %c0_105] : memref<2x8x1xf32, #tpu.memory_space<vmem>>, vector<1x8x1xf32>
    %138 = vector.shape_cast %137 : vector<1x8x1xf32> to vector<8x1xf32>
    %cst_106 = arith.constant dense<0.000000e+00> : vector<512xf32>
    %139 = vector.multi_reduction <add>, %134, %cst_106 [0] : vector<8x512xf32> to vector<512xf32>
    %140 = vector.shape_cast %139 : vector<512xf32> to vector<1x512xf32>
    %cst_107 = arith.constant 8.000000e+00 : f32
    %141 = vector.broadcast %cst_107 : f32 to vector<1x512xf32>
    %142 = arith.divf %140, %141 : vector<1x512xf32>
    %143 = vector.broadcast %142 : vector<1x512xf32> to vector<8x512xf32>
    %144 = arith.subf %134, %143 : vector<8x512xf32>
    %145 = arith.mulf %144, %144 : vector<8x512xf32>
    %cst_108 = arith.constant dense<0.000000e+00> : vector<512xf32>
    %146 = vector.multi_reduction <add>, %145, %cst_108 [0] : vector<8x512xf32> to vector<512xf32>
    %147 = vector.shape_cast %146 : vector<512xf32> to vector<1x512xf32>
    %cst_109 = arith.constant 8.000000e+00 : f32
    %148 = vector.broadcast %cst_109 : f32 to vector<1x512xf32>
    %149 = arith.divf %147, %148 : vector<1x512xf32>
    %cst_110 = arith.constant 9.99999974E-6 : f32
    %150 = vector.broadcast %cst_110 : f32 to vector<1x512xf32>
    %151 = arith.addf %149, %150 : vector<1x512xf32>
    %152 = math.rsqrt %151 : vector<1x512xf32>
    %153 = vector.broadcast %152 : vector<1x512xf32> to vector<8x512xf32>
    %154 = arith.mulf %144, %153 : vector<8x512xf32>
    %155 = vector.broadcast %136 : vector<8x1xf32> to vector<8x512xf32>
    %156 = arith.mulf %154, %155 : vector<8x512xf32>
    %157 = vector.broadcast %138 : vector<8x1xf32> to vector<8x512xf32>
    %158 = arith.addf %156, %157 : vector<8x512xf32>
    %c1_111 = arith.constant 1 : index
    %c0_112 = arith.constant 0 : index
    %c0_113 = arith.constant 0 : index
    %159 = vector.load %arg6[%c1_111, %c0_112, %c0_113] : memref<2x24x8xf32, #tpu.memory_space<vmem>>, vector<1x24x8xf32>
    %160 = vector.shape_cast %159 : vector<1x24x8xf32> to vector<24x8xf32>
    %cst_114 = arith.constant dense<0.000000e+00> : vector<24x512xf32>
    %161 = tpu.matmul %160, %158, %cst_114 {dimension_numbers = #tpu.dot_dimension_numbers<[1], [0], [0], [1], [0, 0, 1, 1], [], []>} : vector<24x8xf32>, vector<8x512xf32>, vector<24x512xf32> -> vector<24x512xf32>
    %c1_115 = arith.constant 1 : index
    %c0_116 = arith.constant 0 : index
    %c0_117 = arith.constant 0 : index
    %162 = vector.load %arg7[%c1_115, %c0_116, %c0_117] : memref<2x24x1xf32, #tpu.memory_space<vmem>>, vector<1x24x1xf32>
    %163 = vector.shape_cast %162 : vector<1x24x1xf32> to vector<24x1xf32>
    %164 = vector.broadcast %163 : vector<24x1xf32> to vector<24x512xf32>
    %165 = arith.addf %161, %164 : vector<24x512xf32>
    %166 = vector.extract_strided_slice %165 {offsets = [0, 0], sizes = [8, 512], strides = [1, 1]} : vector<24x512xf32> to vector<8x512xf32>
    %167 = vector.extract_strided_slice %165 {offsets = [8, 0], sizes = [8, 512], strides = [1, 1]} : vector<24x512xf32> to vector<8x512xf32>
    %168 = vector.extract_strided_slice %165 {offsets = [16, 0], sizes = [8, 512], strides = [1, 1]} : vector<24x512xf32> to vector<8x512xf32>
    %c256_i32_118 = arith.constant 256 : i32
    %169 = tpu.dynamic_rotate %167 by %c256_i32_118 dim 1 : vector<8x512xf32>, i32 -> vector<8x512xf32>
    %c256_i32_119 = arith.constant 256 : i32
    %170 = tpu.dynamic_rotate %168 by %c256_i32_119 dim 1 : vector<8x512xf32>, i32 -> vector<8x512xf32>
    %171 = arith.mulf %166, %167 : vector<8x512xf32>
    %cst_120 = arith.constant dense<0.000000e+00> : vector<8x512xf32>
    %172 = tpu.matmul %60, %171, %cst_120 {dimension_numbers = #tpu.dot_dimension_numbers<[1], [0], [0], [1], [0, 0, 1, 1], [], []>} : vector<8x8xf32>, vector<8x512xf32>, vector<8x512xf32> -> vector<8x512xf32>
    %173 = arith.mulf %166, %169 : vector<8x512xf32>
    %cst_121 = arith.constant dense<0.000000e+00> : vector<8x512xf32>
    %174 = tpu.matmul %60, %173, %cst_121 {dimension_numbers = #tpu.dot_dimension_numbers<[1], [0], [0], [1], [0, 0, 1, 1], [], []>} : vector<8x8xf32>, vector<8x512xf32>, vector<8x512xf32> -> vector<8x512xf32>
    %175 = arith.subf %174, %172 : vector<8x512xf32>
    %176 = math.exp %175 : vector<8x512xf32>
    %cst_122 = arith.constant 1.000000e+00 : f32
    %177 = vector.broadcast %cst_122 : f32 to vector<8x512xf32>
    %178 = arith.addf %177, %176 : vector<8x512xf32>
    %cst_123 = arith.constant 1.000000e+00 : f32
    %179 = vector.broadcast %cst_123 : f32 to vector<8x512xf32>
    %180 = arith.divf %179, %178 : vector<8x512xf32>
    %181 = arith.subf %168, %170 : vector<8x512xf32>
    %182 = arith.mulf %180, %181 : vector<8x512xf32>
    %183 = arith.addf %170, %182 : vector<8x512xf32>
    %c1_124 = arith.constant 1 : index
    %c0_125 = arith.constant 0 : index
    %c0_126 = arith.constant 0 : index
    %184 = vector.load %arg9[%c1_124, %c0_125, %c0_126] : memref<2x8x8xf32, #tpu.memory_space<vmem>>, vector<1x8x8xf32>
    %185 = vector.shape_cast %184 : vector<1x8x8xf32> to vector<8x8xf32>
    %cst_127 = arith.constant dense<0.000000e+00> : vector<8x512xf32>
    %186 = tpu.matmul %185, %183, %cst_127 {dimension_numbers = #tpu.dot_dimension_numbers<[1], [0], [0], [1], [0, 0, 1, 1], [], []>} : vector<8x8xf32>, vector<8x512xf32>, vector<8x512xf32> -> vector<8x512xf32>
    %c1_128 = arith.constant 1 : index
    %c0_129 = arith.constant 0 : index
    %c0_130 = arith.constant 0 : index
    %187 = vector.load %arg10[%c1_128, %c0_129, %c0_130] : memref<2x8x1xf32, #tpu.memory_space<vmem>>, vector<1x8x1xf32>
    %188 = vector.shape_cast %187 : vector<1x8x1xf32> to vector<8x1xf32>
    %189 = vector.broadcast %188 : vector<8x1xf32> to vector<8x512xf32>
    %190 = arith.addf %186, %189 : vector<8x512xf32>
    %191 = arith.addf %190, %158 : vector<8x512xf32>
    %c1_131 = arith.constant 1 : index
    %c0_132 = arith.constant 0 : index
    %c0_133 = arith.constant 0 : index
    %192 = vector.load %arg11[%c1_131, %c0_132, %c0_133] : memref<2x8x1xf32, #tpu.memory_space<vmem>>, vector<1x8x1xf32>
    %193 = vector.shape_cast %192 : vector<1x8x1xf32> to vector<8x1xf32>
    %c1_134 = arith.constant 1 : index
    %c0_135 = arith.constant 0 : index
    %c0_136 = arith.constant 0 : index
    %194 = vector.load %arg12[%c1_134, %c0_135, %c0_136] : memref<2x8x1xf32, #tpu.memory_space<vmem>>, vector<1x8x1xf32>
    %195 = vector.shape_cast %194 : vector<1x8x1xf32> to vector<8x1xf32>
    %cst_137 = arith.constant dense<0.000000e+00> : vector<512xf32>
    %196 = vector.multi_reduction <add>, %191, %cst_137 [0] : vector<8x512xf32> to vector<512xf32>
    %197 = vector.shape_cast %196 : vector<512xf32> to vector<1x512xf32>
    %cst_138 = arith.constant 8.000000e+00 : f32
    %198 = vector.broadcast %cst_138 : f32 to vector<1x512xf32>
    %199 = arith.divf %197, %198 : vector<1x512xf32>
    %200 = vector.broadcast %199 : vector<1x512xf32> to vector<8x512xf32>
    %201 = arith.subf %191, %200 : vector<8x512xf32>
    %202 = arith.mulf %201, %201 : vector<8x512xf32>
    %cst_139 = arith.constant dense<0.000000e+00> : vector<512xf32>
    %203 = vector.multi_reduction <add>, %202, %cst_139 [0] : vector<8x512xf32> to vector<512xf32>
    %204 = vector.shape_cast %203 : vector<512xf32> to vector<1x512xf32>
    %cst_140 = arith.constant 8.000000e+00 : f32
    %205 = vector.broadcast %cst_140 : f32 to vector<1x512xf32>
    %206 = arith.divf %204, %205 : vector<1x512xf32>
    %cst_141 = arith.constant 9.99999974E-6 : f32
    %207 = vector.broadcast %cst_141 : f32 to vector<1x512xf32>
    %208 = arith.addf %206, %207 : vector<1x512xf32>
    %209 = math.rsqrt %208 : vector<1x512xf32>
    %210 = vector.broadcast %209 : vector<1x512xf32> to vector<8x512xf32>
    %211 = arith.mulf %201, %210 : vector<8x512xf32>
    %212 = vector.broadcast %193 : vector<8x1xf32> to vector<8x512xf32>
    %213 = arith.mulf %211, %212 : vector<8x512xf32>
    %214 = vector.broadcast %195 : vector<8x1xf32> to vector<8x512xf32>
    %215 = arith.addf %213, %214 : vector<8x512xf32>
    %c1_142 = arith.constant 1 : index
    %c0_143 = arith.constant 0 : index
    %c0_144 = arith.constant 0 : index
    %216 = vector.load %arg13[%c1_142, %c0_143, %c0_144] : memref<2x32x8xf32, #tpu.memory_space<vmem>>, vector<1x32x8xf32>
    %217 = vector.shape_cast %216 : vector<1x32x8xf32> to vector<32x8xf32>
    %cst_145 = arith.constant dense<0.000000e+00> : vector<32x512xf32>
    %218 = tpu.matmul %217, %215, %cst_145 {dimension_numbers = #tpu.dot_dimension_numbers<[1], [0], [0], [1], [0, 0, 1, 1], [], []>} : vector<32x8xf32>, vector<8x512xf32>, vector<32x512xf32> -> vector<32x512xf32>
    %c1_146 = arith.constant 1 : index
    %c0_147 = arith.constant 0 : index
    %c0_148 = arith.constant 0 : index
    %219 = vector.load %arg14[%c1_146, %c0_147, %c0_148] : memref<2x32x1xf32, #tpu.memory_space<vmem>>, vector<1x32x1xf32>
    %220 = vector.shape_cast %219 : vector<1x32x1xf32> to vector<32x1xf32>
    %221 = vector.broadcast %220 : vector<32x1xf32> to vector<32x512xf32>
    %222 = arith.addf %218, %221 : vector<32x512xf32>
    %cst_149 = arith.constant 0.000000e+00 : f32
    %223 = vector.broadcast %cst_149 : f32 to vector<32x512xf32>
    %224 = arith.maximumf %222, %223 : vector<32x512xf32>
    %c1_150 = arith.constant 1 : index
    %c0_151 = arith.constant 0 : index
    %c0_152 = arith.constant 0 : index
    %225 = vector.load %arg15[%c1_150, %c0_151, %c0_152] : memref<2x8x32xf32, #tpu.memory_space<vmem>>, vector<1x8x32xf32>
    %226 = vector.shape_cast %225 : vector<1x8x32xf32> to vector<8x32xf32>
    %cst_153 = arith.constant dense<0.000000e+00> : vector<8x512xf32>
    %227 = tpu.matmul %226, %224, %cst_153 {dimension_numbers = #tpu.dot_dimension_numbers<[1], [0], [0], [1], [0, 0, 1, 1], [], []>} : vector<8x32xf32>, vector<32x512xf32>, vector<8x512xf32> -> vector<8x512xf32>
    %c1_154 = arith.constant 1 : index
    %c0_155 = arith.constant 0 : index
    %c0_156 = arith.constant 0 : index
    %228 = vector.load %arg16[%c1_154, %c0_155, %c0_156] : memref<2x8x1xf32, #tpu.memory_space<vmem>>, vector<1x8x1xf32>
    %229 = vector.shape_cast %228 : vector<1x8x1xf32> to vector<8x1xf32>
    %230 = vector.broadcast %229 : vector<8x1xf32> to vector<8x512xf32>
    %231 = arith.addf %227, %230 : vector<8x512xf32>
    %232 = arith.addf %215, %231 : vector<8x512xf32>
    %c1_157 = arith.constant 1 : index
    %c0_158 = arith.constant 0 : index
    %c0_159 = arith.constant 0 : index
    %233 = vector.load %arg17[%c1_157, %c0_158, %c0_159] : memref<2x8x1xf32, #tpu.memory_space<vmem>>, vector<1x8x1xf32>
    %234 = vector.shape_cast %233 : vector<1x8x1xf32> to vector<8x1xf32>
    %c1_160 = arith.constant 1 : index
    %c0_161 = arith.constant 0 : index
    %c0_162 = arith.constant 0 : index
    %235 = vector.load %arg18[%c1_160, %c0_161, %c0_162] : memref<2x8x1xf32, #tpu.memory_space<vmem>>, vector<1x8x1xf32>
    %236 = vector.shape_cast %235 : vector<1x8x1xf32> to vector<8x1xf32>
    %cst_163 = arith.constant dense<0.000000e+00> : vector<512xf32>
    %237 = vector.multi_reduction <add>, %232, %cst_163 [0] : vector<8x512xf32> to vector<512xf32>
    %238 = vector.shape_cast %237 : vector<512xf32> to vector<1x512xf32>
    %cst_164 = arith.constant 8.000000e+00 : f32
    %239 = vector.broadcast %cst_164 : f32 to vector<1x512xf32>
    %240 = arith.divf %238, %239 : vector<1x512xf32>
    %241 = vector.broadcast %240 : vector<1x512xf32> to vector<8x512xf32>
    %242 = arith.subf %232, %241 : vector<8x512xf32>
    %243 = arith.mulf %242, %242 : vector<8x512xf32>
    %cst_165 = arith.constant dense<0.000000e+00> : vector<512xf32>
    %244 = vector.multi_reduction <add>, %243, %cst_165 [0] : vector<8x512xf32> to vector<512xf32>
    %245 = vector.shape_cast %244 : vector<512xf32> to vector<1x512xf32>
    %cst_166 = arith.constant 8.000000e+00 : f32
    %246 = vector.broadcast %cst_166 : f32 to vector<1x512xf32>
    %247 = arith.divf %245, %246 : vector<1x512xf32>
    %cst_167 = arith.constant 9.99999974E-6 : f32
    %248 = vector.broadcast %cst_167 : f32 to vector<1x512xf32>
    %249 = arith.addf %247, %248 : vector<1x512xf32>
    %250 = math.rsqrt %249 : vector<1x512xf32>
    %251 = vector.broadcast %250 : vector<1x512xf32> to vector<8x512xf32>
    %252 = arith.mulf %242, %251 : vector<8x512xf32>
    %253 = vector.broadcast %234 : vector<8x1xf32> to vector<8x512xf32>
    %254 = arith.mulf %252, %253 : vector<8x512xf32>
    %255 = vector.broadcast %236 : vector<8x1xf32> to vector<8x512xf32>
    %256 = arith.addf %254, %255 : vector<8x512xf32>
    %c0_168 = arith.constant 0 : index
    %c0_169 = arith.constant 0 : index
    %257 = vector.load %arg24[%c0_168, %c0_169] : memref<8x512xf32, #tpu.memory_space<vmem>>, vector<8x512xf32>
    tpu.vector_store %arg24[%c0_168, %c0_169], %256 {strides = array<i32>} : memref<8x512xf32, #tpu.memory_space<vmem>>, vector<8x512xf32>,
    %c0_170 = arith.constant 0 : index
    %c0_171 = arith.constant 0 : index
    %258 = vector.load %arg20[%c0_170, %c0_171] : memref<1x64xf32, #tpu.memory_space<vmem>>, vector<1x64xf32>
    %c0_172 = arith.constant 0 : index
    %c0_173 = arith.constant 0 : index
    %259 = vector.load %arg24[%c0_172, %c0_173] : memref<8x512xf32, #tpu.memory_space<vmem>>, vector<1x512xf32>
    %c0_174 = arith.constant 0 : index
    %c0_175 = arith.constant 0 : index
    %c0_176 = arith.constant 0 : index
    %260 = vector.load %arg19[%c0_174, %c0_175, %c0_176] : memref<8x512x64xf32, #tpu.memory_space<vmem>>, vector<1x512x64xf32>
    %261 = vector.shape_cast %260 : vector<1x512x64xf32> to vector<512x64xf32>
    %cst_177 = arith.constant dense<0.000000e+00> : vector<1x64xf32>
    %262 = tpu.matmul %259, %261, %cst_177 {dimension_numbers = #tpu.dot_dimension_numbers<[1], [0], [0], [1], [0, 0, 1, 1], [], []>} : vector<1x512xf32>, vector<512x64xf32>, vector<1x64xf32> -> vector<1x64xf32>
    %263 = arith.addf %258, %262 : vector<1x64xf32>
    %c1_178 = arith.constant 1 : index
    %c0_179 = arith.constant 0 : index
    %264 = vector.load %arg24[%c1_178, %c0_179] : memref<8x512xf32, #tpu.memory_space<vmem>>, vector<1x512xf32>
    %c1_180 = arith.constant 1 : index
    %c0_181 = arith.constant 0 : index
    %c0_182 = arith.constant 0 : index
    %265 = vector.load %arg19[%c1_180, %c0_181, %c0_182] : memref<8x512x64xf32, #tpu.memory_space<vmem>>, vector<1x512x64xf32>
    %266 = vector.shape_cast %265 : vector<1x512x64xf32> to vector<512x64xf32>
    %cst_183 = arith.constant dense<0.000000e+00> : vector<1x64xf32>
    %267 = tpu.matmul %264, %266, %cst_183 {dimension_numbers = #tpu.dot_dimension_numbers<[1], [0], [0], [1], [0, 0, 1, 1], [], []>} : vector<1x512xf32>, vector<512x64xf32>, vector<1x64xf32> -> vector<1x64xf32>
    %268 = arith.addf %263, %267 : vector<1x64xf32>
    %c2_184 = arith.constant 2 : index
    %c0_185 = arith.constant 0 : index
    %269 = vector.load %arg24[%c2_184, %c0_185] : memref<8x512xf32, #tpu.memory_space<vmem>>, vector<1x512xf32>
    %c2_186 = arith.constant 2 : index
    %c0_187 = arith.constant 0 : index
    %c0_188 = arith.constant 0 : index
    %270 = vector.load %arg19[%c2_186, %c0_187, %c0_188] : memref<8x512x64xf32, #tpu.memory_space<vmem>>, vector<1x512x64xf32>
    %271 = vector.shape_cast %270 : vector<1x512x64xf32> to vector<512x64xf32>
    %cst_189 = arith.constant dense<0.000000e+00> : vector<1x64xf32>
    %272 = tpu.matmul %269, %271, %cst_189 {dimension_numbers = #tpu.dot_dimension_numbers<[1], [0], [0], [1], [0, 0, 1, 1], [], []>} : vector<1x512xf32>, vector<512x64xf32>, vector<1x64xf32> -> vector<1x64xf32>
    %273 = arith.addf %268, %272 : vector<1x64xf32>
    %c3_190 = arith.constant 3 : index
    %c0_191 = arith.constant 0 : index
    %274 = vector.load %arg24[%c3_190, %c0_191] : memref<8x512xf32, #tpu.memory_space<vmem>>, vector<1x512xf32>
    %c3_192 = arith.constant 3 : index
    %c0_193 = arith.constant 0 : index
    %c0_194 = arith.constant 0 : index
    %275 = vector.load %arg19[%c3_192, %c0_193, %c0_194] : memref<8x512x64xf32, #tpu.memory_space<vmem>>, vector<1x512x64xf32>
    %276 = vector.shape_cast %275 : vector<1x512x64xf32> to vector<512x64xf32>
    %cst_195 = arith.constant dense<0.000000e+00> : vector<1x64xf32>
    %277 = tpu.matmul %274, %276, %cst_195 {dimension_numbers = #tpu.dot_dimension_numbers<[1], [0], [0], [1], [0, 0, 1, 1], [], []>} : vector<1x512xf32>, vector<512x64xf32>, vector<1x64xf32> -> vector<1x64xf32>
    %278 = arith.addf %273, %277 : vector<1x64xf32>
    %c4_196 = arith.constant 4 : index
    %c0_197 = arith.constant 0 : index
    %279 = vector.load %arg24[%c4_196, %c0_197] : memref<8x512xf32, #tpu.memory_space<vmem>>, vector<1x512xf32>
    %c4_198 = arith.constant 4 : index
    %c0_199 = arith.constant 0 : index
    %c0_200 = arith.constant 0 : index
    %280 = vector.load %arg19[%c4_198, %c0_199, %c0_200] : memref<8x512x64xf32, #tpu.memory_space<vmem>>, vector<1x512x64xf32>
    %281 = vector.shape_cast %280 : vector<1x512x64xf32> to vector<512x64xf32>
    %cst_201 = arith.constant dense<0.000000e+00> : vector<1x64xf32>
    %282 = tpu.matmul %279, %281, %cst_201 {dimension_numbers = #tpu.dot_dimension_numbers<[1], [0], [0], [1], [0, 0, 1, 1], [], []>} : vector<1x512xf32>, vector<512x64xf32>, vector<1x64xf32> -> vector<1x64xf32>
    %283 = arith.addf %278, %282 : vector<1x64xf32>
    %c5_202 = arith.constant 5 : index
    %c0_203 = arith.constant 0 : index
    %284 = vector.load %arg24[%c5_202, %c0_203] : memref<8x512xf32, #tpu.memory_space<vmem>>, vector<1x512xf32>
    %c5_204 = arith.constant 5 : index
    %c0_205 = arith.constant 0 : index
    %c0_206 = arith.constant 0 : index
    %285 = vector.load %arg19[%c5_204, %c0_205, %c0_206] : memref<8x512x64xf32, #tpu.memory_space<vmem>>, vector<1x512x64xf32>
    %286 = vector.shape_cast %285 : vector<1x512x64xf32> to vector<512x64xf32>
    %cst_207 = arith.constant dense<0.000000e+00> : vector<1x64xf32>
    %287 = tpu.matmul %284, %286, %cst_207 {dimension_numbers = #tpu.dot_dimension_numbers<[1], [0], [0], [1], [0, 0, 1, 1], [], []>} : vector<1x512xf32>, vector<512x64xf32>, vector<1x64xf32> -> vector<1x64xf32>
    %288 = arith.addf %283, %287 : vector<1x64xf32>
    %c6_208 = arith.constant 6 : index
    %c0_209 = arith.constant 0 : index
    %289 = vector.load %arg24[%c6_208, %c0_209] : memref<8x512xf32, #tpu.memory_space<vmem>>, vector<1x512xf32>
    %c6_210 = arith.constant 6 : index
    %c0_211 = arith.constant 0 : index
    %c0_212 = arith.constant 0 : index
    %290 = vector.load %arg19[%c6_210, %c0_211, %c0_212] : memref<8x512x64xf32, #tpu.memory_space<vmem>>, vector<1x512x64xf32>
    %291 = vector.shape_cast %290 : vector<1x512x64xf32> to vector<512x64xf32>
    %cst_213 = arith.constant dense<0.000000e+00> : vector<1x64xf32>
    %292 = tpu.matmul %289, %291, %cst_213 {dimension_numbers = #tpu.dot_dimension_numbers<[1], [0], [0], [1], [0, 0, 1, 1], [], []>} : vector<1x512xf32>, vector<512x64xf32>, vector<1x64xf32> -> vector<1x64xf32>
    %293 = arith.addf %288, %292 : vector<1x64xf32>
    %c7_214 = arith.constant 7 : index
    %c0_215 = arith.constant 0 : index
    %294 = vector.load %arg24[%c7_214, %c0_215] : memref<8x512xf32, #tpu.memory_space<vmem>>, vector<1x512xf32>
    %c7_216 = arith.constant 7 : index
    %c0_217 = arith.constant 0 : index
    %c0_218 = arith.constant 0 : index
    %295 = vector.load %arg19[%c7_216, %c0_217, %c0_218] : memref<8x512x64xf32, #tpu.memory_space<vmem>>, vector<1x512x64xf32>
    %296 = vector.shape_cast %295 : vector<1x512x64xf32> to vector<512x64xf32>
    %cst_219 = arith.constant dense<0.000000e+00> : vector<1x64xf32>
    %297 = tpu.matmul %294, %296, %cst_219 {dimension_numbers = #tpu.dot_dimension_numbers<[1], [0], [0], [1], [0, 0, 1, 1], [], []>} : vector<1x512xf32>, vector<512x64xf32>, vector<1x64xf32> -> vector<1x64xf32>
    %298 = arith.addf %293, %297 : vector<1x64xf32>
    %cst_220 = arith.constant 0.000000e+00 : f32
    %299 = vector.broadcast %cst_220 : f32 to vector<1x64xf32>
    %300 = arith.maximumf %298, %299 : vector<1x64xf32>
    %c0_221 = arith.constant 0 : index
    %c0_222 = arith.constant 0 : index
    %301 = vector.load %arg21[%c0_221, %c0_222] : memref<64x6xf32, #tpu.memory_space<vmem>>, vector<64x6xf32>
    %cst_223 = arith.constant dense<0.000000e+00> : vector<1x6xf32>
    %302 = tpu.matmul %300, %301, %cst_223 {dimension_numbers = #tpu.dot_dimension_numbers<[1], [0], [0], [1], [0, 0, 1, 1], [], []>} : vector<1x64xf32>, vector<64x6xf32>, vector<1x6xf32> -> vector<1x6xf32>
    %c0_224 = arith.constant 0 : index
    %c0_225 = arith.constant 0 : index
    %303 = vector.load %arg22[%c0_224, %c0_225] : memref<1x6xf32, #tpu.memory_space<vmem>>, vector<1x6xf32>
    tpu.vector_store %arg22[%c0_224, %c0_225], %302 {strides = array<i32>} : memref<1x6xf32, #tpu.memory_space<vmem>>, vector<1x6xf32>,
    return
  }
}

</mosaic_0001>

<bundles_post_ra>
// kernel: vit_regressor_forward.1
= control target key start
LH: loop header
LB: loop body
LE: loop exit
PB: predicated region body
PF: predicated region fallthrough
CT: control target
= control target key end

     0   :  { %vm102_vm0 = vcmask 1042432   ;;  %v8267_v0 = vmov 0.0|0.0   ;;  %v8268_v4 = vmov 0.0   ;;  %vm8269_vm1 = vmmov 0   ;;  %s8274_s23 = smov 112   ;;  %s8277_s24 = smov 96   ;;  %s10648_s0 = inlined_call_operand.vmem [shape: f32[27,576], index: 0, kind: input, shape index: {}]   ;;  %s10649_s2 = inlined_call_operand.vmem [shape: f32[5,1], index: 2, kind: input, shape index: {}]   ;;  %s10650_s1 = inlined_call_operand.vmem [shape: f32[5,27], index: 1, kind: input, shape index: {}]   ;;  %s10651_s7 = inlined_call_operand.vmem [shape: f32[2,24,1], index: 7, kind: input, shape index: {}]   ;;  %s10652_s11 = inlined_call_operand.vmem [shape: f32[2,8,1], index: 11, kind: input, shape index: {}]   ;;  %s10653_s14 = inlined_call_operand.vmem [shape: f32[2,32,1], index: 14, kind: input, shape index: {}]   ;;  %s10654_s4 = inlined_call_operand.vmem [shape: f32[8,1], index: 4, kind: input, shape index: {}]   ;;  %s10655_s16 = inlined_call_operand.vmem [shape: f32[2,8,1], index: 16, kind: input, shape index: {}]   ;;  %s10656_s18 = inlined_call_operand.vmem [shape: f32[2,8,1], index: 18, kind: input, shape index: {}]   ;;  %s10657_s10 = inlined_call_operand.vmem [shape: f32[2,8,1], index: 10, kind: input, shape index: {}]   ;;  %s10658_s12 = inlined_call_operand.vmem [shape: f32[2,8,1], index: 12, kind: input, shape index: {}]   ;;  %s10659_s17 = inlined_call_operand.vmem [shape: f32[2,8,1], index: 17, kind: input, shape index: {}]   ;;  %s10660_s3 = inlined_call_operand.vmem [shape: f32[9,8,5], index: 3, kind: input, shape index: {}]   ;;  %s10661_s5 = inlined_call_operand.vmem [shape: f32[8,512], index: 5, kind: input, shape index: {}]   ;;  %s10662_s6 = inlined_call_operand.vmem [shape: f32[2,24,8], index: 6, kind: input, shape index: {}]   ;;  %s10663_s8 = inlined_call_operand.vmem [shape: f32[8,8], index: 8, kind: input, shape index: {}]   ;;  %s10664_s9 = inlined_call_operand.vmem [shape: f32[2,8,8], index: 9, kind: input, shape index: {}]   ;;  %s10665_s13 = inlined_call_operand.vmem [shape: f32[2,32,8], index: 13, kind: input, shape index: {}]   ;;  %s10666_s15 = inlined_call_operand.vmem [shape: f32[2,8,32], index: 15, kind: input, shape index: {}]   ;;  %s10667_s19 = inlined_call_operand.vmem [shape: f32[8,512,64], index: 19, kind: input, shape index: {}]   ;;  %s10668_s20 = inlined_call_operand.vmem [shape: f32[1,64], index: 20, kind: input, shape index: {}]   ;;  %s10669_s21 = inlined_call_operand.vmem [shape: f32[64,6], index: 21, kind: input, shape index: {}]   ;;  %s10670_s22 = inlined_call_operand.vmem [shape: f32[1,6], index: 22, kind: output, shape index: {}]  }
   0x1   :  { %10675 = sst [smem:[#allocation4_spill]] %s10648_s0  ;;  %7593 = vmatprep.subr.bf16.mxu0 %v8267_v0  ;;  %182 = vmatprep.mubr.f32.mxu1 %v8268_v4  ;;  %v8270_v9 = vmov 0   ;;  %vm8271_vm2 = vmmov 1   ;;  %vm98_vm4 = vcmask 220160   ;;  %vm339_vm5 = vcmask 520192   ;;  %s8273_s0 = smov 126  }
   0x2   :  { %10676 = sst [smem:[#allocation5_spill]] %s10649_s2  ;;  %s10682_s29 = sld [smem:[#allocation4_spill]]  ;;  %7551 = vmatprep.mubr.msk.f32.mxu0 %vm8269_vm1, %v8268_v4  ;;  %8201 = vset.pattern.permute.xlu0 %v8270_v9  ;;  %vm8424_vm3 = vmpackc.low %vm102_vm0, %vm8271_vm2  ;;  %v3090_v14 = vld [vmem:[%s10659_s17] sm:$0xff]  ;;  %vm364_vm6 = vcmask 1039360   ;;  %vm373_vm7 = vcmask 1044480   ;;  %vm369_vm8 = vcmask 39936  }
   0x3   :  { %10677 = sst [smem:[#allocation6_spill]] %s10650_s1  ;;  %8202 = vset.pattern.permute.xlu1 %v8270_v9  ;;  %s10685_s25 = sld [smem:[#allocation5_spill]]  ;;  %v6493_v9 = vld [vmem:[%s10657_s10 + $0x8] sm:$0xff]  ;;  %vm689_vm9 = vcmask 1031168   ;;  %vm863_vm10 = vcmask 916480   ;;  %vm1037_vm11 = vcmask 908288  }
   0x4   :  { %10678 = sst [smem:[#allocation7_spill]] %s10651_s7  ;;  %s10686_s27 = sld [smem:[#allocation6_spill]]  ;;  %vm1211_vm12 = vcmask 900096   ;;  %vm1385_vm13 = vcmask 785408   ;;  %vm1559_vm14 = vcmask 777216   ;;  %vm1733_vm15 = vcmask 769024  }
   0x5   :  { %10679 = sst [smem:[#allocation8_spill]] %s10652_s11  ;;  %s8275_s2 = smov 111   ;;  %vm1939_vm0 = vcmask 64512   ;;  %vm2940_vm2 = vcmask 261120  }
   0x6   :  { %10680 = sst [smem:[#allocation9_spill]] %s10653_s14  ;;  %s8276_s14 = smov 110  }
   0x7   :  { %10681 = sst [smem:[#allocation10_spill]] %s10654_s4  ;;  %s8278_s4 = smov 95  }
   0x8   :  { %v73_v1 = vld [vmem:[%s10682_s29 + $0x8] sm:$0xff]  ;;  %v78_v2 = vld [vmem:[%s10682_s29 + $0x30] sm:$0xff]  ;;  %v76_v3 = vld [vmem:[%s10682_s29 + $0x20] sm:$0xff] }
   0x9   :  { %v7573_v5 = vpack.c.bf16 %v78_v2, %v73_v1  ;;  %v81_v6 = vld [vmem:[%s10682_s29 + $0x48] sm:$0xff]  ;;  %v72_v7 = vld [vmem:[%s10682_s29] sm:$0xff]  ;;  %v83_v12 = vld [vmem:[%s10682_s29 + $0x58] sm:$0xff] }
   0xa   :  { %v77_v8 = vld [vmem:[%s10682_s29 + $0x28] sm:$0xff]  ;;  %v7594_v10 = vpack.c.bf16 %v81_v6, %v76_v3  ;;  %v88_v13 = vld [vmem:[%s10682_s29 + $0x80] sm:$0x7]  ;;  %v86_v16 = vld [vmem:[%s10682_s29 + $0x70] sm:$0xff] }
   0xb   :  { %v7575_v11 = vpack.c.bf16 %v77_v8, %v72_v7  ;;  %7574 = vmatprep.subr.bf16.mxu1 %v7573_v5  ;;  %v7577_v15 = vpack.c.bf16 %v88_v13, %v83_v12  ;;  %v91_v17 = vld [vmem:[%s10682_s29 + $0x98] sm:$0x7]  ;;  %v82_v18 = vld [vmem:[%s10682_s29 + $0x50] sm:$0xff]  ;;  %v80_v23 = vld [vmem:[%s10682_s29 + $0x40] sm:$0xff] }
   0xc   :  { %7595 = vmatpush3.bf16.msra.mxu0 %v7594_v10  ;;  %v7597_v19 = vpack.c.bf16 %v91_v17, %v86_v16  ;;  %v87_v20 = vld [vmem:[%s10682_s29 + $0x78] sm:$0x7]  ;;  %v74_v24 = vld [vmem:[%s10682_s29 + $0x10] sm:$0xff]  ;;  %v85_v27 = vld [vmem:[%s10682_s29 + $0x68] sm:$0xff] }
   0xd   :  { %7576 = vmatpush1.bf16.msra.mxu1 %v7575_v11  ;;  %v75_v21 = vld [vmem:[%s10682_s29 + $0x18] sm:$0xff]  ;;  %7596 = vmatprep.subr.bf16.mxu0 %v8267_v0  ;;  %v7580_v22 = vpack.c.bf16 %v87_v20, %v82_v18  ;;  %v90_v28 = vld [vmem:[%s10682_s29 + $0x90] sm:$0x7]  ;;  %v92_v29 = vld [vmem:[%s10685_s25] sm:$0x1f]  ;;  %s8279_s25 = smov 94  }
   0xe   :  { %7579 = vmatprep.subr.msk.bf16.mxu1 %vm8424_vm3, %v7577_v15  ;;  %v79_v25 = vld [vmem:[%s10682_s29 + $0x38] sm:$0xff]  ;;  %v7583_v26 = vpack.c.bf16 %v80_v23, %v75_v21  ;;  %v71_v30 = vld [vmem:[%s10686_s27] sm:$0x1f]  ;;  %v7587_v32 = vpack.c.bf16 %v90_v28, %v85_v27  ;;  %v89_v34 = vld [vmem:[%s10682_s29 + $0x88] sm:$0x7]  ;;  %95 = vperm.xlu0 %8201, %v92_v29   ;;  %s10687_s27 = sld [smem:[#allocation7_spill]] }
   0xf   :  { %v7585_v31 = vpack.c.bf16 %v79_v25, %v74_v24  ;;  %v84_v33 = vld [vmem:[%s10682_s29 + $0x60] sm:$0xff]  ;;  %s8272_s29 = smov 127   ;;  %v6497_v12 = vld [vmem:[%s10658_s12 + $0x8] sm:$0xff] }
  0x10   :  { %7599 = vmatpush3.bf16.msk.msra.mxu0 %vm8424_vm3, %v7597_v19  ;;  %v7590_v35 = vpack.c.bf16 %v89_v34, %v84_v33  ;;  %v2934_v2 = vld [vmem:[%s10655_s16] sm:$0xff]  ;;  %v6392_v23 = vld [vmem:[%s10660_s3 + $0x8] sm:$0xff] }
  0x11   :  { %7582 = vmatpush1.bf16.msk.msra.mxu1 %vm8424_vm3, %v7580_v22  ;;  %v2447_v3 = vld [vmem:[%s10657_s10] sm:$0xff]  ;;  %v6518_v29 = vld [vmem:[%s10659_s17 + $0x8] sm:$0xff] }
  0x12   :  { %7584 = vmatprep.subr.bf16.mxu1 %v7583_v26  ;;  %v3091_v5 = vld [vmem:[%s10656_s18] sm:$0xff] }
  0x13   :  { %7552 = vmatmul.mubr.msk.f32.vlgmr.msra.gmra.mrb[0].mxu0 %vm98_vm4, %v71_v30  ;;  %v2603_v6 = vld [vmem:[%s10658_s12] sm:$0xff] }
  0x14   :  { %6386 = vmatmul.mubr.msk.f32.vlgmr.msra.gmra.mrb[0].mxu1 %vm98_vm4, %v71_v30  ;;  %2013 = vmatprep.mubr.f32.mxu0 %v8268_v4  ;;  %v1921_v58 = vld [vmem:[%s10687_s27] sm:$0xff]  ;;  %v1923_v59 = vld [vmem:[%s10687_s27 + $0x10] sm:$0xff]  ;;  %v1922_v1 = vld [vmem:[%s10687_s27 + $0x8] sm:$0xff] }
  0x15   :  { %7586 = vmatpush1.bf16.msra.mxu1 %v7585_v31  ;;  %253 = vmatprep.mubr.f32.mxu1 %v8268_v4  ;;  %v6480_v7 = vld [vmem:[%s10687_s27 + $0x20] sm:$0xff]  ;;  %v6479_v18 = vld [vmem:[%s10687_s27 + $0x18] sm:$0xff]  ;;  %v6481_v26 = vld [vmem:[%s10687_s27 + $0x28] sm:$0xff] }
  0x16   :  { %7589 = vmatprep.subr.msk.bf16.mxu1 %vm8424_vm3, %v7587_v32  ;;  %v341_v34 = vld [vmem:[%s10660_s3] sm:$0xff] }
  0x19   :  { %7592 = vmatpush1.bf16.msk.msra.mxu1 %vm8424_vm3, %v7590_v35  ;;  %vm6378_vm3 = vcmask 40960  }
  0x1c   :  { %6389 = vmatmul.mubr.msk.f32.vlgmr.msra.gmra.mrb[2].mxu1 %vm98_vm4, %v71_v30 }
  0x1d   :  { %446 = vmatprep.mubr.f32.mxu1 %v8268_v4 }
  0x8d   :  { %v96_v36 = vpop.permute.xlu0 %95 }
  0xe6   :  { %v326_v37 = vpop.f32.mrb[0].mxu0 }
  0xe7   :  { %v184_v38 = vpop.f32.mrb[0].mxu1  ;;  %v327_v39 = vadd.f32 %v326_v37, %v96_v36  ;;  %v7553_v41 = vpop.f32.mrb[1].mxu0 }
  0xe8   :  { %v185_v40 = vadd.f32 %v184_v38, %v96_v36  ;;  %v186_v42 = vpop.f32.mrb[1].mxu1 }
  0xe9   :  { %v187_v43 = vadd.f32 %v186_v42, %v96_v36  ;;  %v334_v44 = vmax.f32 %v327_v39, 0.0 }
  0xea   :  { %v330_v45 = vmax.f32 %v185_v40, 0.0 }
  0xeb   :  { %v331_v46 = vmax.f32 %v187_v43, 0.0  ;;  %340 = vst.msk [vmem:[#allocation2 + $0x20] sm:$0x1f] %vm339_vm5, %v334_v44  ;;  %v6405_v43 = vld [vmem:[%s10660_s3 + $0x10] sm:$0xff]  ;;  %v6515_v44 = vld [vmem:[%s10655_s16 + $0x8] sm:$0xff] }
  0xec   :  { %335 = vst [vmem:[#allocation2] sm:$0x1f] %v330_v45 }
  0xed   :  { %336 = vst [vmem:[#allocation2 + $0x8] sm:$0x1f] %v331_v46 }
  0xef   :  { %v255_v47 = vpop.f32.mrb[2].mxu1 }
  0xf0   :  { %v256_v48 = vadd.f32 %v255_v47, %v96_v36  ;;  %v257_v49 = vpop.f32.mrb[3].mxu1 }
  0xf1   :  { %v258_v50 = vadd.f32 %v257_v49, %v96_v36 }
  0xf2   :  { %v332_v51 = vmax.f32 %v256_v48, 0.0  ;;  %v348_v53 = vld [vmem:[#allocation2 + $0x20] sm:$0x1f] }
  0xf3   :  { %v333_v52 = vmax.f32 %v258_v50, 0.0  ;;  %362 = vrot.lane.b32.xlu1 %v348_v53, %s8272_s29  ;;  %v8487_v55 = vld [vmem:[#allocation2] sm:$0x1f]  ;;  %v6519_v50 = vld [vmem:[%s10656_s18 + $0x8] sm:$0xff] }
  0xf4   :  { %337 = vst [vmem:[#allocation2 + $0x10] sm:$0x1f] %v332_v51  ;;  %v8484_v54 = vld [vmem:[#allocation2 + $0x8] sm:$0x1f] }
  0xf5   :  { %338 = vst [vmem:[#allocation2 + $0x18] sm:$0x1f] %v333_v52  ;;  %356 = vrot.lane.b32.xlu0 %v8484_v54, %s8272_s29 }
  0xf7   :  { %354 = vrot.lane.b32.xlu1 %v8487_v55, %s8272_s29 }
  0xf9   :  { %681 = vrot.lane.b32.xlu0 %v8484_v54, %s8273_s0 }
  0xfb   :  { %v8491_v56 = vld [vmem:[#allocation2 + $0x10] sm:$0x1f] }
  0xfc   :  { %358 = vrot.lane.b32.xlu1 %v8491_v56, %s8272_s29  ;;  %v8494_v57 = vld [vmem:[#allocation2 + $0x18] sm:$0x1f] }
  0xfd   :  { %360 = vrot.lane.b32.xlu0 %v8494_v57, %s8272_s29  ;;  %s10688_s29 = sld [smem:[#allocation8_spill]] }
 0x100   :  { %683 = vrot.lane.b32.xlu1 %v8491_v56, %s8273_s0 }
 0x101   :  { %679 = vrot.lane.b32.xlu0 %v8487_v55, %s8273_s0 }
 0x103   :  { %v2602_v60 = vld [vmem:[%s10688_s29] sm:$0xff]  ;;  %v6496_v31 = vld [vmem:[%s10688_s29 + $0x8] sm:$0xff] }
 0x104   :  { %855 = vrot.lane.b32.xlu1 %v8484_v54, %s8274_s23 }
 0x105   :  { %687 = vrot.lane.b32.xlu0 %v348_v53, %s8273_s0 }
 0x108   :  { %853 = vrot.lane.b32.xlu1 %v8487_v55, %s8274_s23 }
 0x109   :  { %857 = vrot.lane.b32.xlu0 %v8491_v56, %s8274_s23 }
 0x10c   :  { %861 = vrot.lane.b32.xlu1 %v348_v53, %s8274_s23 }
 0x10d   :  { %1029 = vrot.lane.b32.xlu0 %v8484_v54, %s8275_s2 }
 0x110   :  { %685 = vrot.lane.b32.xlu1 %v8494_v57, %s8273_s0 }
 0x111   :  { %1027 = vrot.lane.b32.xlu0 %v8487_v55, %s8275_s2 }
 0x114   :  { %1031 = vrot.lane.b32.xlu1 %v8491_v56, %s8275_s2 }
 0x115   :  { %859 = vrot.lane.b32.xlu0 %v8494_v57, %s8274_s23 }
 0x118   :  { %1203 = vrot.lane.b32.xlu1 %v8484_v54, %s8276_s14 }
 0x119   :  { %1035 = vrot.lane.b32.xlu0 %v348_v53, %s8275_s2 }
 0x11c   :  { %1201 = vrot.lane.b32.xlu1 %v8487_v55, %s8276_s14 }
 0x11d   :  { %1205 = vrot.lane.b32.xlu0 %v8491_v56, %s8276_s14 }
 0x120   :  { %1033 = vrot.lane.b32.xlu1 %v8494_v57, %s8275_s2  ;;  %s10689_s2 = sld [smem:[#allocation9_spill]] }
 0x121   :  { %1377 = vrot.lane.b32.xlu0 %v8484_v54, %s8277_s24 }
 0x124   :  { %1209 = vrot.lane.b32.xlu1 %v348_v53, %s8276_s14 }
 0x125   :  { %1207 = vrot.lane.b32.xlu0 %v8494_v57, %s8276_s14 }
 0x126   :  { %v2703_v61 = vld [vmem:[%s10689_s2] sm:$0xff]  ;;  %v2705_v63 = vld [vmem:[%s10689_s2 + $0x10] sm:$0xff]  ;;  %v2704_v8 = vld [vmem:[%s10689_s2 + $0x8] sm:$0xff] }
 0x127   :  { %v2706_v10 = vld [vmem:[%s10689_s2 + $0x18] sm:$0xff]  ;;  %v6503_v16 = vld [vmem:[%s10689_s2 + $0x28] sm:$0xff]  ;;  %v6502_v35 = vld [vmem:[%s10689_s2 + $0x20] sm:$0xff] }
 0x128   :  { %1379 = vrot.lane.b32.xlu1 %v8491_v56, %s8277_s24  ;;  %v6505_v20 = vld [vmem:[%s10689_s2 + $0x38] sm:$0xff]  ;;  %v6504_v39 = vld [vmem:[%s10689_s2 + $0x30] sm:$0xff] }
 0x129   :  { %1375 = vrot.lane.b32.xlu0 %v8487_v55, %s8277_s24 }
 0x12c   :  { %1551 = vrot.lane.b32.xlu1 %v8484_v54, %s8278_s4 }
 0x12d   :  { %1383 = vrot.lane.b32.xlu0 %v348_v53, %s8277_s24 }
 0x130   :  { %1381 = vrot.lane.b32.xlu1 %v8494_v57, %s8277_s24 }
 0x131   :  { %1553 = vrot.lane.b32.xlu0 %v8491_v56, %s8278_s4 }
 0x134   :  { %1549 = vrot.lane.b32.xlu1 %v8487_v55, %s8278_s4 }
 0x135   :  { %1555 = vrot.lane.b32.xlu0 %v8494_v57, %s8278_s4 }
 0x138   :  { %1557 = vrot.lane.b32.xlu1 %v348_v53, %s8278_s4  ;;  %s10690_s4 = sld [smem:[#allocation10_spill]] }
 0x139   :  { %1725 = vrot.lane.b32.xlu0 %v8484_v54, %s8279_s25 }
 0x13c   :  { %1727 = vrot.lane.b32.xlu1 %v8491_v56, %s8279_s25 }
 0x13d   :  { %1723 = vrot.lane.b32.xlu0 %v8487_v55, %s8279_s25 }
 0x13e   :  { %v1895_v62 = vld [vmem:[%s10690_s4] sm:$0xff] }
 0x140   :  { %1729 = vrot.lane.b32.xlu1 %v8494_v57, %s8279_s25 }
 0x141   :  { %1731 = vrot.lane.b32.xlu0 %v348_v53, %s8279_s25 }
 0x144   :  { %1898 = vperm.xlu1 %8202, %v1895_v62  }
 0x145   :  { %1926 = vperm.xlu0 %8201, %v1921_v58  }
 0x148   :  { %1931 = vperm.xlu1 %8202, %v1922_v1  }
 0x149   :  { %1936 = vperm.xlu0 %8201, %v1923_v59  }
 0x14c   :  { %2450 = vperm.xlu1 %8202, %v2447_v3  }
 0x14d   :  { %2683 = vperm.xlu0 %8201, %v2602_v60  }
 0x150   :  { %2692 = vperm.xlu1 %8202, %v2603_v6  }
 0x151   :  { %2709 = vperm.xlu0 %8201, %v2703_v61  }
 0x154   :  { %2714 = vperm.xlu1 %8202, %v2704_v8  }
 0x155   :  { %2719 = vperm.xlu0 %8201, %v2705_v63   ;;  %v6419_v63 = vld [vmem:[%s10660_s3 + $0x20] sm:$0xff] }
 0x158   :  { %2724 = vperm.xlu1 %8202, %v2706_v10   ;;  %v6426_v10 = vld [vmem:[%s10660_s3 + $0x28] sm:$0xff] }
 0x159   :  { %2937 = vperm.xlu0 %8201, %v2934_v2  }
 0x15c   :  { %3170 = vperm.xlu1 %8202, %v3090_v14  }
 0x15d   :  { %3179 = vperm.xlu0 %8201, %v3091_v5  }
 0x160   :  { %3196 = vperm.xlu1 %8202, %v6479_v18  }
 0x161   :  { %3201 = vperm.xlu0 %8201, %v6480_v7  }
 0x164   :  { %3206 = vperm.xlu1 %8202, %v6481_v26  }
 0x165   :  { %3718 = vperm.xlu0 %8201, %v6493_v9   ;;  %v363_v11 = vpop.permute.xlu1 %362 }
 0x167   :  { %v357_v13 = vpop.permute.xlu0 %356 }
 0x168   :  { %3952 = vperm.xlu1 %8202, %v6496_v31  }
 0x169   :  { %3961 = vperm.xlu0 %8201, %v6497_v12   ;;  %v355_v15 = vpop.permute.xlu1 %354 }
 0x16a   :  { %v365_v24 = vsel %vm364_vm6, %v355_v15, %v357_v13 }
 0x16b   :  { %v682_v17 = vpop.permute.xlu0 %681 }
 0x16c   :  { %3980 = vperm.xlu1 %8202, %v6502_v35  }
 0x16d   :  { %3985 = vperm.xlu0 %8201, %v6503_v16  }
 0x16e   :  { %v359_v19 = vpop.permute.xlu1 %358 }
 0x16f   :  { %v366_v21 = vsel %vm364_vm6, %v357_v13, %v359_v19  ;;  %v361_v22 = vpop.permute.xlu0 %360 }
 0x170   :  { %v368_v25 = vsel %vm364_vm6, %v361_v22, %v363_v11  ;;  %6393 = vmatprep.subr.msk.mxu1 %vm373_vm7, %v366_v21  ;;  %v367_v27 = vsel %vm364_vm6, %v359_v19, %v361_v22  ;;  %3990 = vperm.xlu1 %8202, %v6504_v39   ;;  %v6433_v19 = vld [vmem:[%s10660_s3 + $0x30] sm:$0xff] }
 0x171   :  { %3995 = vperm.xlu0 %8201, %v6505_v20   ;;  %6394 = vmatpush1.msk.msra.mxu1 %vm373_vm7, %v365_v24 }
 0x172   :  { %6395 = vmatmul.mubr.msk.f32.vlgmr.msra.gmra.mrb[4].mxu1 %vm369_vm8, %v6392_v23  ;;  %6396 = vmatprep.subr.msk.mxu1 %vm373_vm7, %v368_v25  ;;  %v684_v28 = vpop.permute.xlu1 %683 }
 0x173   :  { %v680_v30 = vpop.permute.xlu0 %679  ;;  %6397 = vmatpush1.msk.msra.mxu1 %vm373_vm7, %v367_v27  ;;  %517 = vmatprep.mubr.f32.mxu1 %v8268_v4  ;;  %v691_v37 = vsel %vm689_vm9, %v682_v17, %v684_v28 }
 0x174   :  { %6399 = vmatprep.subr.msk.mxu1 %vm373_vm7, %v8484_v54  ;;  %v690_v40 = vsel %vm689_vm9, %v680_v30, %v682_v17  ;;  %4210 = vperm.xlu1 %8202, %v6515_v44   ;;  %v6412_v54 = vld [vmem:[%s10660_s3 + $0x18] sm:$0xff] }
 0x175   :  { %4444 = vperm.xlu0 %8201, %v6518_v29  }
 0x176   :  { %6398 = vmatmul.mubr.msk.f32.vlgmr.msra.gmra.mrb[6].mxu1 %vm369_vm8, %v6392_v23  ;;  %v856_v32 = vpop.permute.xlu1 %855 }
 0x177   :  { %6400 = vmatpush1.msk.msra.mxu1 %vm373_vm7, %v8487_v55  ;;  %v688_v33 = vpop.permute.xlu0 %687  ;;  %599 = vmatprep.mubr.f32.mxu1 %v8268_v4 }
 0x178   :  { %6402 = vmatprep.subr.msk.mxu1 %vm373_vm7, %v8494_v57  ;;  %4453 = vperm.xlu1 %8202, %v6519_v50  }
 0x17a   :  { %6401 = vmatmul.mubr.msk.f32.vlgmr.msra.gmra.mrb[4].mxu1 %vm369_vm8, %v341_v34  ;;  %v854_v36 = vpop.permute.xlu1 %853 }
 0x17b   :  { %6403 = vmatpush1.msk.msra.mxu1 %vm373_vm7, %v8491_v56  ;;  %v858_v38 = vpop.permute.xlu0 %857  ;;  %670 = vmatprep.mubr.f32.mxu1 %v8268_v4  ;;  %v864_v51 = vsel %vm863_vm10, %v854_v36, %v856_v32  ;;  %v6447_v36 = vld [vmem:[%s10660_s3 + $0x40] sm:$0xff] }
 0x17c   :  { %6406 = vmatprep.subr.msk.mxu1 %vm373_vm7, %v691_v37  ;;  %v865_v49 = vsel %vm863_vm10, %v856_v32, %v858_v38 }
 0x17e   :  { %6404 = vmatmul.mubr.msk.f32.vlgmr.msra.gmra.mrb[6].mxu1 %vm369_vm8, %v341_v34  ;;  %v862_v41 = vpop.permute.xlu1 %861 }
 0x17f   :  { %6407 = vmatpush1.msk.msra.mxu1 %vm373_vm7, %v690_v40  ;;  %v1030_v42 = vpop.permute.xlu0 %1029  ;;  %769 = vmatprep.mubr.f32.mxu1 %v8268_v4 }
 0x182   :  { %6408 = vmatmul.mubr.msk.f32.vlgmr.msra.gmra.mrb[4].mxu1 %vm369_vm8, %v6405_v43  ;;  %v686_v45 = vpop.permute.xlu1 %685 }
 0x183   :  { %v692_v46 = vsel %vm689_vm9, %v684_v28, %v686_v45  ;;  %v693_v47 = vsel %vm689_vm9, %v686_v45, %v688_v33  ;;  %v1028_v48 = vpop.permute.xlu0 %1027  ;;  %840 = vmatprep.mubr.f32.mxu1 %v8268_v4  ;;  %v6440_v28 = vld [vmem:[%s10660_s3 + $0x38] sm:$0xff] }
 0x184   :  { %6409 = vmatprep.subr.msk.mxu1 %vm373_vm7, %v693_v47  ;;  %v1038_v60 = vsel %vm1037_vm11, %v1028_v48, %v1030_v42  ;;  %v1910_v48 = vld [vmem:[%s10661_s5 + $0x8] sm:$0xff] }
 0x185   :  { %6410 = vmatpush1.msk.msra.mxu1 %vm373_vm7, %v692_v46 }
 0x186   :  { %6411 = vmatmul.mubr.msk.f32.vlgmr.msra.gmra.mrb[6].mxu1 %vm369_vm8, %v6405_v43  ;;  %6413 = vmatprep.subr.msk.mxu1 %vm373_vm7, %v865_v49  ;;  %v1032_v52 = vpop.permute.xlu1 %1031  ;;  %v1909_v49 = vld [vmem:[%s10661_s5] sm:$0xff] }
 0x187   :  { %v860_v53 = vpop.permute.xlu0 %859  ;;  %6414 = vmatpush1.msk.msra.mxu1 %vm373_vm7, %v864_v51  ;;  %943 = vmatprep.mubr.f32.mxu1 %v8268_v4  ;;  %v1039_v58 = vsel %vm1037_vm11, %v1030_v42, %v1032_v52 }
 0x188   :  { %v866_v55 = vsel %vm863_vm10, %v858_v38, %v860_v53  ;;  %v867_v56 = vsel %vm863_vm10, %v860_v53, %v862_v41 }
 0x189   :  { %6416 = vmatprep.subr.msk.mxu1 %vm373_vm7, %v867_v56 }
 0x18a   :  { %6415 = vmatmul.mubr.msk.f32.vlgmr.msra.gmra.mrb[4].mxu1 %vm369_vm8, %v6412_v54  ;;  %v1204_v57 = vpop.permute.xlu1 %1203 }
 0x18b   :  { %6417 = vmatpush1.msk.msra.mxu1 %vm373_vm7, %v866_v55  ;;  %v1036_v59 = vpop.permute.xlu0 %1035  ;;  %1014 = vmatprep.mubr.f32.mxu1 %v8268_v4 }
 0x18c   :  { %6420 = vmatprep.subr.msk.mxu1 %vm373_vm7, %v1039_v58  ;;  %v1912_v58 = vld [vmem:[%s10661_s5 + $0x18] sm:$0xff] }
 0x18e   :  { %6418 = vmatmul.mubr.msk.f32.vlgmr.msra.gmra.mrb[6].mxu1 %vm369_vm8, %v6412_v54  ;;  %v1202_v61 = vpop.permute.xlu1 %1201 }
 0x18f   :  { %6421 = vmatpush1.msk.msra.mxu1 %vm373_vm7, %v1038_v60  ;;  %v1206_v62 = vpop.permute.xlu0 %1205  ;;  %1117 = vmatprep.mubr.f32.mxu1 %v8268_v4  ;;  %v1212_v7 = vsel %vm1211_vm12, %v1202_v61, %v1204_v57  ;;  %v1911_v61 = vld [vmem:[%s10661_s5 + $0x10] sm:$0xff] }
 0x190   :  { %v1213_v6 = vsel %vm1211_vm12, %v1204_v57, %v1206_v62  ;;  %v1918_v57 = vld [vmem:[%s10662_s6] sm:$0xff] }
 0x192   :  { %6422 = vmatmul.mubr.msk.f32.vlgmr.msra.gmra.mrb[4].mxu1 %vm369_vm8, %v6419_v63  ;;  %v1034_v1 = vpop.permute.xlu1 %1033 }
 0x193   :  { %v1040_v2 = vsel %vm1037_vm11, %v1032_v52, %v1034_v1  ;;  %v1041_v3 = vsel %vm1037_vm11, %v1034_v1, %v1036_v59  ;;  %v1378_v5 = vpop.permute.xlu0 %1377  ;;  %1188 = vmatprep.mubr.f32.mxu1 %v8268_v4 }
 0x194   :  { %6423 = vmatprep.subr.msk.mxu1 %vm373_vm7, %v1041_v3 }
 0x195   :  { %6424 = vmatpush1.msk.msra.mxu1 %vm373_vm7, %v1040_v2  ;;  %v1920_v2 = vld [vmem:[%s10662_s6 + $0x10] sm:$0xff] }
 0x196   :  { %6425 = vmatmul.mubr.msk.f32.vlgmr.msra.gmra.mrb[6].mxu1 %vm369_vm8, %v6419_v63  ;;  %6427 = vmatprep.subr.msk.mxu1 %vm373_vm7, %v1213_v6  ;;  %v1210_v8 = vpop.permute.xlu1 %1209  ;;  %v1919_v63 = vld [vmem:[%s10662_s6 + $0x8] sm:$0xff] }
 0x197   :  { %v1208_v9 = vpop.permute.xlu0 %1207  ;;  %6428 = vmatpush1.msk.msra.mxu1 %vm373_vm7, %v1212_v7  ;;  %1291 = vmatprep.mubr.f32.mxu1 %v8268_v4 }
 0x198   :  { %v1214_v11 = vsel %vm1211_vm12, %v1206_v62, %v1208_v9  ;;  %v1215_v12 = vsel %vm1211_vm12, %v1208_v9, %v1210_v8 }
 0x199   :  { %6430 = vmatprep.subr.msk.mxu1 %vm373_vm7, %v1215_v12 }
 0x19a   :  { %6429 = vmatmul.mubr.msk.f32.vlgmr.msra.gmra.mrb[4].mxu1 %vm369_vm8, %v6426_v10  ;;  %v1380_v13 = vpop.permute.xlu1 %1379 }
 0x19b   :  { %6431 = vmatpush1.msk.msra.mxu1 %vm373_vm7, %v1214_v11  ;;  %v1387_v14 = vsel %vm1385_vm13, %v1378_v5, %v1380_v13  ;;  %v1376_v15 = vpop.permute.xlu0 %1375  ;;  %1362 = vmatprep.mubr.f32.mxu1 %v8268_v4 }
 0x19c   :  { %v1386_v16 = vsel %vm1385_vm13, %v1376_v15, %v1378_v5  ;;  %6434 = vmatprep.subr.msk.mxu1 %vm373_vm7, %v1387_v14 }
 0x19e   :  { %6432 = vmatmul.mubr.msk.f32.vlgmr.msra.gmra.mrb[6].mxu1 %vm369_vm8, %v6426_v10  ;;  %v1552_v17 = vpop.permute.xlu1 %1551 }
 0x19f   :  { %6435 = vmatpush1.msk.msra.mxu1 %vm373_vm7, %v1386_v16  ;;  %v1384_v18 = vpop.permute.xlu0 %1383  ;;  %1465 = vmatprep.mubr.f32.mxu1 %v8268_v4 }
 0x1a2   :  { %6436 = vmatmul.mubr.msk.f32.vlgmr.msra.gmra.mrb[4].mxu1 %vm369_vm8, %v6433_v19  ;;  %v1382_v20 = vpop.permute.xlu1 %1381 }
 0x1a3   :  { %v1388_v21 = vsel %vm1385_vm13, %v1380_v13, %v1382_v20  ;;  %v1389_v22 = vsel %vm1385_vm13, %v1382_v20, %v1384_v18  ;;  %v1554_v23 = vpop.permute.xlu0 %1553  ;;  %1536 = vmatprep.mubr.f32.mxu1 %v8268_v4  ;;  %v8788_v18 = vld [vmem:[%s10663_s8] sm:$0xff] }
 0x1a4   :  { %v1561_v24 = vsel %vm1559_vm14, %v1552_v17, %v1554_v23  ;;  %6437 = vmatprep.subr.msk.mxu1 %vm373_vm7, %v1389_v22 }
 0x1a5   :  { %6438 = vmatpush1.msk.msra.mxu1 %vm373_vm7, %v1388_v21 }
 0x1a6   :  { %6439 = vmatmul.mubr.msk.f32.vlgmr.msra.gmra.mrb[6].mxu1 %vm369_vm8, %v6433_v19  ;;  %6441 = vmatprep.subr.msk.mxu1 %vm373_vm7, %v1561_v24  ;;  %v1550_v25 = vpop.permute.xlu1 %1549 }
 0x1a7   :  { %v1560_v26 = vsel %vm1559_vm14, %v1550_v25, %v1552_v17  ;;  %v1556_v27 = vpop.permute.xlu0 %1555  ;;  %1639 = vmatprep.mubr.f32.mxu1 %v8268_v4 }
 0x1a8   :  { %6442 = vmatpush1.msk.msra.mxu1 %vm373_vm7, %v1560_v26  ;;  %v1562_v32 = vsel %vm1559_vm14, %v1554_v23, %v1556_v27 }
 0x1aa   :  { %6443 = vmatmul.mubr.msk.f32.vlgmr.msra.gmra.mrb[4].mxu1 %vm369_vm8, %v6440_v28  ;;  %v1558_v29 = vpop.permute.xlu1 %1557 }
 0x1ab   :  { %v1563_v30 = vsel %vm1559_vm14, %v1556_v27, %v1558_v29  ;;  %v1726_v31 = vpop.permute.xlu0 %1725  ;;  %1710 = vmatprep.mubr.f32.mxu1 %v8268_v4 }
 0x1ac   :  { %6444 = vmatprep.subr.msk.mxu1 %vm373_vm7, %v1563_v30 }
 0x1ad   :  { %6445 = vmatpush1.msk.msra.mxu1 %vm373_vm7, %v1562_v32 }
 0x1ae   :  { %6446 = vmatmul.mubr.msk.f32.vlgmr.msra.gmra.mrb[6].mxu1 %vm369_vm8, %v6440_v28  ;;  %v1728_v33 = vpop.permute.xlu1 %1727 }
 0x1af   :  { %v1735_v34 = vsel %vm1733_vm15, %v1726_v31, %v1728_v33  ;;  %v1724_v35 = vpop.permute.xlu0 %1723  ;;  %1813 = vmatprep.mubr.f32.mxu1 %v8268_v4 }
 0x1b0   :  { %v1734_v37 = vsel %vm1733_vm15, %v1724_v35, %v1726_v31  ;;  %6448 = vmatprep.subr.msk.mxu1 %vm373_vm7, %v1735_v34 }
 0x1b1   :  { %6449 = vmatpush1.msk.msra.mxu1 %vm373_vm7, %v1734_v37 }
 0x1b2   :  { %6450 = vmatmul.mubr.msk.f32.vlgmr.msra.gmra.mrb[4].mxu1 %vm369_vm8, %v6447_v36  ;;  %v1730_v38 = vpop.permute.xlu1 %1729 }
 0x1b3   :  { %v1732_v39 = vpop.permute.xlu0 %1731  ;;  %1884 = vmatprep.mubr.f32.mxu1 %v8268_v4  ;;  %v1736_v41 = vsel %vm1733_vm15, %v1728_v33, %v1730_v38 }
 0x1b4   :  { %v1737_v40 = vsel %vm1733_vm15, %v1730_v38, %v1732_v39 }
 0x1b5   :  { %6451 = vmatprep.subr.msk.mxu1 %vm373_vm7, %v1737_v40 }
 0x1b6   :  { %6452 = vmatpush1.msk.msra.mxu1 %vm373_vm7, %v1736_v41 }
 0x1b7   :  { %6453 = vmatmul.mubr.msk.f32.vlgmr.msra.gmra.mrb[6].mxu1 %vm369_vm8, %v6447_v36 }
 0x1b8   :  { %3008 = vmatprep.mubr.f32.mxu1 %v8268_v4 }
 0x1c3   :  { %v1899_v42 = vpop.permute.xlu1 %1898 }
 0x1c4   :  { %v1927_v6 = vpop.permute.xlu0 %1926 }
 0x1c7   :  { %v1932_v7 = vpop.permute.xlu1 %1931 }
 0x1c8   :  { %v1937_v31 = vpop.permute.xlu0 %1936 }
 0x285   :  { %v1815_v43 = vpop.f32.mrb[4].mxu1 }
 0x286   :  { %v1901_v44 = vadd.f32 %v1899_v42, %v1815_v43  ;;  %v1817_v45 = vpop.f32.mrb[5].mxu1 }
 0x287   :  { %v1902_v46 = vadd.f32 %v1899_v42, %v1817_v45 }
 0x288   :  { %v1905_v47 = vmax.f32 %v1901_v44, 0.0 }
 0x289   :  { %v1906_v50 = vmax.f32 %v1902_v46, 0.0 }
 0x28a   :  { %v1886_v51 = vpop.f32.mrb[6].mxu1  ;;  %v8748_v55 = vadd.f32 %v1909_v49, %v1905_v47 }
 0x28b   :  { %v8746_v52 = vadd.f32 %v1910_v48, %v1906_v50  ;;  %v1903_v53 = vadd.f32 %v1899_v42, %v1886_v51  ;;  %v1888_v54 = vpop.f32.mrb[7].mxu1 }
 0x28c   :  { %v1904_v56 = vadd.f32 %v1899_v42, %v1888_v54 }
 0x28d   :  { %1949 = vmatprep.subr.mxu0 %v8746_v52  ;;  %v1907_v59 = vmax.f32 %v1903_v53, 0.0 }
 0x28e   :  { %v1908_v60 = vmax.f32 %v1904_v56, 0.0  ;;  %1950 = vmatpush1.msra.mxu0 %v8748_v55 }
 0x28f   :  { %6454 = vmatmul.mubr.msk.f32.vlgmr.msra.gmra.mrb[2].mxu0 %vm1939_vm0, %v1918_v57  ;;  %v8768_v1 = vadd.f32 %v1911_v61, %v1907_v59 }
 0x290   :  { %v8762_v62 = vadd.f32 %v1912_v58, %v1908_v60  ;;  %2019 = vmatprep.mubr.f32.mxu0 %v8268_v4 }
 0x292   :  { %2032 = vmatprep.subr.mxu0 %v8762_v62 }
 0x293   :  { %6455 = vmatmul.mubr.msk.f32.gmra.mrb[4].mxu0 %vm1939_vm0, %v1919_v63 }
 0x294   :  { %2033 = vmatpush1.msra.mxu0 %v8768_v1  ;;  %2025 = vmatprep.mubr.f32.mxu0 %v8268_v4 }
 0x297   :  { %6456 = vmatmul.mubr.msk.f32.gmra.mrb[6].mxu0 %vm1939_vm0, %v1920_v2 }
 0x298   :  { %2096 = vmatprep.mubr.f32.mxu0 %v8268_v4 }
 0x29b   :  { %6457 = vmatmul.mubr.msk.f32.vlgmr.msra.gmra.mrb[8].mxu0 %vm1939_vm0, %v1918_v57 }
 0x29c   :  { %2102 = vmatprep.mubr.f32.mxu0 %v8268_v4 }
 0x29f   :  { %6458 = vmatmul.mubr.msk.f32.gmra.mrb[10].mxu0 %vm1939_vm0, %v1919_v63 }
 0x2a0   :  { %2108 = vmatprep.mubr.f32.mxu0 %v8268_v4 }
 0x2a3   :  { %6459 = vmatmul.mubr.msk.f32.gmra.mrb[12].mxu0 %vm1939_vm0, %v1920_v2 }
 0x2a4   :  { %2186 = vmatprep.mubr.f32.mxu0 %v8268_v4 }
 0x362   :  { %v2015_v3 = vpop.f32.mrb[2].mxu0 }
 0x363   :  { %v2017_v5 = vpop.f32.mrb[3].mxu0  ;;  %v2016_v9 = vadd.f32 %v2015_v3, %v1927_v6 }
 0x364   :  { %v2018_v12 = vadd.f32 %v2017_v5, %v1927_v6 }
 0x366   :  { %v2021_v8 = vpop.f32.mrb[4].mxu0 }
 0x367   :  { %v2022_v10 = vadd.f32 %v2021_v8, %v1932_v7  ;;  %v2023_v11 = vpop.f32.mrb[5].mxu0 }
 0x368   :  { %v2024_v13 = vadd.f32 %v2023_v11, %v1932_v7 }
 0x369   :  { %v2115_v14 = vmul.f32 %v2022_v10, %v2016_v9 }
 0x36a   :  { %v2116_v15 = vmul.f32 %v2024_v13, %v2018_v12  ;;  %v2027_v16 = vpop.f32.mrb[6].mxu0 }
 0x36b   :  { %v2029_v17 = vpop.f32.mrb[7].mxu0  ;;  %v8793_v35 = vadd.f32 %v2027_v16, %v1937_v31 }
 0x36c   :  { %2122 = vmatprep.subr.mxu0 %v2116_v15  ;;  %v8797_v38 = vadd.f32 %v2029_v17, %v1937_v31 }
 0x36d   :  { %2123 = vmatpush1.msra.mxu0 %v2115_v14 }
 0x36e   :  { %v2098_v19 = vpop.f32.mrb[8].mxu0  ;;  %6460 = vmatmul.mubr.msk.f32.vlgmr.msra.gmra.mrb[14].mxu0 %vm1939_vm0, %v8788_v18 }
 0x36f   :  { %v2099_v20 = vadd.f32 %v2098_v19, %v1927_v6  ;;  %v2100_v21 = vpop.f32.mrb[9].mxu0  ;;  %2257 = vmatprep.mubr.f32.mxu0 %v8268_v4  ;;  %v2446_v19 = vld [vmem:[%s10664_s9] sm:$0xff] }
 0x370   :  { %v2101_v22 = vadd.f32 %v2100_v21, %v1927_v6 }
 0x371   :  { %v2266_v23 = vmul.f32 %v2099_v20, %v2022_v10 }
 0x372   :  { %v2267_v24 = vmul.f32 %v2101_v22, %v2024_v13  ;;  %v2104_v25 = vpop.f32.mrb[10].mxu0 }
 0x373   :  { %v2105_v26 = vadd.f32 %v2104_v25, %v1932_v7  ;;  %v2106_v27 = vpop.f32.mrb[11].mxu0 }
 0x374   :  { %v2107_v28 = vadd.f32 %v2106_v27, %v1932_v7 }
 0x375   :  { %v2117_v29 = vmul.f32 %v2105_v26, %v2099_v20  ;;  %v2264_v30 = vmul.f32 %v2105_v26, %v2016_v9 }
 0x376   :  { %v2118_v32 = vmul.f32 %v2107_v28, %v2101_v22  ;;  %v2265_v33 = vmul.f32 %v2107_v28, %v2018_v12  ;;  %v2110_v34 = vpop.f32.mrb[12].mxu0 }
 0x377   :  { %v8795_v36 = vadd.f32 %v2110_v34, %v1937_v31  ;;  %v2112_v37 = vpop.f32.mrb[13].mxu0 }
 0x378   :  { %v2113_v39 = vadd.f32 %v2112_v37, %v1937_v31  ;;  %2193 = vmatprep.subr.mxu0 %v2118_v32 }
 0x379   :  { %v2434_v40 = vsub.f32 %v8793_v35, %v8795_v36  ;;  %v2436_v41 = vsub.f32 %v8795_v36, %v8793_v35  ;;  %2194 = vmatpush1.msra.mxu0 %v2117_v29 }
 0x37a   :  { %v2435_v42 = vsub.f32 %v8797_v38, %v2113_v39  ;;  %v2437_v43 = vsub.f32 %v2113_v39, %v8797_v38  ;;  %6461 = vmatmul.mubr.msk.f32.vlgmr.msra.gmra.mrb[16].mxu0 %vm1939_vm0, %v8788_v18  ;;  %2268 = vmatprep.subr.mxu0 %v2265_v33 }
 0x37b   :  { %2269 = vmatpush1.msra.mxu0 %v2264_v30  ;;  %2332 = vmatprep.mubr.f32.mxu0 %v8268_v4 }
 0x37c   :  { %2339 = vmatprep.subr.mxu0 %v2267_v24  ;;  %v2451_v24 = vpop.permute.xlu1 %2450 }
 0x37e   :  { %6462 = vmatmul.mubr.msk.f32.vlgmr.msra.gmra.mrb[18].mxu0 %vm1939_vm0, %v8788_v18 }
 0x37f   :  { %2340 = vmatpush1.msra.mxu0 %v2266_v23  ;;  %2403 = vmatprep.mubr.f32.mxu0 %v8268_v4 }
 0x382   :  { %6463 = vmatmul.mubr.msk.f32.vlgmr.msra.gmra.mrb[20].mxu0 %vm1939_vm0, %v8788_v18 }
 0x383   :  { %2520 = vmatprep.mubr.f32.mxu0 %v8268_v4 }
 0x441   :  { %v2188_v44 = vpop.f32.mrb[14].mxu0 }
 0x442   :  { %v2190_v45 = vpop.f32.mrb[15].mxu0 }
 0x44d   :  { %v2259_v46 = vpop.f32.mrb[16].mxu0 }
 0x44e   :  { %v2261_v47 = vpop.f32.mrb[17].mxu0 }
 0x451   :  { %v2334_v48 = vpop.f32.mrb[18].mxu0 }
 0x452   :  { %v2410_v49 = vsub.f32 %v2334_v48, %v2188_v44  ;;  %v2336_v50 = vpop.f32.mrb[19].mxu0 }
 0x453   :  { %v2411_v51 = vsub.f32 %v2336_v50, %v2190_v45 }
 0x454   :  { %v2414_v53 = vmul.f32 1.442695, %v2410_v49 }
 0x455   :  { %v2416_v54 = vmul.f32 1.442695, %v2411_v51  ;;  %v2405_v56 = vpop.f32.mrb[20].mxu0 }
 0x456   :  { %8203 = vpow2.f32 %v2414_v53  ;;  %v2412_v57 = vsub.f32 %v2405_v56, %v2259_v46  ;;  %v2407_v58 = vpop.f32.mrb[21].mxu0 }
 0x457   :  { %8205 = vpow2.f32 %v2416_v54  ;;  %v2413_v59 = vsub.f32 %v2407_v58, %v2261_v47 }
 0x458   :  { %v2418_v60 = vmul.f32 1.442695, %v2412_v57 }
 0x459   :  { %v2420_v61 = vmul.f32 1.442695, %v2413_v59 }
 0x45a   :  { %8207 = vpow2.f32 %v2418_v60 }
 0x45b   :  { %8209 = vpow2.f32 %v2420_v61 }
 0x460   :  { %v8204_v63 = vpop.eup %8203 }
 0x461   :  { %v8206_v2 = vpop.eup %8205  ;;  %v2422_v3 = vadd.f32 1.0, %v8204_v63 }
 0x462   :  { %v2423_v5 = vadd.f32 1.0, %v8206_v2 }
 0x463   :  { %8211 = vrcp.f32 %v2422_v3 }
 0x464   :  { %v8208_v6 = vpop.eup %8207  ;;  %8213 = vrcp.f32 %v2423_v5 }
 0x465   :  { %v8210_v7 = vpop.eup %8209  ;;  %v2424_v8 = vadd.f32 1.0, %v8208_v6 }
 0x466   :  { %v2425_v9 = vadd.f32 1.0, %v8210_v7 }
 0x467   :  { %8215 = vrcp.f32 %v2424_v8 }
 0x468   :  { %8217 = vrcp.f32 %v2425_v9 }
 0x46d   :  { %v8212_v10 = vpop.eup %8211 }
 0x46e   :  { %v8214_v11 = vpop.eup %8213  ;;  %v2438_v12 = vmul.f32 %v8212_v10, %v2434_v40 }
 0x46f   :  { %v2439_v13 = vmul.f32 %v8214_v11, %v2435_v42 }
 0x470   :  { %v2442_v14 = vadd.f32 %v2438_v12, %v8795_v36 }
 0x471   :  { %v8216_v15 = vpop.eup %8215  ;;  %v2443_v16 = vadd.f32 %v2439_v13, %v2113_v39 }
 0x472   :  { %v8218_v17 = vpop.eup %8217  ;;  %v2440_v20 = vmul.f32 %v8216_v15, %v2436_v41 }
 0x473   :  { %2456 = vmatprep.subr.mxu0 %v2443_v16  ;;  %v2441_v21 = vmul.f32 %v8218_v17, %v2437_v43 }
 0x474   :  { %2457 = vmatpush1.msra.mxu0 %v2442_v14  ;;  %v2444_v22 = vadd.f32 %v2440_v20, %v8793_v35 }
 0x475   :  { %6464 = vmatmul.mubr.msk.f32.vlgmr.msra.gmra.mrb[22].mxu0 %vm1939_vm0, %v2446_v19  ;;  %v2445_v23 = vadd.f32 %v2441_v21, %v8797_v38 }
 0x476   :  { %2591 = vmatprep.mubr.f32.mxu0 %v8268_v4 }
 0x477   :  { %2527 = vmatprep.subr.mxu0 %v2445_v23 }
 0x478   :  { %2528 = vmatpush1.msra.mxu0 %v2444_v22 }
 0x479   :  { %6465 = vmatmul.mubr.msk.f32.vlgmr.msra.gmra.mrb[24].mxu0 %vm1939_vm0, %v2446_v19 }
 0x47a   :  { %2803 = vmatprep.mubr.f32.mxu0 %v8268_v4 }
 0x548   :  { %v2522_v25 = vpop.f32.mrb[22].mxu0 }
 0x549   :  { %v2523_v26 = vadd.f32 %v2522_v25, %v2451_v24  ;;  %v2524_v27 = vpop.f32.mrb[23].mxu0 }
 0x54a   :  { %v2525_v28 = vadd.f32 %v2524_v27, %v2451_v24 }
 0x54b   :  { %v2598_v29 = vadd.f32 %v2523_v26, %v8748_v55 }
 0x54c   :  { %v2599_v30 = vadd.f32 %v2525_v28, %v8746_v52  ;;  %v2593_v31 = vpop.f32.mrb[24].mxu0 }
 0x54d   :  { %v2604_v32 = vrot.slane %v2598_v29, 4  ;;  %v2594_v33 = vadd.f32 %v2593_v31, %v2451_v24  ;;  %v2595_v34 = vpop.f32.mrb[25].mxu0 }
 0x54e   :  { %v2610_v35 = vrot.slane %v2599_v30, 4  ;;  %v2596_v36 = vadd.f32 %v2595_v34, %v2451_v24 }
 0x54f   :  { %v2605_v37 = vadd.f32 %v2604_v32, %v2598_v29  ;;  %v2600_v38 = vadd.f32 %v2594_v33, %v8768_v1 }
 0x550   :  { %v2611_v39 = vadd.f32 %v2610_v35, %v2599_v30  ;;  %v2601_v40 = vadd.f32 %v2596_v36, %v8762_v62 }
 0x551   :  { %v2606_v41 = vrot.slane %v2605_v37, 2  ;;  %v2616_v42 = vrot.slane %v2600_v38, 4 }
 0x552   :  { %v2612_v43 = vrot.slane %v2611_v39, 2  ;;  %v2622_v44 = vrot.slane %v2601_v40, 4 }
 0x553   :  { %v2607_v45 = vadd.f32 %v2606_v41, %v2605_v37  ;;  %v2617_v55 = vadd.f32 %v2616_v42, %v2600_v38 }
 0x554   :  { %v2613_v46 = vadd.f32 %v2612_v43, %v2611_v39  ;;  %v2623_v52 = vadd.f32 %v2622_v44, %v2601_v40 }
 0x555   :  { %v2608_v47 = vrot.slane %v2607_v45, 1  ;;  %v2618_v48 = vrot.slane %v2617_v55, 2 }
 0x556   :  { %v2614_v49 = vrot.slane %v2613_v46, 1  ;;  %v2624_v50 = vrot.slane %v2623_v52, 2 }
 0x557   :  { %v2609_v51 = vadd.f32 %v2608_v47, %v2607_v45  ;;  %v2619_v53 = vadd.f32 %v2618_v48, %v2617_v55 }
 0x558   :  { %v2615_v54 = vadd.f32 %v2614_v49, %v2613_v46  ;;  %v2625_v56 = vadd.f32 %v2624_v50, %v2623_v52  ;;  %v2684_v46 = vpop.permute.xlu0 %2683 }
 0x559   :  { %v2629_v1 = vmul.f32 0.125, %v2609_v51  ;;  %v2620_v57 = vrot.slane %v2619_v53, 1  ;;  %v2693_v51 = vpop.permute.xlu1 %2692 }
 0x55a   :  { %v2630_v58 = vmul.f32 0.125, %v2615_v54  ;;  %v2626_v62 = vrot.slane %v2625_v56, 1 }
 0x55b   :  { %v2633_v59 = vsub.f32 %v2598_v29, %v2629_v1  ;;  %v2621_v60 = vadd.f32 %v2620_v57, %v2619_v53  ;;  %v2699_v57 = vld [vmem:[%s10665_s13] sm:$0xff] }
 0x55c   :  { %v2634_v61 = vsub.f32 %v2599_v30, %v2630_v58  ;;  %v2627_v63 = vadd.f32 %v2626_v62, %v2625_v56 }
 0x55d   :  { %v2637_v2 = vmul.f32 %v2633_v59, %v2633_v59  ;;  %v2631_v3 = vmul.f32 0.125, %v2621_v60 }
 0x55e   :  { %v2638_v5 = vmul.f32 %v2634_v61, %v2634_v61  ;;  %v2632_v6 = vmul.f32 0.125, %v2627_v63  ;;  %v2701_v63 = vld [vmem:[%s10665_s13 + $0x10] sm:$0xff] }
 0x55f   :  { %v2641_v7 = vrot.slane %v2637_v2, 4  ;;  %v2635_v8 = vsub.f32 %v2600_v38, %v2631_v3 }
 0x560   :  { %v2647_v9 = vrot.slane %v2638_v5, 4  ;;  %v2636_v10 = vsub.f32 %v2601_v40, %v2632_v6  ;;  %v2710_v6 = vpop.permute.xlu0 %2709 }
 0x561   :  { %v2642_v11 = vadd.f32 %v2641_v7, %v2637_v2  ;;  %v2639_v12 = vmul.f32 %v2635_v8, %v2635_v8  ;;  %v2702_v2 = vld [vmem:[%s10665_s13 + $0x18] sm:$0xff] }
 0x562   :  { %v2648_v13 = vadd.f32 %v2647_v9, %v2638_v5  ;;  %v2640_v14 = vmul.f32 %v2636_v10, %v2636_v10 }
 0x563   :  { %v2643_v15 = vrot.slane %v2642_v11, 2  ;;  %v2653_v16 = vrot.slane %v2639_v12, 4 }
 0x564   :  { %v2649_v17 = vrot.slane %v2648_v13, 2  ;;  %v2659_v19 = vrot.slane %v2640_v14, 4 }
 0x565   :  { %v2644_v20 = vadd.f32 %v2643_v15, %v2642_v11  ;;  %v2654_v21 = vadd.f32 %v2653_v16, %v2639_v12 }
 0x566   :  { %v2650_v22 = vadd.f32 %v2649_v17, %v2648_v13  ;;  %v2660_v23 = vadd.f32 %v2659_v19, %v2640_v14 }
 0x567   :  { %v2645_v24 = vrot.slane %v2644_v20, 1  ;;  %v2655_v25 = vrot.slane %v2654_v21, 2 }
 0x568   :  { %v2651_v26 = vrot.slane %v2650_v22, 1  ;;  %v2661_v27 = vrot.slane %v2660_v23, 2 }
 0x569   :  { %v2646_v28 = vadd.f32 %v2645_v24, %v2644_v20  ;;  %v2656_v29 = vadd.f32 %v2655_v25, %v2654_v21 }
 0x56a   :  { %v2652_v30 = vadd.f32 %v2651_v26, %v2650_v22  ;;  %v2662_v31 = vadd.f32 %v2661_v27, %v2660_v23  ;;  %v2720_v22 = vpop.permute.xlu0 %2719 }
 0x56b   :  { %v2665_v32 = vmul.f32 0.125, %v2646_v28  ;;  %v2657_v33 = vrot.slane %v2656_v29, 1 }
 0x56c   :  { %v2666_v34 = vmul.f32 0.125, %v2652_v30  ;;  %v2663_v35 = vrot.slane %v2662_v31, 1 }
 0x56d   :  { %v2669_v36 = vadd.f32 1e-05, %v2665_v32  ;;  %v2658_v37 = vadd.f32 %v2657_v33, %v2656_v29 }
 0x56e   :  { %v2670_v38 = vadd.f32 1e-05, %v2666_v34  ;;  %v2664_v39 = vadd.f32 %v2663_v35, %v2662_v31 }
 0x56f   :  { %8219 = vrsqrt.f32 %v2669_v36  ;;  %v2667_v40 = vmul.f32 0.125, %v2658_v37 }
 0x570   :  { %8221 = vrsqrt.f32 %v2670_v38  ;;  %v2668_v41 = vmul.f32 0.125, %v2664_v39 }
 0x571   :  { %v2671_v42 = vadd.f32 1e-05, %v2667_v40 }
 0x572   :  { %v2672_v43 = vadd.f32 1e-05, %v2668_v41 }
 0x573   :  { %8223 = vrsqrt.f32 %v2671_v42 }
 0x574   :  { %8225 = vrsqrt.f32 %v2672_v43 }
 0x579   :  { %v8220_v44 = vpop.eup %8219 }
 0x57a   :  { %v8222_v45 = vpop.eup %8221  ;;  %v2677_v55 = vmul.f32 %v8220_v44, %v2633_v59  ;;  %v2933_v44 = vld [vmem:[%s10666_s15] sm:$0xff] }
 0x57b   :  { %v2678_v52 = vmul.f32 %v8222_v45, %v2634_v61  ;;  %v2700_v61 = vld [vmem:[%s10665_s13 + $0x8] sm:$0xff] }
 0x57c   :  { %v2686_v47 = vmul.f32 %v2684_v46, %v2677_v55 }
 0x57d   :  { %v8224_v48 = vpop.eup %8223  ;;  %v2687_v49 = vmul.f32 %v2684_v46, %v2678_v52 }
 0x57e   :  { %v8226_v50 = vpop.eup %8225  ;;  %v2679_v53 = vmul.f32 %v8224_v48, %v2635_v8  ;;  %v8830_v1 = vadd.f32 %v2693_v51, %v2686_v47  ;;  %v2715_v8 = vpop.permute.xlu1 %2714 }
 0x57f   :  { %v8828_v54 = vadd.f32 %v2693_v51, %v2687_v49  ;;  %v2680_v56 = vmul.f32 %v8226_v50, %v2636_v10 }
 0x580   :  { %v2688_v58 = vmul.f32 %v2684_v46, %v2679_v53 }
 0x581   :  { %2739 = vmatprep.subr.mxu0 %v8828_v54  ;;  %v2689_v62 = vmul.f32 %v2684_v46, %v2680_v56 }
 0x582   :  { %2740 = vmatpush1.msra.mxu0 %v8830_v1  ;;  %v8841_v60 = vadd.f32 %v2693_v51, %v2688_v58  ;;  %v2725_v25 = vpop.permute.xlu1 %2724 }
 0x583   :  { %6466 = vmatmul.mubr.msk.f32.vlgmr.msra.gmra.mrb[26].mxu0 %vm1939_vm0, %v2699_v57  ;;  %v8838_v59 = vadd.f32 %v2693_v51, %v2689_v62 }
 0x584   :  { %2809 = vmatprep.mubr.f32.mxu0 %v8268_v4 }
 0x585   :  { %2828 = vmatprep.subr.mxu0 %v8838_v59 }
 0x586   :  { %2829 = vmatpush1.msra.mxu0 %v8841_v60 }
 0x587   :  { %6467 = vmatmul.mubr.msk.f32.gmra.mrb[28].mxu0 %vm1939_vm0, %v2700_v61 }
 0x588   :  { %2815 = vmatprep.mubr.f32.mxu0 %v8268_v4 }
 0x58b   :  { %6468 = vmatmul.mubr.msk.f32.gmra.mrb[30].mxu0 %vm1939_vm0, %v2701_v63 }
 0x58c   :  { %2821 = vmatprep.mubr.f32.mxu0 %v8268_v4 }
 0x58f   :  { %6469 = vmatmul.mubr.msk.f32.gmra.mrb[32].mxu0 %vm1939_vm0, %v2702_v2 }
 0x590   :  { %2892 = vmatprep.mubr.f32.mxu0 %v8268_v4 }
 0x593   :  { %6470 = vmatmul.mubr.msk.f32.vlgmr.msra.gmra.mrb[34].mxu0 %vm1939_vm0, %v2699_v57 }
 0x594   :  { %2898 = vmatprep.mubr.f32.mxu0 %v8268_v4 }
 0x597   :  { %6471 = vmatmul.mubr.msk.f32.gmra.mrb[36].mxu0 %vm1939_vm0, %v2700_v61 }
 0x598   :  { %2904 = vmatprep.mubr.f32.mxu0 %v8268_v4 }
 0x59b   :  { %6472 = vmatmul.mubr.msk.f32.gmra.mrb[38].mxu0 %vm1939_vm0, %v2701_v63 }
 0x59c   :  { %2910 = vmatprep.mubr.f32.mxu0 %v8268_v4 }
 0x59f   :  { %6473 = vmatmul.mubr.msk.f32.gmra.mrb[40].mxu0 %vm1939_vm0, %v2702_v2 }
 0x5a0   :  { %3282 = vmatprep.mubr.f32.mxu0 %v8268_v4 }
 0x656   :  { %v2805_v3 = vpop.f32.mrb[26].mxu0 }
 0x657   :  { %v2807_v5 = vpop.f32.mrb[27].mxu0  ;;  %v2806_v7 = vadd.f32 %v2805_v3, %v2710_v6 }
 0x658   :  { %v2808_v9 = vadd.f32 %v2807_v5, %v2710_v6 }
 0x659   :  { %v2917_v14 = vmax.f32 %v2806_v7, 0.0 }
 0x65a   :  { %v2811_v10 = vpop.f32.mrb[28].mxu0  ;;  %v2918_v16 = vmax.f32 %v2808_v9, 0.0 }
 0x65b   :  { %v2812_v11 = vadd.f32 %v2811_v10, %v2715_v8  ;;  %v2813_v12 = vpop.f32.mrb[29].mxu0 }
 0x65c   :  { %v2814_v13 = vadd.f32 %v2813_v12, %v2715_v8 }
 0x65d   :  { %v2921_v15 = vmax.f32 %v2812_v11, 0.0 }
 0x65e   :  { %v2922_v17 = vmax.f32 %v2814_v13, 0.0  ;;  %v2817_v19 = vpop.f32.mrb[30].mxu0 }
 0x65f   :  { %v7602_v20 = vpack.c.bf16 %v2921_v15, %v2917_v14  ;;  %v2819_v21 = vpop.f32.mrb[31].mxu0  ;;  %v2818_v24 = vadd.f32 %v2817_v19, %v2720_v22 }
 0x660   :  { %v7600_v23 = vpack.c.bf16 %v2922_v17, %v2918_v16  ;;  %v2820_v26 = vadd.f32 %v2819_v21, %v2720_v22 }
 0x661   :  { %v2925_v31 = vmax.f32 %v2818_v24, 0.0 }
 0x662   :  { %v2823_v27 = vpop.f32.mrb[32].mxu0  ;;  %7601 = vmatprep.subr.bf16.mxu1 %v7600_v23  ;;  %v2926_v33 = vmax.f32 %v2820_v26, 0.0 }
 0x663   :  { %v2824_v28 = vadd.f32 %v2823_v27, %v2725_v25  ;;  %v2825_v29 = vpop.f32.mrb[33].mxu0  ;;  %7603 = vmatpush1.bf16.msra.mxu1 %v7602_v20 }
 0x664   :  { %v2826_v30 = vadd.f32 %v2825_v29, %v2725_v25 }
 0x665   :  { %v2929_v32 = vmax.f32 %v2824_v28, 0.0 }
 0x666   :  { %v2930_v34 = vmax.f32 %v2826_v30, 0.0  ;;  %v2894_v35 = vpop.f32.mrb[34].mxu0 }
 0x667   :  { %v7606_v36 = vpack.c.bf16 %v2929_v32, %v2925_v31  ;;  %v2896_v37 = vpop.f32.mrb[35].mxu0  ;;  %v2895_v39 = vadd.f32 %v2894_v35, %v2710_v6 }
 0x668   :  { %v7604_v38 = vpack.c.bf16 %v2930_v34, %v2926_v33  ;;  %v2897_v40 = vadd.f32 %v2896_v37, %v2710_v6 }
 0x669   :  { %v2919_v55 = vmax.f32 %v2895_v39, 0.0 }
 0x66a   :  { %v2900_v41 = vpop.f32.mrb[36].mxu0  ;;  %7605 = vmatprep.subr.bf16.mxu1 %v7604_v38  ;;  %v2920_v52 = vmax.f32 %v2897_v40, 0.0 }
 0x66b   :  { %v2901_v42 = vadd.f32 %v2900_v41, %v2715_v8  ;;  %v2902_v43 = vpop.f32.mrb[37].mxu0  ;;  %7607 = vmatpush1.bf16.msra.mxu1 %v7606_v36 }
 0x66c   :  { %v2903_v45 = vadd.f32 %v2902_v43, %v2715_v8  ;;  %v2938_v8 = vpop.permute.xlu0 %2937 }
 0x66d   :  { %v2923_v46 = vmax.f32 %v2901_v42, 0.0 }
 0x66e   :  { %v2924_v47 = vmax.f32 %v2903_v45, 0.0  ;;  %v2906_v48 = vpop.f32.mrb[38].mxu0  ;;  %6474 = vmatmul.mubr.msk.f32.vlgmr.msra.gmra.mrb[8].mxu1 %vm2940_vm2, %v2933_v44 }
 0x66f   :  { %v7610_v49 = vpack.c.bf16 %v2923_v46, %v2919_v55  ;;  %v2908_v50 = vpop.f32.mrb[39].mxu0  ;;  %3079 = vmatprep.mubr.f32.mxu1 %v8268_v4  ;;  %v2907_v53 = vadd.f32 %v2906_v48, %v2720_v22 }
 0x670   :  { %v7608_v51 = vpack.c.bf16 %v2924_v47, %v2920_v52  ;;  %v2909_v56 = vadd.f32 %v2908_v50, %v2720_v22 }
 0x671   :  { %v2927_v63 = vmax.f32 %v2907_v53, 0.0 }
 0x672   :  { %v2912_v57 = vpop.f32.mrb[40].mxu0  ;;  %7609 = vmatprep.subr.bf16.mxu1 %v7608_v51  ;;  %v2928_v3 = vmax.f32 %v2909_v56, 0.0 }
 0x673   :  { %v2913_v58 = vadd.f32 %v2912_v57, %v2725_v25  ;;  %v2914_v62 = vpop.f32.mrb[41].mxu0  ;;  %7611 = vmatpush1.bf16.msra.mxu1 %v7610_v49 }
 0x674   :  { %v2915_v61 = vadd.f32 %v2914_v62, %v2725_v25 }
 0x675   :  { %v2931_v2 = vmax.f32 %v2913_v58, 0.0 }
 0x676   :  { %v2932_v5 = vmax.f32 %v2915_v61, 0.0 }
 0x677   :  { %v7614_v6 = vpack.c.bf16 %v2931_v2, %v2927_v63 }
 0x678   :  { %v7612_v7 = vpack.c.bf16 %v2932_v5, %v2928_v3 }
 0x67a   :  { %7613 = vmatprep.subr.bf16.mxu1 %v7612_v7 }
 0x67b   :  { %7615 = vmatpush1.bf16.msra.mxu1 %v7614_v6 }
 0x67e   :  { %6475 = vmatmul.mubr.msk.f32.vlgmr.msra.gmra.mrb[10].mxu1 %vm2940_vm2, %v2933_v44 }
 0x67f   :  { %3365 = vmatprep.mubr.f32.mxu1 %v8268_v4 }
 0x741   :  { %v3010_v9 = vpop.f32.mrb[8].mxu1 }
 0x742   :  { %v3011_v10 = vadd.f32 %v3010_v9, %v2938_v8  ;;  %v3012_v11 = vpop.f32.mrb[9].mxu1 }
 0x743   :  { %v3013_v12 = vadd.f32 %v3012_v11, %v2938_v8 }
 0x744   :  { %v3086_v13 = vadd.f32 %v3011_v10, %v8830_v1 }
 0x745   :  { %v3087_v14 = vadd.f32 %v3013_v12, %v8828_v54 }
 0x746   :  { %v3092_v15 = vrot.slane %v3086_v13, 4 }
 0x747   :  { %v3098_v16 = vrot.slane %v3087_v14, 4 }
 0x748   :  { %v3093_v17 = vadd.f32 %v3092_v15, %v3086_v13 }
 0x749   :  { %v3099_v19 = vadd.f32 %v3098_v16, %v3087_v14 }
 0x74a   :  { %v3094_v20 = vrot.slane %v3093_v17, 2 }
 0x74b   :  { %v3100_v21 = vrot.slane %v3099_v19, 2 }
 0x74c   :  { %v3095_v22 = vadd.f32 %v3094_v20, %v3093_v17 }
 0x74d   :  { %v3101_v23 = vadd.f32 %v3100_v21, %v3099_v19 }
 0x74e   :  { %v3096_v24 = vrot.slane %v3095_v22, 1 }
 0x74f   :  { %v3102_v25 = vrot.slane %v3101_v23, 1 }
 0x750   :  { %v3097_v26 = vadd.f32 %v3096_v24, %v3095_v22 }
 0x751   :  { %v3103_v27 = vadd.f32 %v3102_v25, %v3101_v23  ;;  %v3081_v28 = vpop.f32.mrb[10].mxu1 }
 0x752   :  { %v3116_v29 = vmul.f32 0.125, %v3097_v26  ;;  %v3082_v30 = vadd.f32 %v3081_v28, %v2938_v8  ;;  %v3083_v31 = vpop.f32.mrb[11].mxu1  ;;  %v3171_v28 = vpop.permute.xlu1 %3170 }
 0x753   :  { %v3117_v32 = vmul.f32 0.125, %v3103_v27  ;;  %v3084_v1 = vadd.f32 %v3083_v31, %v2938_v8 }
 0x754   :  { %v3120_v33 = vsub.f32 %v3086_v13, %v3116_v29  ;;  %v3088_v54 = vadd.f32 %v3082_v30, %v8841_v60 }
 0x755   :  { %v3121_v34 = vsub.f32 %v3087_v14, %v3117_v32  ;;  %v3089_v35 = vadd.f32 %v3084_v1, %v8838_v59 }
 0x756   :  { %v3124_v36 = vmul.f32 %v3120_v33, %v3120_v33  ;;  %v3104_v37 = vrot.slane %v3088_v54, 4 }
 0x757   :  { %v3125_v38 = vmul.f32 %v3121_v34, %v3121_v34  ;;  %v3110_v39 = vrot.slane %v3089_v35, 4 }
 0x758   :  { %v3128_v40 = vrot.slane %v3124_v36, 4  ;;  %v3105_v41 = vadd.f32 %v3104_v37, %v3088_v54 }
 0x759   :  { %v3134_v42 = vrot.slane %v3125_v38, 4  ;;  %v3111_v43 = vadd.f32 %v3110_v39, %v3089_v35  ;;  %v6478_v39 = vld [vmem:[%s10662_s6 + $0x28] sm:$0xff] }
 0x75a   :  { %v3129_v44 = vadd.f32 %v3128_v40, %v3124_v36  ;;  %v3106_v45 = vrot.slane %v3105_v41, 2 }
 0x75b   :  { %v3135_v55 = vadd.f32 %v3134_v42, %v3125_v38  ;;  %v3112_v46 = vrot.slane %v3111_v43, 2 }
 0x75c   :  { %v3130_v52 = vrot.slane %v3129_v44, 2  ;;  %v3107_v47 = vadd.f32 %v3106_v45, %v3105_v41 }
 0x75d   :  { %v3136_v48 = vrot.slane %v3135_v55, 2  ;;  %v3113_v49 = vadd.f32 %v3112_v46, %v3111_v43 }
 0x75e   :  { %v3131_v60 = vadd.f32 %v3130_v52, %v3129_v44  ;;  %v3108_v50 = vrot.slane %v3107_v47, 1 }
 0x75f   :  { %v3137_v51 = vadd.f32 %v3136_v48, %v3135_v55  ;;  %v3114_v59 = vrot.slane %v3113_v49, 1 }
 0x760   :  { %v3132_v53 = vrot.slane %v3131_v60, 1  ;;  %v3109_v56 = vadd.f32 %v3108_v50, %v3107_v47 }
 0x761   :  { %v3138_v57 = vrot.slane %v3137_v51, 1  ;;  %v3115_v58 = vadd.f32 %v3114_v59, %v3113_v49  ;;  %v3197_v49 = vpop.permute.xlu1 %3196 }
 0x762   :  { %v3133_v62 = vadd.f32 %v3132_v53, %v3131_v60  ;;  %v3118_v61 = vmul.f32 0.125, %v3109_v56 }
 0x763   :  { %v3139_v63 = vadd.f32 %v3138_v57, %v3137_v51  ;;  %v3119_v2 = vmul.f32 0.125, %v3115_v58 }
 0x764   :  { %v3152_v3 = vmul.f32 0.125, %v3133_v62  ;;  %v3122_v5 = vsub.f32 %v3088_v54, %v3118_v61 }
 0x765   :  { %v3153_v6 = vmul.f32 0.125, %v3139_v63  ;;  %v3123_v7 = vsub.f32 %v3089_v35, %v3119_v2  ;;  %v3180_v35 = vpop.permute.xlu0 %3179 }
 0x766   :  { %v3156_v8 = vadd.f32 1e-05, %v3152_v3  ;;  %v3126_v9 = vmul.f32 %v3122_v5, %v3122_v5 }
 0x767   :  { %v3157_v10 = vadd.f32 1e-05, %v3153_v6  ;;  %v3127_v11 = vmul.f32 %v3123_v7, %v3123_v7 }
 0x768   :  { %8227 = vrsqrt.f32 %v3156_v8  ;;  %v3140_v12 = vrot.slane %v3126_v9, 4 }
 0x769   :  { %8229 = vrsqrt.f32 %v3157_v10  ;;  %v3146_v13 = vrot.slane %v3127_v11, 4  ;;  %v3202_v48 = vpop.permute.xlu0 %3201 }
 0x76a   :  { %v3141_v14 = vadd.f32 %v3140_v12, %v3126_v9 }
 0x76b   :  { %v3147_v15 = vadd.f32 %v3146_v13, %v3127_v11 }
 0x76c   :  { %v3142_v16 = vrot.slane %v3141_v14, 2 }
 0x76d   :  { %v3148_v17 = vrot.slane %v3147_v15, 2 }
 0x76e   :  { %v3143_v19 = vadd.f32 %v3142_v16, %v3141_v14  ;;  %v3207_v14 = vpop.permute.xlu1 %3206 }
 0x76f   :  { %v3149_v20 = vadd.f32 %v3148_v17, %v3147_v15 }
 0x770   :  { %v3144_v21 = vrot.slane %v3143_v19, 1 }
 0x771   :  { %v3150_v22 = vrot.slane %v3149_v20, 1 }
 0x772   :  { %v8228_v23 = vpop.eup %8227  ;;  %v3145_v24 = vadd.f32 %v3144_v21, %v3143_v19 }
 0x773   :  { %v8230_v25 = vpop.eup %8229  ;;  %v3164_v26 = vmul.f32 %v8228_v23, %v3120_v33  ;;  %v3151_v27 = vadd.f32 %v3150_v22, %v3149_v20  ;;  %v6476_v33 = vld [vmem:[%s10662_s6 + $0x18] sm:$0xff] }
 0x774   :  { %v3154_v29 = vmul.f32 0.125, %v3145_v24  ;;  %v3165_v30 = vmul.f32 %v8230_v25, %v3121_v34  ;;  %v6477_v34 = vld [vmem:[%s10662_s6 + $0x20] sm:$0xff] }
 0x775   :  { %v3155_v31 = vmul.f32 0.125, %v3151_v27  ;;  %v3173_v32 = vmul.f32 %v3171_v28, %v3164_v26 }
 0x776   :  { %v3158_v1 = vadd.f32 1e-05, %v3154_v29  ;;  %v3174_v54 = vmul.f32 %v3171_v28, %v3165_v30 }
 0x777   :  { %v3159_v36 = vadd.f32 1e-05, %v3155_v31  ;;  %v8881_v38 = vadd.f32 %v3180_v35, %v3173_v32 }
 0x778   :  { %8231 = vrsqrt.f32 %v3158_v1  ;;  %v8879_v37 = vadd.f32 %v3180_v35, %v3174_v54 }
 0x779   :  { %8233 = vrsqrt.f32 %v3159_v36 }
 0x77a   :  { %3218 = vmatprep.subr.mxu0 %v8879_v37 }
 0x77b   :  { %3219 = vmatpush1.msra.mxu0 %v8881_v38 }
 0x77c   :  { %6482 = vmatmul.mubr.msk.f32.vlgmr.msra.gmra.mrb[42].mxu0 %vm1939_vm0, %v6476_v33 }
 0x77d   :  { %3288 = vmatprep.mubr.f32.mxu0 %v8268_v4 }
 0x780   :  { %6483 = vmatmul.mubr.msk.f32.gmra.mrb[44].mxu0 %vm1939_vm0, %v6477_v34 }
 0x781   :  { %3294 = vmatprep.mubr.f32.mxu0 %v8268_v4 }
 0x782   :  { %v8232_v40 = vpop.eup %8231 }
 0x783   :  { %v8234_v41 = vpop.eup %8233  ;;  %v3166_v42 = vmul.f32 %v8232_v40, %v3122_v5 }
 0x784   :  { %6484 = vmatmul.mubr.msk.f32.gmra.mrb[46].mxu0 %vm1939_vm0, %v6478_v39  ;;  %v3167_v43 = vmul.f32 %v8234_v41, %v3123_v7 }
 0x785   :  { %v3175_v44 = vmul.f32 %v3171_v28, %v3166_v42  ;;  %3452 = vmatprep.mubr.f32.mxu0 %v8268_v4 }
 0x786   :  { %v3176_v45 = vmul.f32 %v3171_v28, %v3167_v43 }
 0x787   :  { %v8902_v46 = vadd.f32 %v3180_v35, %v3175_v44 }
 0x788   :  { %v8900_v55 = vadd.f32 %v3180_v35, %v3176_v45 }
 0x78a   :  { %3301 = vmatprep.subr.mxu1 %v8900_v55 }
 0x78b   :  { %3302 = vmatpush1.msra.mxu1 %v8902_v46 }
 0x78c   :  { %6485 = vmatmul.mubr.msk.f32.vlgmr.msra.gmra.mrb[12].mxu1 %vm1939_vm0, %v6476_v33 }
 0x78d   :  { %3371 = vmatprep.mubr.f32.mxu1 %v8268_v4 }
 0x790   :  { %6486 = vmatmul.mubr.msk.f32.gmra.mrb[14].mxu1 %vm1939_vm0, %v6477_v34 }
 0x791   :  { %3377 = vmatprep.mubr.f32.mxu1 %v8268_v4 }
 0x794   :  { %6487 = vmatmul.mubr.msk.f32.gmra.mrb[16].mxu1 %vm1939_vm0, %v6478_v39 }
 0x795   :  { %3523 = vmatprep.mubr.f32.mxu1 %v8268_v4 }
 0x84f   :  { %v3284_v52 = vpop.f32.mrb[42].mxu0 }
 0x850   :  { %v3286_v47 = vpop.f32.mrb[43].mxu0  ;;  %v3285_v50 = vadd.f32 %v3284_v52, %v3197_v49 }
 0x851   :  { %v3287_v53 = vadd.f32 %v3286_v47, %v3197_v49 }
 0x853   :  { %v3290_v60 = vpop.f32.mrb[44].mxu0 }
 0x854   :  { %v3291_v51 = vadd.f32 %v3290_v60, %v3202_v48  ;;  %v3292_v59 = vpop.f32.mrb[45].mxu0 }
 0x855   :  { %v3293_v56 = vadd.f32 %v3292_v59, %v3202_v48 }
 0x856   :  { %v3384_v57 = vmul.f32 %v3291_v51, %v3285_v50 }
 0x857   :  { %v3385_v58 = vmul.f32 %v3293_v56, %v3287_v53  ;;  %v3296_v62 = vpop.f32.mrb[46].mxu0 }
 0x858   :  { %v3298_v61 = vpop.f32.mrb[47].mxu0  ;;  %v8915_v19 = vadd.f32 %v3296_v62, %v3207_v14 }
 0x859   :  { %3388 = vmatprep.subr.mxu0 %v3385_v58  ;;  %v8917_v22 = vadd.f32 %v3298_v61, %v3207_v14  ;;  %v6492_v61 = vld [vmem:[%s10664_s9 + $0x8] sm:$0xff] }
 0x85a   :  { %3389 = vmatpush1.msra.mxu0 %v3384_v57 }
 0x85b   :  { %6488 = vmatmul.mubr.msk.f32.vlgmr.msra.gmra.mrb[48].mxu0 %vm1939_vm0, %v8788_v18 }
 0x85c   :  { %3598 = vmatprep.mubr.f32.mxu0 %v8268_v4 }
 0x85f   :  { %v3367_v63 = vpop.f32.mrb[12].mxu1 }
 0x860   :  { %v3368_v2 = vadd.f32 %v3367_v63, %v3197_v49  ;;  %v3369_v3 = vpop.f32.mrb[13].mxu1 }
 0x861   :  { %v3370_v5 = vadd.f32 %v3369_v3, %v3197_v49 }
 0x862   :  { %v3532_v6 = vmul.f32 %v3368_v2, %v3291_v51 }
 0x863   :  { %v3533_v7 = vmul.f32 %v3370_v5, %v3293_v56  ;;  %v3373_v8 = vpop.f32.mrb[14].mxu1 }
 0x864   :  { %v3374_v9 = vadd.f32 %v3373_v8, %v3202_v48  ;;  %v3375_v10 = vpop.f32.mrb[15].mxu1 }
 0x865   :  { %v3376_v11 = vadd.f32 %v3375_v10, %v3202_v48 }
 0x866   :  { %v3386_v12 = vmul.f32 %v3374_v9, %v3368_v2  ;;  %v3530_v13 = vmul.f32 %v3374_v9, %v3285_v50 }
 0x867   :  { %v3387_v15 = vmul.f32 %v3376_v11, %v3370_v5  ;;  %v3531_v16 = vmul.f32 %v3376_v11, %v3287_v53  ;;  %v3379_v17 = vpop.f32.mrb[16].mxu1 }
 0x868   :  { %v3380_v20 = vadd.f32 %v3379_v17, %v3207_v14  ;;  %v3381_v21 = vpop.f32.mrb[17].mxu1 }
 0x869   :  { %v3382_v23 = vadd.f32 %v3381_v21, %v3207_v14  ;;  %3459 = vmatprep.subr.mxu1 %v3387_v15  ;;  %3534 = vmatprep.subr.mxu0 %v3531_v16 }
 0x86a   :  { %v3700_v24 = vsub.f32 %v8915_v19, %v3380_v20  ;;  %v3702_v25 = vsub.f32 %v3380_v20, %v8915_v19  ;;  %3460 = vmatpush1.msra.mxu1 %v3386_v12  ;;  %3535 = vmatpush1.msra.mxu0 %v3530_v13 }
 0x86b   :  { %v3701_v26 = vsub.f32 %v8917_v22, %v3382_v23  ;;  %v3703_v27 = vsub.f32 %v3382_v23, %v8917_v22  ;;  %6489 = vmatmul.mubr.msk.f32.vlgmr.msra.gmra.mrb[18].mxu1 %vm1939_vm0, %v8788_v18  ;;  %6490 = vmatmul.mubr.msk.f32.vlgmr.msra.gmra.mrb[50].mxu0 %vm1939_vm0, %v8788_v18 }
 0x86c   :  { %3605 = vmatprep.subr.mxu1 %v3533_v7  ;;  %3669 = vmatprep.mubr.f32.mxu1 %v8268_v4 }
 0x86d   :  { %3606 = vmatpush1.msra.mxu1 %v3532_v6  ;;  %3788 = vmatprep.mubr.f32.mxu0 %v8268_v4  ;;  %v3719_v6 = vpop.permute.xlu0 %3718 }
 0x86f   :  { %6491 = vmatmul.mubr.msk.f32.vlgmr.msra.gmra.mrb[20].mxu1 %vm1939_vm0, %v8788_v18 }
 0x870   :  { %3859 = vmatprep.mubr.f32.mxu1 %v8268_v4 }
 0x92e   :  { %v3454_v28 = vpop.f32.mrb[48].mxu0 }
 0x92f   :  { %v3456_v29 = vpop.f32.mrb[49].mxu0 }
 0x93e   :  { %v3600_v30 = vpop.f32.mrb[50].mxu0  ;;  %v3525_v31 = vpop.f32.mrb[18].mxu1 }
 0x93f   :  { %v3676_v32 = vsub.f32 %v3600_v30, %v3454_v28  ;;  %v3602_v1 = vpop.f32.mrb[51].mxu0  ;;  %v3527_v54 = vpop.f32.mrb[19].mxu1 }
 0x940   :  { %v3677_v35 = vsub.f32 %v3602_v1, %v3456_v29 }
 0x941   :  { %v3680_v36 = vmul.f32 1.442695, %v3676_v32 }
 0x942   :  { %v3682_v33 = vmul.f32 1.442695, %v3677_v35  ;;  %v3671_v34 = vpop.f32.mrb[20].mxu1 }
 0x943   :  { %8235 = vpow2.f32 %v3680_v36  ;;  %v3678_v39 = vsub.f32 %v3671_v34, %v3525_v31  ;;  %v3673_v40 = vpop.f32.mrb[21].mxu1 }
 0x944   :  { %8237 = vpow2.f32 %v3682_v33  ;;  %v3679_v41 = vsub.f32 %v3673_v40, %v3527_v54 }
 0x945   :  { %v3684_v42 = vmul.f32 1.442695, %v3678_v39 }
 0x946   :  { %v3686_v18 = vmul.f32 1.442695, %v3679_v41 }
 0x947   :  { %8239 = vpow2.f32 %v3684_v42 }
 0x948   :  { %8241 = vpow2.f32 %v3686_v18 }
 0x94d   :  { %v8236_v43 = vpop.eup %8235 }
 0x94e   :  { %v8238_v44 = vpop.eup %8237  ;;  %v3688_v45 = vadd.f32 1.0, %v8236_v43 }
 0x94f   :  { %v3689_v52 = vadd.f32 1.0, %v8238_v44 }
 0x950   :  { %8243 = vrcp.f32 %v3688_v45 }
 0x951   :  { %v8240_v47 = vpop.eup %8239  ;;  %8245 = vrcp.f32 %v3689_v52 }
 0x952   :  { %v8242_v48 = vpop.eup %8241  ;;  %v3690_v49 = vadd.f32 1.0, %v8240_v47 }
 0x953   :  { %v3691_v60 = vadd.f32 1.0, %v8242_v48 }
 0x954   :  { %8247 = vrcp.f32 %v3690_v49 }
 0x955   :  { %8249 = vrcp.f32 %v3691_v60 }
 0x95a   :  { %v8244_v50 = vpop.eup %8243 }
 0x95b   :  { %v8246_v51 = vpop.eup %8245  ;;  %v3704_v59 = vmul.f32 %v8244_v50, %v3700_v24 }
 0x95c   :  { %v3705_v53 = vmul.f32 %v8246_v51, %v3701_v26 }
 0x95d   :  { %v3708_v56 = vadd.f32 %v3704_v59, %v3380_v20 }
 0x95e   :  { %v8248_v57 = vpop.eup %8247  ;;  %v3709_v58 = vadd.f32 %v3705_v53, %v3382_v23 }
 0x95f   :  { %v8250_v62 = vpop.eup %8249  ;;  %v3706_v63 = vmul.f32 %v8248_v57, %v3702_v25 }
 0x960   :  { %3724 = vmatprep.subr.mxu0 %v3709_v58  ;;  %v3707_v2 = vmul.f32 %v8250_v62, %v3703_v27 }
 0x961   :  { %3725 = vmatpush1.msra.mxu0 %v3708_v56  ;;  %v3710_v3 = vadd.f32 %v3706_v63, %v8915_v19 }
 0x962   :  { %6494 = vmatmul.mubr.msk.f32.vlgmr.msra.gmra.mrb[52].mxu0 %vm1939_vm0, %v6492_v61  ;;  %v3711_v5 = vadd.f32 %v3707_v2, %v8917_v22 }
 0x963   :  { %4074 = vmatprep.mubr.f32.mxu0 %v8268_v4 }
 0x964   :  { %3795 = vmatprep.subr.mxu1 %v3711_v5 }
 0x965   :  { %3796 = vmatpush1.msra.mxu1 %v3710_v3 }
 0x966   :  { %6495 = vmatmul.mubr.msk.f32.vlgmr.msra.gmra.mrb[22].mxu1 %vm1939_vm0, %v6492_v61 }
 0x967   :  { %4163 = vmatprep.mubr.f32.mxu1 %v8268_v4 }
 0xa35   :  { %v3790_v7 = vpop.f32.mrb[52].mxu0 }
 0xa36   :  { %v3791_v8 = vadd.f32 %v3790_v7, %v3719_v6  ;;  %v3792_v9 = vpop.f32.mrb[53].mxu0 }
 0xa37   :  { %v3793_v10 = vadd.f32 %v3792_v9, %v3719_v6 }
 0xa38   :  { %v3866_v11 = vadd.f32 %v3791_v8, %v8881_v38 }
 0xa39   :  { %v3867_v12 = vadd.f32 %v3793_v10, %v8879_v37  ;;  %v3861_v13 = vpop.f32.mrb[22].mxu1 }
 0xa3a   :  { %v3874_v14 = vrot.slane %v3866_v11, 4  ;;  %v3862_v15 = vadd.f32 %v3861_v13, %v3719_v6  ;;  %v3863_v16 = vpop.f32.mrb[23].mxu1 }
 0xa3b   :  { %v3880_v17 = vrot.slane %v3867_v12, 4  ;;  %v3864_v19 = vadd.f32 %v3863_v16, %v3719_v6 }
 0xa3c   :  { %v3875_v20 = vadd.f32 %v3874_v14, %v3866_v11  ;;  %v3868_v21 = vadd.f32 %v3862_v15, %v8902_v46 }
 0xa3d   :  { %v3881_v22 = vadd.f32 %v3880_v17, %v3867_v12  ;;  %v3869_v23 = vadd.f32 %v3864_v19, %v8900_v55 }
 0xa3e   :  { %v3876_v24 = vrot.slane %v3875_v20, 2  ;;  %v3886_v25 = vrot.slane %v3868_v21, 4 }
 0xa3f   :  { %v3882_v26 = vrot.slane %v3881_v22, 2  ;;  %v3892_v27 = vrot.slane %v3869_v23, 4 }
 0xa40   :  { %v3877_v28 = vadd.f32 %v3876_v24, %v3875_v20  ;;  %v3887_v38 = vadd.f32 %v3886_v25, %v3868_v21 }
 0xa41   :  { %v3883_v29 = vadd.f32 %v3882_v26, %v3881_v22  ;;  %v3893_v37 = vadd.f32 %v3892_v27, %v3869_v23 }
 0xa42   :  { %v3878_v30 = vrot.slane %v3877_v28, 1  ;;  %v3888_v31 = vrot.slane %v3887_v38, 2 }
 0xa43   :  { %v3884_v32 = vrot.slane %v3883_v29, 1  ;;  %v3894_v1 = vrot.slane %v3893_v37, 2 }
 0xa44   :  { %v3879_v54 = vadd.f32 %v3878_v30, %v3877_v28  ;;  %v3889_v35 = vadd.f32 %v3888_v31, %v3887_v38  ;;  %v3953_v38 = vpop.permute.xlu1 %3952 }
 0xa45   :  { %v3885_v36 = vadd.f32 %v3884_v32, %v3883_v29  ;;  %v3895_v33 = vadd.f32 %v3894_v1, %v3893_v37  ;;  %v3962_v1 = vpop.permute.xlu0 %3961 }
 0xa46   :  { %v3898_v46 = vmul.f32 0.125, %v3879_v54  ;;  %v3890_v34 = vrot.slane %v3889_v35, 1 }
 0xa47   :  { %v3899_v39 = vmul.f32 0.125, %v3885_v36  ;;  %v3896_v55 = vrot.slane %v3895_v33, 1 }
 0xa48   :  { %v3902_v40 = vsub.f32 %v3866_v11, %v3898_v46  ;;  %v3891_v41 = vadd.f32 %v3890_v34, %v3889_v35  ;;  %v6498_v46 = vld [vmem:[%s10665_s13 + $0x20] sm:$0xff] }
 0xa49   :  { %v3903_v42 = vsub.f32 %v3867_v12, %v3899_v39  ;;  %v3897_v18 = vadd.f32 %v3896_v55, %v3895_v33 }
 0xa4a   :  { %v3906_v43 = vmul.f32 %v3902_v40, %v3902_v40  ;;  %v3900_v44 = vmul.f32 0.125, %v3891_v41  ;;  %v6499_v41 = vld [vmem:[%s10665_s13 + $0x28] sm:$0xff] }
 0xa4b   :  { %v3907_v45 = vmul.f32 %v3903_v42, %v3903_v42  ;;  %v3901_v52 = vmul.f32 0.125, %v3897_v18  ;;  %v6501_v18 = vld [vmem:[%s10665_s13 + $0x38] sm:$0xff] }
 0xa4c   :  { %v3910_v47 = vrot.slane %v3906_v43, 4  ;;  %v3904_v48 = vsub.f32 %v3868_v21, %v3900_v44 }
 0xa4d   :  { %v3916_v49 = vrot.slane %v3907_v45, 4  ;;  %v3905_v60 = vsub.f32 %v3869_v23, %v3901_v52  ;;  %v3986_v52 = vpop.permute.xlu0 %3985 }
 0xa4e   :  { %v3911_v50 = vadd.f32 %v3910_v47, %v3906_v43  ;;  %v3908_v51 = vmul.f32 %v3904_v48, %v3904_v48 }
 0xa4f   :  { %v3917_v59 = vadd.f32 %v3916_v49, %v3907_v45  ;;  %v3909_v53 = vmul.f32 %v3905_v60, %v3905_v60  ;;  %v3981_v45 = vpop.permute.xlu1 %3980 }
 0xa50   :  { %v3912_v56 = vrot.slane %v3911_v50, 2  ;;  %v3922_v57 = vrot.slane %v3908_v51, 4 }
 0xa51   :  { %v3918_v58 = vrot.slane %v3917_v59, 2  ;;  %v3928_v62 = vrot.slane %v3909_v53, 4 }
 0xa52   :  { %v3913_v61 = vadd.f32 %v3912_v56, %v3911_v50  ;;  %v3923_v63 = vadd.f32 %v3922_v57, %v3908_v51 }
 0xa53   :  { %v3919_v2 = vadd.f32 %v3918_v58, %v3917_v59  ;;  %v3929_v3 = vadd.f32 %v3928_v62, %v3909_v53 }
 0xa54   :  { %v3914_v5 = vrot.slane %v3913_v61, 1  ;;  %v3924_v6 = vrot.slane %v3923_v63, 2 }
 0xa55   :  { %v3920_v7 = vrot.slane %v3919_v2, 1  ;;  %v3930_v8 = vrot.slane %v3929_v3, 2 }
 0xa56   :  { %v3915_v9 = vadd.f32 %v3914_v5, %v3913_v61  ;;  %v3925_v10 = vadd.f32 %v3924_v6, %v3923_v63 }
 0xa57   :  { %v3921_v11 = vadd.f32 %v3920_v7, %v3919_v2  ;;  %v3931_v12 = vadd.f32 %v3930_v8, %v3929_v3 }
 0xa58   :  { %v3934_v13 = vmul.f32 0.125, %v3915_v9  ;;  %v3926_v14 = vrot.slane %v3925_v10, 1  ;;  %v3991_v9 = vpop.permute.xlu1 %3990 }
 0xa59   :  { %v3935_v15 = vmul.f32 0.125, %v3921_v11  ;;  %v3932_v16 = vrot.slane %v3931_v12, 1 }
 0xa5a   :  { %v3938_v17 = vadd.f32 1e-05, %v3934_v13  ;;  %v3927_v19 = vadd.f32 %v3926_v14, %v3925_v10 }
 0xa5b   :  { %v3939_v20 = vadd.f32 1e-05, %v3935_v15  ;;  %v3933_v21 = vadd.f32 %v3932_v16, %v3931_v12  ;;  %v3996_v12 = vpop.permute.xlu0 %3995 }
 0xa5c   :  { %8251 = vrsqrt.f32 %v3938_v17  ;;  %v3936_v22 = vmul.f32 0.125, %v3927_v19 }
 0xa5d   :  { %8253 = vrsqrt.f32 %v3939_v20  ;;  %v3937_v23 = vmul.f32 0.125, %v3933_v21 }
 0xa5e   :  { %v3940_v24 = vadd.f32 1e-05, %v3936_v22 }
 0xa5f   :  { %v3941_v25 = vadd.f32 1e-05, %v3937_v23 }
 0xa60   :  { %8255 = vrsqrt.f32 %v3940_v24 }
 0xa61   :  { %8257 = vrsqrt.f32 %v3941_v25 }
 0xa66   :  { %v8252_v26 = vpop.eup %8251 }
 0xa67   :  { %v8254_v27 = vpop.eup %8253  ;;  %v3946_v28 = vmul.f32 %v8252_v26, %v3902_v40 }
 0xa68   :  { %v3947_v29 = vmul.f32 %v8254_v27, %v3903_v42  ;;  %v6500_v42 = vld [vmem:[%s10665_s13 + $0x30] sm:$0xff] }
 0xa69   :  { %v3955_v37 = vmul.f32 %v3953_v38, %v3946_v28 }
 0xa6a   :  { %v8256_v30 = vpop.eup %8255  ;;  %v3956_v31 = vmul.f32 %v3953_v38, %v3947_v29 }
 0xa6b   :  { %v8258_v32 = vpop.eup %8257  ;;  %v3948_v54 = vmul.f32 %v8256_v30, %v3904_v48  ;;  %v8947_v33 = vadd.f32 %v3962_v1, %v3955_v37 }
 0xa6c   :  { %v8945_v35 = vadd.f32 %v3962_v1, %v3956_v31  ;;  %v3949_v36 = vmul.f32 %v8258_v32, %v3905_v60 }
 0xa6d   :  { %v3957_v34 = vmul.f32 %v3953_v38, %v3948_v54 }
 0xa6e   :  { %4010 = vmatprep.subr.mxu0 %v8945_v35  ;;  %v3958_v39 = vmul.f32 %v3953_v38, %v3949_v36 }
 0xa6f   :  { %4011 = vmatpush1.msra.mxu0 %v8947_v33  ;;  %v8958_v40 = vadd.f32 %v3962_v1, %v3957_v34 }
 0xa70   :  { %6506 = vmatmul.mubr.msk.f32.vlgmr.msra.gmra.mrb[54].mxu0 %vm1939_vm0, %v6498_v46  ;;  %v8955_v55 = vadd.f32 %v3962_v1, %v3958_v39 }
 0xa71   :  { %4080 = vmatprep.mubr.f32.mxu0 %v8268_v4 }
 0xa72   :  { %4099 = vmatprep.subr.mxu1 %v8955_v55 }
 0xa73   :  { %4100 = vmatpush1.msra.mxu1 %v8958_v40 }
 0xa74   :  { %6507 = vmatmul.mubr.msk.f32.gmra.mrb[56].mxu0 %vm1939_vm0, %v6499_v41  ;;  %6510 = vmatmul.mubr.msk.f32.vlgmr.msra.gmra.mrb[24].mxu1 %vm1939_vm0, %v6498_v46 }
 0xa75   :  { %4086 = vmatprep.mubr.f32.mxu0 %v8268_v4  ;;  %4169 = vmatprep.mubr.f32.mxu1 %v8268_v4 }
 0xa78   :  { %6508 = vmatmul.mubr.msk.f32.gmra.mrb[58].mxu0 %vm1939_vm0, %v6500_v42  ;;  %6511 = vmatmul.mubr.msk.f32.gmra.mrb[26].mxu1 %vm1939_vm0, %v6499_v41 }
 0xa79   :  { %4092 = vmatprep.mubr.f32.mxu0 %v8268_v4  ;;  %4175 = vmatprep.mubr.f32.mxu1 %v8268_v4 }
 0xa7c   :  { %6509 = vmatmul.mubr.msk.f32.gmra.mrb[60].mxu0 %vm1939_vm0, %v6501_v18  ;;  %6512 = vmatmul.mubr.msk.f32.gmra.mrb[28].mxu1 %vm1939_vm0, %v6500_v42 }
 0xa7d   :  { %4181 = vmatprep.mubr.f32.mxu1 %v8268_v4  ;;  %4280 = vmatprep.mubr.f32.mxu0 %v8268_v4 }
 0xa80   :  { %6513 = vmatmul.mubr.msk.f32.gmra.mrb[30].mxu1 %vm1939_vm0, %v6501_v18 }
 0xa81   :  { %4351 = vmatprep.mubr.f32.mxu1 %v8268_v4 }
 0xb43   :  { %v4076_v43 = vpop.f32.mrb[54].mxu0 }
 0xb44   :  { %v4078_v44 = vpop.f32.mrb[55].mxu0  ;;  %v4077_v47 = vadd.f32 %v4076_v43, %v3981_v45  ;;  %v6514_v43 = vld [vmem:[%s10666_s15 + $0x8] sm:$0xff] }
 0xb45   :  { %v4079_v48 = vadd.f32 %v4078_v44, %v3981_v45 }
 0xb46   :  { %v4188_v56 = vmax.f32 %v4077_v47, 0.0  ;;  %v4483_v47 = vld [vmem:[%s10667_s19 + $0x88] sm:$0xff] }
 0xb47   :  { %v4082_v49 = vpop.f32.mrb[56].mxu0  ;;  %v4165_v60 = vpop.f32.mrb[24].mxu1  ;;  %v4189_v62 = vmax.f32 %v4079_v48, 0.0  ;;  %v4514_v48 = vld [vmem:[%s10667_s19 + $0x180] sm:$0xff] }
 0xb48   :  { %v4083_v50 = vadd.f32 %v4082_v49, %v3986_v52  ;;  %v4084_v51 = vpop.f32.mrb[57].mxu0  ;;  %v4167_v59 = vpop.f32.mrb[25].mxu1  ;;  %v4166_v58 = vadd.f32 %v4165_v60, %v3981_v45  ;;  %v4515_v60 = vld [vmem:[%s10667_s19 + $0x188] sm:$0xff] }
 0xb49   :  { %v4085_v53 = vadd.f32 %v4084_v51, %v3986_v52  ;;  %v4168_v63 = vadd.f32 %v4167_v59, %v3981_v45  ;;  %v4467_v51 = vld [vmem:[%s10667_s19 + $0x8] sm:$0xff]  ;;  %v7664_v59 = vpack.c.bf16 %v4515_v60, %v4514_v48  ;;  %v4492_v48 = vld [vmem:[%s10667_s19 + $0xd0] sm:$0xff] }
 0xb4a   :  { %v4192_v57 = vmax.f32 %v4083_v50, 0.0  ;;  %v4190_v13 = vmax.f32 %v4166_v58, 0.0  ;;  %v4466_v50 = vld [vmem:[%s10667_s19] sm:$0xff]  ;;  %v4524_v60 = vld [vmem:[%s10667_s19 + $0x1d0] sm:$0xff] }
 0xb4b   :  { %v4193_v61 = vmax.f32 %v4085_v53, 0.0  ;;  %v4088_v2 = vpop.f32.mrb[58].mxu0  ;;  %v4171_v3 = vpop.f32.mrb[26].mxu1  ;;  %v4191_v16 = vmax.f32 %v4168_v63, 0.0  ;;  %v7634_v53 = vpack.c.bf16 %v4467_v51, %v4466_v50  ;;  %v4516_v63 = vld [vmem:[%s10667_s19 + $0x190] sm:$0xff]  ;;  %v4525_v51 = vld [vmem:[%s10667_s19 + $0x1d8] sm:$0xff] }
 0xb4c   :  { %v7618_v5 = vpack.c.bf16 %v4192_v57, %v4188_v56  ;;  %v4172_v6 = vadd.f32 %v4171_v3, %v3986_v52  ;;  %v4090_v7 = vpop.f32.mrb[59].mxu0  ;;  %v4173_v8 = vpop.f32.mrb[27].mxu1  ;;  %v4089_v14 = vadd.f32 %v4088_v2, %v3991_v9  ;;  %v4498_v56 = vld [vmem:[%s10667_s19 + $0x100] sm:$0xff]  ;;  %v4499_v57 = vld [vmem:[%s10667_s19 + $0x108] sm:$0xff]  ;;  %v4517_v3 = vld [vmem:[%s10667_s19 + $0x198] sm:$0xff] }
 0xb4d   :  { %v7616_v10 = vpack.c.bf16 %v4193_v61, %v4189_v62  ;;  %v4174_v11 = vadd.f32 %v4173_v8, %v3986_v52  ;;  %v4091_v17 = vadd.f32 %v4090_v7, %v3991_v9  ;;  %v4482_v52 = vld [vmem:[%s10667_s19 + $0x80] sm:$0xff]  ;;  %v7666_v58 = vpack.c.bf16 %v4499_v57, %v4498_v56  ;;  %v4484_v62 = vld [vmem:[%s10667_s19 + $0x90] sm:$0xff]  ;;  %v4485_v61 = vld [vmem:[%s10667_s19 + $0x98] sm:$0xff] }
 0xb4e   :  { %v4194_v15 = vmax.f32 %v4172_v6, 0.0  ;;  %v4196_v28 = vmax.f32 %v4089_v14, 0.0  ;;  %v7632_v49 = vpack.c.bf16 %v4483_v47, %v4482_v52  ;;  %v7636_v2 = vpack.c.bf16 %v4485_v61, %v4484_v62  ;;  %v4469_v6 = vld [vmem:[%s10667_s19 + $0x18] sm:$0xff]  ;;  %v4518_v14 = vld [vmem:[%s10667_s19 + $0x1a0] sm:$0xff]  ;;  %v4507_v52 = vld [vmem:[%s10667_s19 + $0x148] sm:$0xff] }
 0xb4f   :  { %v4195_v19 = vmax.f32 %v4174_v11, 0.0  ;;  %v4094_v20 = vpop.f32.mrb[60].mxu0  ;;  %v4177_v21 = vpop.f32.mrb[28].mxu1  ;;  %7617 = vmatprep.subr.bf16.mxu0 %v7616_v10  ;;  %v4197_v37 = vmax.f32 %v4091_v17, 0.0  ;;  %v7668_v7 = vpack.c.bf16 %v4517_v3, %v4516_v63  ;;  %v4501_v10 = vld [vmem:[%s10667_s19 + $0x118] sm:$0xff]  ;;  %v4470_v17 = vld [vmem:[%s10667_s19 + $0x20] sm:$0xff]  ;;  %v7684_v56 = vpack.c.bf16 %v4525_v51, %v4524_v60 }
 0xb50   :  { %v7626_v22 = vpack.c.bf16 %v4194_v15, %v4190_v13  ;;  %v4095_v23 = vadd.f32 %v4094_v20, %v3996_v12  ;;  %v4096_v24 = vpop.f32.mrb[61].mxu0  ;;  %v4179_v25 = vpop.f32.mrb[29].mxu1  ;;  %7619 = vmatpush1.bf16.msra.mxu0 %v7618_v5  ;;  %v4178_v29 = vadd.f32 %v4177_v21, %v3991_v9  ;;  %v4468_v5 = vld [vmem:[%s10667_s19 + $0x10] sm:$0xff]  ;;  %v4487_v13 = vld [vmem:[%s10667_s19 + $0xa8] sm:$0xff]  ;;  %v4509_v62 = vld [vmem:[%s10667_s19 + $0x158] sm:$0xff] }
 0xb51   :  { %v7624_v26 = vpack.c.bf16 %v4195_v19, %v4191_v16  ;;  %v4097_v27 = vadd.f32 %v4096_v24, %v3996_v12  ;;  %v4180_v31 = vadd.f32 %v4179_v25, %v3991_v9  ;;  %v7638_v8 = vpack.c.bf16 %v4469_v6, %v4468_v5  ;;  %v4500_v9 = vld [vmem:[%s10667_s19 + $0x110] sm:$0xff]  ;;  %v4519_v16 = vld [vmem:[%s10667_s19 + $0x1a8] sm:$0xff]  ;;  %v4494_v63 = vld [vmem:[%s10667_s19 + $0xe0] sm:$0xff] }
 0xb52   :  { %v4200_v38 = vmax.f32 %v4095_v23, 0.0  ;;  %v4198_v39 = vmax.f32 %v4178_v29, 0.0  ;;  %v7670_v11 = vpack.c.bf16 %v4501_v10, %v4500_v9  ;;  %v4471_v19 = vld [vmem:[%s10667_s19 + $0x28] sm:$0xff]  ;;  %v7672_v20 = vpack.c.bf16 %v4519_v16, %v4518_v14  ;;  %v4488_v25 = vld [vmem:[%s10667_s19 + $0xb0] sm:$0xff]  ;;  %v4526_v3 = vld [vmem:[%s10667_s19 + $0x1e0] sm:$0xff] }
 0xb53   :  { %v4201_v30 = vmax.f32 %v4097_v27, 0.0  ;;  %v4183_v32 = vpop.f32.mrb[30].mxu1  ;;  %7625 = vmatprep.subr.bf16.mxu1 %v7624_v26  ;;  %v4199_v42 = vmax.f32 %v4180_v31, 0.0  ;;  %v7642_v21 = vpack.c.bf16 %v4471_v19, %v4470_v17  ;;  %v4503_v23 = vld [vmem:[%s10667_s19 + $0x128] sm:$0xff]  ;;  %v4489_v26 = vld [vmem:[%s10667_s19 + $0xb8] sm:$0xff]  ;;  %v4520_v27 = vld [vmem:[%s10667_s19 + $0x1b0] sm:$0xff] }
 0xb54   :  { %v7622_v1 = vpack.c.bf16 %v4200_v38, %v4196_v28  ;;  %v4184_v54 = vadd.f32 %v4183_v32, %v3996_v12  ;;  %v4185_v36 = vpop.f32.mrb[31].mxu1  ;;  %7627 = vmatpush1.bf16.msra.mxu1 %v7626_v22  ;;  %v4502_v22 = vld [vmem:[%s10667_s19 + $0x120] sm:$0xff]  ;;  %v7644_v28 = vpack.c.bf16 %v4489_v26, %v4488_v25  ;;  %v4521_v38 = vld [vmem:[%s10667_s19 + $0x1b8] sm:$0xff]  ;;  %v4472_v29 = vld [vmem:[%s10667_s19 + $0x30] sm:$0xff] }
 0xb55   :  { %v7620_v46 = vpack.c.bf16 %v4201_v30, %v4197_v37  ;;  %v4186_v34 = vadd.f32 %v4185_v36, %v3996_v12  ;;  %v4486_v12 = vld [vmem:[%s10667_s19 + $0xa0] sm:$0xff]  ;;  %v7674_v24 = vpack.c.bf16 %v4503_v23, %v4502_v22  ;;  %v4473_v37 = vld [vmem:[%s10667_s19 + $0x38] sm:$0xff]  ;;  %v7676_v30 = vpack.c.bf16 %v4521_v38, %v4520_v27  ;;  %v4504_v32 = vld [vmem:[%s10667_s19 + $0x130] sm:$0xff] }
 0xb56   :  { %v4202_v41 = vmax.f32 %v4184_v54, 0.0  ;;  %v7640_v15 = vpack.c.bf16 %v4487_v13, %v4486_v12  ;;  %v7646_v31 = vpack.c.bf16 %v4473_v37, %v4472_v29  ;;  %v4490_v36 = vld [vmem:[%s10667_s19 + $0xc0] sm:$0xff]  ;;  %v4527_v6 = vld [vmem:[%s10667_s19 + $0x1e8] sm:$0xff]  ;;  %v4496_v13 = vld [vmem:[%s10667_s19 + $0xf0] sm:$0xff] }
 0xb57   :  { %v4203_v18 = vmax.f32 %v4186_v34, 0.0  ;;  %7621 = vmatprep.subr.bf16.mxu0 %v7620_v46  ;;  %v4491_v46 = vld [vmem:[%s10667_s19 + $0xc8] sm:$0xff]  ;;  %v4522_v34 = vld [vmem:[%s10667_s19 + $0x1c0] sm:$0xff]  ;;  %v7688_v9 = vpack.c.bf16 %v4527_v6, %v4526_v3  ;;  %v4528_v16 = vld [vmem:[%s10667_s19 + $0x1f0] sm:$0xff] }
 0xb58   :  { %v7630_v44 = vpack.c.bf16 %v4202_v41, %v4198_v39  ;;  %7623 = vmatpush1.bf16.msra.mxu0 %v7622_v1  ;;  %v4505_v1 = vld [vmem:[%s10667_s19 + $0x138] sm:$0xff]  ;;  %v7648_v39 = vpack.c.bf16 %v4491_v46, %v4490_v36  ;;  %v4523_v41 = vld [vmem:[%s10667_s19 + $0x1c8] sm:$0xff]  ;;  %v4512_v23 = vld [vmem:[%s10667_s19 + $0x170] sm:$0xff] }
 0xb59   :  { %v7628_v45 = vpack.c.bf16 %v4203_v18, %v4199_v42  ;;  %7633 = vmatprep.subr.bf16.mxu0 %v7632_v49  ;;  %v7678_v54 = vpack.c.bf16 %v4505_v1, %v4504_v32  ;;  %v4474_v42 = vld [vmem:[%s10667_s19 + $0x40] sm:$0xff]  ;;  %v4475_v18 = vld [vmem:[%s10667_s19 + $0x48] sm:$0xff]  ;;  %v4493_v49 = vld [vmem:[%s10667_s19 + $0xd8] sm:$0xff] }
 0xb5a   :  { %v7652_v50 = vpack.c.bf16 %v4493_v49, %v4492_v48  ;;  %v4511_v12 = vld [vmem:[%s10667_s19 + $0x168] sm:$0xff]  ;;  %v4529_v17 = vld [vmem:[%s10667_s19 + $0x1f8] sm:$0xff]  ;;  %v6536_v27 = vld [vmem:[%s10667_s19 + $0x280] sm:$0xff] }
 0xb5b   :  { %6516 = vmatmul.mubr.msk.f32.vlgmr.msra.gmra.mrb[62].mxu0 %vm2940_vm2, %v6514_v43  ;;  %7629 = vmatprep.subr.bf16.mxu1 %v7628_v45  ;;  %v4506_v45 = vld [vmem:[%s10667_s19 + $0x140] sm:$0xff]  ;;  %v4481_v22 = vld [vmem:[%s10667_s19 + $0x78] sm:$0xff]  ;;  %v6569_v37 = vld [vmem:[%s10667_s19 + $0x388] sm:$0xff] }
 0xb5c   :  { %7631 = vmatpush1.bf16.msra.mxu1 %v7630_v44  ;;  %7635 = vmatpush3.bf16.msra.mxu0 %v7634_v53  ;;  %v7650_v44 = vpack.c.bf16 %v4475_v18, %v4474_v42  ;;  %v7682_v47 = vpack.c.bf16 %v4507_v52, %v4506_v45  ;;  %v4477_v53 = vld [vmem:[%s10667_s19 + $0x58] sm:$0xff]  ;;  %v6568_v38 = vld [vmem:[%s10667_s19 + $0x380] sm:$0xff] }
 0xb5d   :  { %7665 = vmatprep.subr.bf16.mxu1 %v7664_v59  ;;  %7637 = vmatprep.subr.bf16.mxu0 %v7636_v2  ;;  %v4476_v59 = vld [vmem:[%s10667_s19 + $0x50] sm:$0xff]  ;;  %v4495_v2 = vld [vmem:[%s10667_s19 + $0xe8] sm:$0xff]  ;;  %v4513_v25 = vld [vmem:[%s10667_s19 + $0x178] sm:$0xff] }
 0xb5e   :  { %v7654_v57 = vpack.c.bf16 %v4477_v53, %v4476_v59  ;;  %v7656_v5 = vpack.c.bf16 %v4495_v2, %v4494_v63  ;;  %v7694_v26 = vpack.c.bf16 %v4513_v25, %v4512_v23 }
 0xb5f   :  { %6517 = vmatmul.mubr.msk.f32.vlgmr.msra.gmra.mrb[32].mxu1 %vm2940_vm2, %v6514_v43  ;;  %v7680_v43 = vpack.c.bf16 %v4523_v41, %v4522_v34 }
 0xb60   :  { %7667 = vmatpush3.bf16.msra.mxu1 %v7666_v58  ;;  %7639 = vmatpush3.bf16.msra.mxu0 %v7638_v8  ;;  %v4508_v58 = vld [vmem:[%s10667_s19 + $0x150] sm:$0xff]  ;;  %v4479_v8 = vld [vmem:[%s10667_s19 + $0x68] sm:$0xff] }
 0xb61   :  { %7669 = vmatprep.subr.bf16.mxu1 %v7668_v7  ;;  %7641 = vmatprep.subr.bf16.mxu0 %v7640_v15  ;;  %v7686_v61 = vpack.c.bf16 %v4509_v62, %v4508_v58  ;;  %v4478_v7 = vld [vmem:[%s10667_s19 + $0x60] sm:$0xff]  ;;  %v4497_v15 = vld [vmem:[%s10667_s19 + $0xf8] sm:$0xff] }
 0xb62   :  { %v7658_v10 = vpack.c.bf16 %v4479_v8, %v4478_v7  ;;  %v7660_v19 = vpack.c.bf16 %v4497_v15, %v4496_v13 }
 0xb64   :  { %7671 = vmatpush3.bf16.msra.mxu1 %v7670_v11  ;;  %7643 = vmatpush3.bf16.msra.mxu0 %v7642_v21  ;;  %v4510_v11 = vld [vmem:[%s10667_s19 + $0x160] sm:$0xff]  ;;  %v4480_v21 = vld [vmem:[%s10667_s19 + $0x70] sm:$0xff] }
 0xb65   :  { %7673 = vmatprep.subr.bf16.mxu1 %v7672_v20  ;;  %7645 = vmatprep.subr.bf16.mxu0 %v7644_v28  ;;  %v7690_v14 = vpack.c.bf16 %v4511_v12, %v4510_v11  ;;  %v7692_v20 = vpack.c.bf16 %v4529_v17, %v4528_v16  ;;  %v6537_v28 = vld [vmem:[%s10667_s19 + $0x288] sm:$0xff] }
 0xb66   :  { %v7696_v29 = vpack.c.bf16 %v6537_v28, %v6536_v27 }
 0xb68   :  { %7675 = vmatpush3.bf16.msra.mxu1 %v7674_v24  ;;  %7647 = vmatpush3.bf16.msra.mxu0 %v7646_v31  ;;  %v7662_v24 = vpack.c.bf16 %v4481_v22, %v4480_v21  ;;  %v4211_v31 = vpop.permute.xlu1 %4210 }
 0xb69   :  { %7677 = vmatprep.subr.bf16.mxu1 %v7676_v30  ;;  %7649 = vmatprep.subr.bf16.mxu0 %v7648_v39  ;;  %v7728_v30 = vpack.c.bf16 %v6569_v37, %v6568_v38 }
 0xb6c   :  { %7679 = vmatpush3.bf16.msra.mxu1 %v7678_v54  ;;  %7651 = vmatpush3.bf16.msra.mxu0 %v7650_v44 }
 0xb6d   :  { %7681 = vmatprep.subr.bf16.mxu1 %v7680_v43  ;;  %7653 = vmatprep.subr.bf16.mxu0 %v7652_v50 }
 0xb70   :  { %7683 = vmatpush3.bf16.msra.mxu1 %v7682_v47  ;;  %7655 = vmatpush3.bf16.msra.mxu0 %v7654_v57 }
 0xb71   :  { %7685 = vmatprep.subr.bf16.mxu1 %v7684_v56  ;;  %7657 = vmatprep.subr.bf16.mxu0 %v7656_v5 }
 0xb74   :  { %7687 = vmatpush3.bf16.msra.mxu1 %v7686_v61  ;;  %7659 = vmatpush3.bf16.msra.mxu0 %v7658_v10 }
 0xb75   :  { %7689 = vmatprep.subr.bf16.mxu1 %v7688_v9  ;;  %7661 = vmatprep.subr.bf16.mxu0 %v7660_v19 }
 0xb78   :  { %7691 = vmatpush3.bf16.msra.mxu1 %v7690_v14  ;;  %7663 = vmatpush3.bf16.msra.mxu0 %v7662_v24 }
 0xb79   :  { %7693 = vmatprep.subr.bf16.mxu1 %v7692_v20  ;;  %7697 = vmatprep.subr.bf16.mxu0 %v7696_v29 }
 0xb7c   :  { %7695 = vmatpush3.bf16.msra.mxu1 %v7694_v26 }
 0xb7d   :  { %7729 = vmatprep.subr.bf16.mxu1 %v7728_v30 }
 0xc2e   :  { %v4282_v32 = vpop.f32.mrb[62].mxu0 }
 0xc2f   :  { %v4283_v1 = vadd.f32 %v4282_v32, %v4211_v31  ;;  %v4284_v54 = vpop.f32.mrb[63].mxu0 }
 0xc30   :  { %v4285_v36 = vadd.f32 %v4284_v54, %v4211_v31 }
 0xc31   :  { %v4358_v46 = vadd.f32 %v4283_v1, %v8947_v33 }
 0xc32   :  { %v4359_v34 = vadd.f32 %v4285_v36, %v8945_v35  ;;  %v4353_v39 = vpop.f32.mrb[32].mxu1 }
 0xc33   :  { %v4366_v41 = vrot.slane %v4358_v46, 4  ;;  %v4354_v42 = vadd.f32 %v4353_v39, %v4211_v31  ;;  %v4355_v18 = vpop.f32.mrb[33].mxu1 }
 0xc34   :  { %v4372_v43 = vrot.slane %v4359_v34, 4  ;;  %v4356_v44 = vadd.f32 %v4355_v18, %v4211_v31 }
 0xc35   :  { %v4367_v45 = vadd.f32 %v4366_v41, %v4358_v46  ;;  %v4360_v52 = vadd.f32 %v4354_v42, %v8958_v40 }
 0xc36   :  { %v4373_v47 = vadd.f32 %v4372_v43, %v4359_v34  ;;  %v4361_v48 = vadd.f32 %v4356_v44, %v8955_v55 }
 0xc37   :  { %v4368_v49 = vrot.slane %v4367_v45, 2  ;;  %v4378_v60 = vrot.slane %v4360_v52, 4 }
 0xc38   :  { %v4374_v50 = vrot.slane %v4373_v47, 2  ;;  %v4384_v51 = vrot.slane %v4361_v48, 4 }
 0xc39   :  { %v4369_v59 = vadd.f32 %v4368_v49, %v4367_v45  ;;  %v4379_v33 = vadd.f32 %v4378_v60, %v4360_v52 }
 0xc3a   :  { %v4375_v53 = vadd.f32 %v4374_v50, %v4373_v47  ;;  %v4385_v35 = vadd.f32 %v4384_v51, %v4361_v48 }
 0xc3b   :  { %v4370_v56 = vrot.slane %v4369_v59, 1  ;;  %v4380_v57 = vrot.slane %v4379_v33, 2 }
 0xc3c   :  { %v4376_v58 = vrot.slane %v4375_v53, 1  ;;  %v4386_v62 = vrot.slane %v4385_v35, 2 }
 0xc3d   :  { %v4371_v61 = vadd.f32 %v4370_v56, %v4369_v59  ;;  %v4381_v63 = vadd.f32 %v4380_v57, %v4379_v33  ;;  %v4445_v33 = vpop.permute.xlu0 %4444  ;;  %v4454_v57 = vpop.permute.xlu1 %4453 }
 0xc3e   :  { %v4377_v2 = vadd.f32 %v4376_v58, %v4375_v53  ;;  %v4387_v3 = vadd.f32 %v4386_v62, %v4385_v35 }
 0xc3f   :  { %v4390_v40 = vmul.f32 0.125, %v4371_v61  ;;  %v4382_v5 = vrot.slane %v4381_v63, 1 }
 0xc40   :  { %v4391_v6 = vmul.f32 0.125, %v4377_v2  ;;  %v4388_v55 = vrot.slane %v4387_v3, 1 }
 0xc41   :  { %v4394_v7 = vsub.f32 %v4358_v46, %v4390_v40  ;;  %v4383_v8 = vadd.f32 %v4382_v5, %v4381_v63  ;;  %v4531_v5 = vlaneseq }
 0xc42   :  { %v4395_v9 = vsub.f32 %v4359_v34, %v4391_v6  ;;  %v4389_v10 = vadd.f32 %v4388_v55, %v4387_v3 }
 0xc43   :  { %v4398_v11 = vmul.f32 %v4394_v7, %v4394_v7  ;;  %v4392_v12 = vmul.f32 0.125, %v4383_v8 }
 0xc44   :  { %v4399_v13 = vmul.f32 %v4395_v9, %v4395_v9  ;;  %v4393_v14 = vmul.f32 0.125, %v4389_v10  ;;  %v6520_v10 = vld [vmem:[%s10667_s19 + $0x200] sm:$0xff] }
 0xc45   :  { %v4402_v15 = vrot.slane %v4398_v11, 4  ;;  %v4396_v16 = vsub.f32 %v4360_v52, %v4392_v12 }
 0xc46   :  { %v4408_v17 = vrot.slane %v4399_v13, 4  ;;  %v4397_v19 = vsub.f32 %v4361_v48, %v4393_v14  ;;  %v6521_v14 = vld [vmem:[%s10667_s19 + $0x208] sm:$0xff] }
 0xc47   :  { %v4403_v20 = vadd.f32 %v4402_v15, %v4398_v11  ;;  %v4400_v21 = vmul.f32 %v4396_v16, %v4396_v16  ;;  %v6552_v15 = vld [vmem:[%s10667_s19 + $0x300] sm:$0xff] }
 0xc48   :  { %v4409_v22 = vadd.f32 %v4408_v17, %v4399_v13  ;;  %v4401_v23 = vmul.f32 %v4397_v19, %v4397_v19  ;;  %v6538_v17 = vld [vmem:[%s10667_s19 + $0x290] sm:$0xff] }
 0xc49   :  { %v4404_v24 = vrot.slane %v4403_v20, 2  ;;  %v4414_v25 = vrot.slane %v4400_v21, 4 }
 0xc4a   :  { %v4410_v26 = vrot.slane %v4409_v22, 2  ;;  %v4420_v27 = vrot.slane %v4401_v23, 4 }
 0xc4b   :  { %v4405_v28 = vadd.f32 %v4404_v24, %v4403_v20  ;;  %v4415_v38 = vadd.f32 %v4414_v25, %v4400_v21  ;;  %v7698_v21 = vpack.c.bf16 %v6521_v14, %v6520_v10  ;;  %v6571_v24 = vld [vmem:[%s10667_s19 + $0x398] sm:$0xff]  ;;  %v6560_v10 = vld [vmem:[%s10667_s19 + $0x340] sm:$0xff]  ;;  %v6561_v14 = vld [vmem:[%s10667_s19 + $0x348] sm:$0xff] }
 0xc4c   :  { %v4411_v29 = vadd.f32 %v4410_v26, %v4409_v22  ;;  %v4421_v37 = vadd.f32 %v4420_v27, %v4401_v23  ;;  %v6570_v23 = vld [vmem:[%s10667_s19 + $0x390] sm:$0xff] }
 0xc4d   :  { %v4406_v30 = vrot.slane %v4405_v28, 1  ;;  %v4416_v31 = vrot.slane %v4415_v38, 2 }
 0xc4e   :  { %v4412_v32 = vrot.slane %v4411_v29, 1  ;;  %v4422_v1 = vrot.slane %v4421_v37, 2 }
 0xc4f   :  { %v4407_v54 = vadd.f32 %v4406_v30, %v4405_v28  ;;  %v4417_v36 = vadd.f32 %v4416_v31, %v4415_v38  ;;  %v6554_v30 = vld [vmem:[%s10667_s19 + $0x310] sm:$0xff]  ;;  %v6555_v31 = vld [vmem:[%s10667_s19 + $0x318] sm:$0xff] }
 0xc50   :  { %v4413_v46 = vadd.f32 %v4412_v32, %v4411_v29  ;;  %v4423_v34 = vadd.f32 %v4422_v1, %v4421_v37  ;;  %v6522_v29 = vld [vmem:[%s10667_s19 + $0x210] sm:$0xff]  ;;  %v6523_v37 = vld [vmem:[%s10667_s19 + $0x218] sm:$0xff]  ;;  %v6540_v32 = vld [vmem:[%s10667_s19 + $0x2a0] sm:$0xff] }
 0xc51   :  { %v4426_v39 = vmul.f32 0.125, %v4407_v54  ;;  %v4418_v41 = vrot.slane %v4417_v36, 1  ;;  %v7732_v54 = vpack.c.bf16 %v6571_v24, %v6570_v23  ;;  %v6531_v23 = vld [vmem:[%s10667_s19 + $0x258] sm:$0xff] }
 0xc52   :  { %v4427_v42 = vmul.f32 0.125, %v4413_v46  ;;  %v4424_v18 = vrot.slane %v4423_v34, 1  ;;  %v6572_v46 = vld [vmem:[%s10667_s19 + $0x3a0] sm:$0xff] }
 0xc53   :  { %v4430_v43 = vadd.f32 1e-05, %v4426_v39  ;;  %v4419_v44 = vadd.f32 %v4418_v41, %v4417_v36  ;;  %v6541_v36 = vld [vmem:[%s10667_s19 + $0x2a8] sm:$0xff] }
 0xc54   :  { %v4431_v45 = vadd.f32 1e-05, %v4427_v42  ;;  %v4425_v52 = vadd.f32 %v4424_v18, %v4423_v34  ;;  %v6573_v34 = vld [vmem:[%s10667_s19 + $0x3a8] sm:$0xff]  ;;  %v7702_v42 = vpack.c.bf16 %v6523_v37, %v6522_v29  ;;  %v7734_v18 = vpack.c.bf16 %v6555_v31, %v6554_v30  ;;  %v6580_v37 = vld [vmem:[%s10667_s19 + $0x3e0] sm:$0xff] }
 0xc55   :  { %8259 = vrsqrt.f32 %v4430_v43  ;;  %v4428_v47 = vmul.f32 0.125, %v4419_v44  ;;  %v6524_v43 = vld [vmem:[%s10667_s19 + $0x220] sm:$0xff]  ;;  %v6525_v44 = vld [vmem:[%s10667_s19 + $0x228] sm:$0xff] }
 0xc56   :  { %8261 = vrsqrt.f32 %v4431_v45  ;;  %v4429_v48 = vmul.f32 0.125, %v4425_v52  ;;  %v7704_v45 = vpack.c.bf16 %v6541_v36, %v6540_v32  ;;  %v7736_v52 = vpack.c.bf16 %v6573_v34, %v6572_v46  ;;  %v6549_v29 = vld [vmem:[%s10667_s19 + $0x2e8] sm:$0xff]  ;;  %v6564_v34 = vld [vmem:[%s10667_s19 + $0x360] sm:$0xff] }
 0xc57   :  { %v4432_v49 = vadd.f32 1e-05, %v4428_v47  ;;  %v6556_v47 = vld [vmem:[%s10667_s19 + $0x320] sm:$0xff]  ;;  %v6581_v30 = vld [vmem:[%s10667_s19 + $0x3e8] sm:$0xff] }
 0xc58   :  { %v4433_v60 = vadd.f32 1e-05, %v4429_v48  ;;  %v6557_v48 = vld [vmem:[%s10667_s19 + $0x328] sm:$0xff]  ;;  %v7752_v46 = vpack.c.bf16 %v6581_v30, %v6580_v37  ;;  %v6588_v37 = vld [vmem:[%s10667_s19 + $0x420] sm:$0xff] }
 0xc59   :  { %8263 = vrsqrt.f32 %v4432_v49  ;;  %v6542_v49 = vld [vmem:[%s10667_s19 + $0x2b0] sm:$0xff]  ;;  %v6589_v30 = vld [vmem:[%s10667_s19 + $0x428] sm:$0xff] }
 0xc5a   :  { %8265 = vrsqrt.f32 %v4433_v60  ;;  %v6543_v60 = vld [vmem:[%s10667_s19 + $0x2b8] sm:$0xff] }
 0xc5f   :  { %v8260_v50 = vpop.eup %8259 }
 0xc60   :  { %v8262_v51 = vpop.eup %8261  ;;  %v4438_v59 = vmul.f32 %v8260_v50, %v4394_v7  ;;  %v4532_v7 = vshrl.u32 %v4531_v5, 7  ;;  %v6574_v50 = vld [vmem:[%s10667_s19 + $0x3b0] sm:$0xff] }
 0xc61   :  { %v4439_v53 = vmul.f32 %v8262_v51, %v4395_v9  ;;  %v6575_v51 = vld [vmem:[%s10667_s19 + $0x3b8] sm:$0xff] }
 0xc62   :  { %v4447_v35 = vmul.f32 %v4445_v33, %v4438_v59  ;;  %v9198_v9 = vsub.s32 1, %v4532_v7  ;;  %v9203_v11 = vsub.s32 3, %v4532_v7  ;;  %v9205_v12 = vsub.s32 0, %v4532_v7 }
 0xc63   :  { %v8264_v56 = vpop.eup %8263  ;;  %v4448_v58 = vmul.f32 %v4445_v33, %v4439_v53  ;;  %v9207_v13 = vsub.s32 2, %v4532_v7  ;;  %v7706_v59 = vpack.c.bf16 %v6525_v44, %v6524_v43  ;;  %v6526_v53 = vld [vmem:[%s10667_s19 + $0x230] sm:$0xff]  ;;  %v6583_v43 = vld [vmem:[%s10667_s19 + $0x3f8] sm:$0xff] }
 0xc64   :  { %v8266_v62 = vpop.eup %8265  ;;  %v4456_v61 = vadd.f32 %v4454_v57, %v4447_v35  ;;  %v4440_v63 = vmul.f32 %v8264_v56, %v4396_v16  ;;  %v6553_v16 = vld [vmem:[%s10667_s19 + $0x308] sm:$0xff]  ;;  %v6527_v35 = vld [vmem:[%s10667_s19 + $0x238] sm:$0xff]  ;;  %v7708_v56 = vpack.c.bf16 %v6543_v60, %v6542_v49  ;;  %v6566_v60 = vld [vmem:[%s10667_s19 + $0x370] sm:$0xff] }
 0xc65   :  { %v4457_v2 = vadd.f32 %v4454_v57, %v4448_v58  ;;  %v4441_v3 = vmul.f32 %v8266_v62, %v4397_v19  ;;  %v6539_v19 = vld [vmem:[%s10667_s19 + $0x298] sm:$0xff]  ;;  %v7730_v22 = vpack.c.bf16 %v6553_v16, %v6552_v15  ;;  %v6558_v58 = vld [vmem:[%s10667_s19 + $0x330] sm:$0xff] }
 0xc66   :  { %4460 = vst [vmem:[#allocation3] sm:$0xff] %v4456_v61  ;;  %v4449_v40 = vmul.f32 %v4445_v33, %v4440_v63  ;;  %v7700_v1 = vpack.c.bf16 %v6539_v19, %v6538_v17  ;;  %v6559_v62 = vld [vmem:[%s10667_s19 + $0x338] sm:$0xff]  ;;  %v6544_v61 = vld [vmem:[%s10667_s19 + $0x2c0] sm:$0xff]  ;;  %v6545_v63 = vld [vmem:[%s10667_s19 + $0x2c8] sm:$0xff] }
 0xc67   :  { %4461 = vst [vmem:[#allocation3 + $0x8] sm:$0xff] %v4457_v2  ;;  %v4450_v6 = vmul.f32 %v4445_v33, %v4441_v3  ;;  %v7738_v33 = vpack.c.bf16 %v6557_v48, %v6556_v47  ;;  %v6576_v2 = vld [vmem:[%s10667_s19 + $0x3c0] sm:$0xff]  ;;  %v6577_v3 = vld [vmem:[%s10667_s19 + $0x3c8] sm:$0xff]  ;;  %v7742_v5 = vpack.c.bf16 %v6559_v62, %v6558_v58  ;;  %v6546_v15 = vld [vmem:[%s10667_s19 + $0x2d0] sm:$0xff] }
 0xc68   :  { %v4458_v55 = vadd.f32 %v4454_v57, %v4449_v40  ;;  %v7710_v40 = vpack.c.bf16 %v6527_v35, %v6526_v53  ;;  %v7744_v7 = vpack.c.bf16 %v6577_v3, %v6576_v2  ;;  %v6547_v16 = vld [vmem:[%s10667_s19 + $0x2d8] sm:$0xff]  ;;  %v6578_v17 = vld [vmem:[%s10667_s19 + $0x3d0] sm:$0xff]  ;;  %v6633_v53 = vld [vmem:[%s10667_s19 + $0x588] sm:$0xff] }
 0xc69   :  { %v4459_v8 = vadd.f32 %v4454_v57, %v4450_v6  ;;  %v7740_v57 = vpack.c.bf16 %v6575_v51, %v6574_v50  ;;  %v6528_v6 = vld [vmem:[%s10667_s19 + $0x240] sm:$0xff]  ;;  %v6579_v19 = vld [vmem:[%s10667_s19 + $0x3d8] sm:$0xff]  ;;  %v7716_v24 = vpack.c.bf16 %v6547_v16, %v6546_v15  ;;  %v6617_v2 = vld [vmem:[%s10667_s19 + $0x508] sm:$0xff] }
 0xc6a   :  { %4462 = vst [vmem:[#allocation3 + $0x10] sm:$0xff] %v4458_v55  ;;  %v6529_v55 = vld [vmem:[%s10667_s19 + $0x248] sm:$0xff]  ;;  %v6535_v47 = vld [vmem:[%s10667_s19 + $0x278] sm:$0xff]  ;;  %v6600_v51 = vld [vmem:[%s10667_s19 + $0x480] sm:$0xff] }
 0xc6b   :  { %4463 = vst [vmem:[#allocation3 + $0x18] sm:$0xff] %v4459_v8  ;;  %v7712_v8 = vpack.c.bf16 %v6545_v63, %v6544_v61  ;;  %v6567_v50 = vld [vmem:[%s10667_s19 + $0x378] sm:$0xff]  ;;  %v6584_v62 = vld [vmem:[%s10667_s19 + $0x400] sm:$0xff]  ;;  %v6585_v61 = vld [vmem:[%s10667_s19 + $0x408] sm:$0xff] }
 0xc6c   :  { %v6616_v63 = vld [vmem:[%s10667_s19 + $0x500] sm:$0xff]  ;;  %v6602_v3 = vld [vmem:[%s10667_s19 + $0x490] sm:$0xff]  ;;  %v6587_v16 = vld [vmem:[%s10667_s19 + $0x418] sm:$0xff] }
 0xc6d   :  { %v6586_v15 = vld [vmem:[%s10667_s19 + $0x410] sm:$0xff] }
 0xc72   :  { %v4465_v20 = vld [vmem:[#allocation3] ss:$8 sm:$0xf]  ;;  %v9234_v38 = vld [vmem:[#allocation3 + $0x1] ss:$8 sm:$0xf] }
 0xc73   :  { %v4538_v25 = vrot.slane %v4465_v20, %v9198_v9  ;;  %v4546_v26 = vrot.slane %v4465_v20, %v9203_v11  ;;  %v4534_v27 = vrot.slane %v4465_v20, %v9205_v12  ;;  %v4542_v28 = vrot.slane %v4465_v20, %v9207_v13 }
 0xc74   :  { %v4767_v39 = vrot.slane %v9234_v38, %v9198_v9  ;;  %v4775_v41 = vrot.slane %v9234_v38, %v9203_v11  ;;  %v7714_v20 = vpack.c.bf16 %v6529_v55, %v6528_v6  ;;  %v6634_v6 = vld [vmem:[%s10667_s19 + $0x590] sm:$0xff]  ;;  %v6635_v55 = vld [vmem:[%s10667_s19 + $0x598] sm:$0xff] }
 0xc75   :  { %4615 = vmatprep.mubr.f32.mxu0 %v4538_v25  ;;  %4685 = vmatprep.mubr.f32.mxu1 %v4546_v26  ;;  %v7748_v25 = vpack.c.bf16 %v6579_v19, %v6578_v17  ;;  %v6562_v26 = vld [vmem:[%s10667_s19 + $0x350] sm:$0xff] }
 0xc76   :  { %4616 = vmatmul.mubr.f32.vlgmr.msra.gmra.mrb[64].mxu0 %v4534_v27  ;;  %4686 = vmatmul.mubr.f32.vlgmr.msra.gmra.mrb[34].mxu1 %v4542_v28  ;;  %v6563_v27 = vld [vmem:[%s10667_s19 + $0x358] sm:$0xff]  ;;  %v6548_v28 = vld [vmem:[%s10667_s19 + $0x2e0] sm:$0xff]  ;;  %v6618_v17 = vld [vmem:[%s10667_s19 + $0x510] sm:$0xff] }
 0xc77   :  { %7699 = vmatpush3.bf16.msra.mxu0 %v7698_v21  ;;  %7731 = vmatpush3.bf16.msra.mxu1 %v7730_v22  ;;  %v7746_v21 = vpack.c.bf16 %v6561_v14, %v6560_v10  ;;  %v6530_v22 = vld [vmem:[%s10667_s19 + $0x250] sm:$0xff]  ;;  %v7750_v32 = vpack.c.bf16 %v6563_v27, %v6562_v26  ;;  %v7720_v36 = vpack.c.bf16 %v6549_v29, %v6548_v28  ;;  %v6637_v26 = vld [vmem:[%s10667_s19 + $0x5a8] sm:$0xff] }
 0xc78   :  { %4844 = vmatprep.mubr.f32.mxu0 %v4767_v39  ;;  %4914 = vmatprep.mubr.f32.mxu1 %v4775_v41  ;;  %v7718_v31 = vpack.c.bf16 %v6531_v23, %v6530_v22  ;;  %v6565_v39 = vld [vmem:[%s10667_s19 + $0x368] sm:$0xff]  ;;  %v6550_v41 = vld [vmem:[%s10667_s19 + $0x2f0] sm:$0xff]  ;;  %v4771_v10 = vrot.slane %v9234_v38, %v9207_v13  ;;  %v7794_v14 = vpack.c.bf16 %v6617_v2, %v6616_v63  ;;  %v6604_v22 = vld [vmem:[%s10667_s19 + $0x4a0] sm:$0xff] }
 0xc79   :  { %7701 = vmatprep.subr.bf16.mxu0 %v7700_v1  ;;  %7733 = vmatprep.subr.bf16.mxu1 %v7732_v54  ;;  %v6532_v1 = vld [vmem:[%s10667_s19 + $0x260] sm:$0xff]  ;;  %v6533_v54 = vld [vmem:[%s10667_s19 + $0x268] sm:$0xff]  ;;  %v7766_v27 = vpack.c.bf16 %v6587_v16, %v6586_v15  ;;  %v6643_v63 = vld [vmem:[%s10667_s19 + $0x5d8] sm:$0xff] }
 0xc7a   :  { %v7722_v44 = vpack.c.bf16 %v6533_v54, %v6532_v1  ;;  %v6605_v23 = vld [vmem:[%s10667_s19 + $0x4a8] sm:$0xff]  ;;  %v6606_v54 = vld [vmem:[%s10667_s19 + $0x4b0] sm:$0xff]  ;;  %v6644_v16 = vld [vmem:[%s10667_s19 + $0x5e0] sm:$0xff] }
 0xc7b   :  { %7703 = vmatpush3.bf16.msra.mxu0 %v7702_v42  ;;  %7735 = vmatpush3.bf16.msra.mxu1 %v7734_v18  ;;  %v6551_v42 = vld [vmem:[%s10667_s19 + $0x2f8] sm:$0xff]  ;;  %v6582_v18 = vld [vmem:[%s10667_s19 + $0x3f0] sm:$0xff]  ;;  %v7768_v29 = vpack.c.bf16 %v6605_v23, %v6604_v22  ;;  %v6621_v1 = vld [vmem:[%s10667_s19 + $0x528] sm:$0xff] }
 0xc7c   :  { %7705 = vmatprep.subr.bf16.mxu0 %v7704_v45  ;;  %7737 = vmatprep.subr.bf16.mxu1 %v7736_v52  ;;  %v7754_v45 = vpack.c.bf16 %v6565_v39, %v6564_v34  ;;  %v6534_v52 = vld [vmem:[%s10667_s19 + $0x270] sm:$0xff]  ;;  %v7724_v48 = vpack.c.bf16 %v6551_v42, %v6550_v41  ;;  %v7756_v49 = vpack.c.bf16 %v6583_v43, %v6582_v18  ;;  %v6639_v34 = vld [vmem:[%s10667_s19 + $0x5b8] sm:$0xff]  ;;  %v6613_v15 = vld [vmem:[%s10667_s19 + $0x4e8] sm:$0xff] }
 0xc7d   :  { %v7726_v35 = vpack.c.bf16 %v6535_v47, %v6534_v52  ;;  %v7770_v39 = vpack.c.bf16 %v6589_v30, %v6588_v37  ;;  %v6590_v18 = vld [vmem:[%s10667_s19 + $0x430] sm:$0xff]  ;;  %v6591_v43 = vld [vmem:[%s10667_s19 + $0x438] sm:$0xff]  ;;  %v6608_v47 = vld [vmem:[%s10667_s19 + $0x4c0] sm:$0xff] }
 0xc7e   :  { %v6623_v52 = vld [vmem:[%s10667_s19 + $0x538] sm:$0xff]  ;;  %v6597_v22 = vld [vmem:[%s10667_s19 + $0x468] sm:$0xff]  ;;  %v6628_v23 = vld [vmem:[%s10667_s19 + $0x560] sm:$0xff] }
 0xc7f   :  { %7707 = vmatpush3.bf16.msra.mxu0 %v7706_v59  ;;  %7739 = vmatpush3.bf16.msra.mxu1 %v7738_v33  ;;  %v6601_v59 = vld [vmem:[%s10667_s19 + $0x488] sm:$0xff]  ;;  %v6632_v33 = vld [vmem:[%s10667_s19 + $0x580] sm:$0xff] }
 0xc80   :  { %7709 = vmatprep.subr.bf16.mxu0 %v7708_v56  ;;  %7741 = vmatprep.subr.bf16.mxu1 %v7740_v57  ;;  %v7758_v56 = vpack.c.bf16 %v6567_v50, %v6566_v60  ;;  %v7760_v57 = vpack.c.bf16 %v6601_v59, %v6600_v51  ;;  %v7792_v58 = vpack.c.bf16 %v6633_v53, %v6632_v33  ;;  %v6641_v60 = vld [vmem:[%s10667_s19 + $0x5c8] sm:$0xff]  ;;  %v6592_v33 = vld [vmem:[%s10667_s19 + $0x440] sm:$0xff] }
 0xc81   :  { %v7774_v50 = vpack.c.bf16 %v6591_v43, %v6590_v18  ;;  %v6593_v53 = vld [vmem:[%s10667_s19 + $0x448] sm:$0xff] }
 0xc82   :  { %v7778_v2 = vpack.c.bf16 %v6593_v53, %v6592_v33  ;;  %v6698_v33 = vld [vmem:[%s10667_s19 + $0x790] sm:$0xff]  ;;  %v6699_v53 = vld [vmem:[%s10667_s19 + $0x798] sm:$0xff] }
 0xc83   :  { %7711 = vmatpush3.bf16.msra.mxu0 %v7710_v40  ;;  %7743 = vmatpush3.bf16.msra.mxu1 %v7742_v5  ;;  %v6603_v40 = vld [vmem:[%s10667_s19 + $0x498] sm:$0xff] }
 0xc84   :  { %7713 = vmatprep.subr.bf16.mxu0 %v7712_v8  ;;  %7745 = vmatprep.subr.bf16.mxu1 %v7744_v7  ;;  %v9426_v5 = vld [vmem:[#allocation3 + $0x2] ss:$8 sm:$0xf]  ;;  %v7762_v8 = vpack.c.bf16 %v6585_v61, %v6584_v62  ;;  %v4763_v7 = vrot.slane %v9234_v38, %v9205_v12  ;;  %v7796_v38 = vpack.c.bf16 %v6635_v55, %v6634_v6 }
 0xc85   :  { %v4996_v19 = vrot.slane %v9426_v5, %v9198_v9  ;;  %v6611_v62 = vld [vmem:[%s10667_s19 + $0x4d8] sm:$0xff]  ;;  %v6642_v61 = vld [vmem:[%s10667_s19 + $0x5d0] sm:$0xff] }
 0xc86   :  { %v6594_v6 = vld [vmem:[%s10667_s19 + $0x450] sm:$0xff]  ;;  %v6595_v55 = vld [vmem:[%s10667_s19 + $0x458] sm:$0xff] }
 0xc87   :  { %7715 = vmatpush3.bf16.msra.mxu0 %v7714_v20  ;;  %7747 = vmatpush3.bf16.msra.mxu1 %v7746_v21  ;;  %v7764_v20 = vpack.c.bf16 %v6603_v40, %v6602_v3  ;;  %v6619_v21 = vld [vmem:[%s10667_s19 + $0x518] sm:$0xff] }
 0xc88   :  { %7717 = vmatprep.subr.bf16.mxu0 %v7716_v24  ;;  %7749 = vmatprep.subr.bf16.mxu1 %v7748_v25  ;;  %v5004_v24 = vrot.slane %v9426_v5, %v9203_v11  ;;  %v6636_v25 = vld [vmem:[%s10667_s19 + $0x5a0] sm:$0xff]  ;;  %v7798_v28 = vpack.c.bf16 %v6619_v21, %v6618_v17  ;;  %v6645_v17 = vld [vmem:[%s10667_s19 + $0x5e8] sm:$0xff] }
 0xc89   :  { %v6596_v21 = vld [vmem:[%s10667_s19 + $0x460] sm:$0xff] }
 0xc8a   :  { %v7786_v37 = vpack.c.bf16 %v6597_v22, %v6596_v21  ;;  %v6670_v21 = vld [vmem:[%s10667_s19 + $0x6b0] sm:$0xff]  ;;  %v6671_v22 = vld [vmem:[%s10667_s19 + $0x6b8] sm:$0xff] }
 0xc8b   :  { %7719 = vmatpush3.bf16.msra.mxu0 %v7718_v31  ;;  %7751 = vmatpush3.bf16.msra.mxu1 %v7750_v32  ;;  %v6620_v31 = vld [vmem:[%s10667_s19 + $0x520] sm:$0xff]  ;;  %v7800_v32 = vpack.c.bf16 %v6637_v26, %v6636_v25  ;;  %v6629_v25 = vld [vmem:[%s10667_s19 + $0x568] sm:$0xff]  ;;  %v6614_v26 = vld [vmem:[%s10667_s19 + $0x4f0] sm:$0xff] }
 0xc8c   :  { %7721 = vmatprep.subr.bf16.mxu0 %v7720_v36  ;;  %7753 = vmatprep.subr.bf16.mxu1 %v7752_v46  ;;  %v6607_v36 = vld [vmem:[%s10667_s19 + $0x4b8] sm:$0xff]  ;;  %v6638_v46 = vld [vmem:[%s10667_s19 + $0x5b0] sm:$0xff]  ;;  %v7802_v41 = vpack.c.bf16 %v6621_v1, %v6620_v31  ;;  %v7818_v30 = vpack.c.bf16 %v6629_v25, %v6628_v23 }
 0xc8d   :  { %v7772_v42 = vpack.c.bf16 %v6607_v36, %v6606_v54  ;;  %v6599_v1 = vld [vmem:[%s10667_s19 + $0x478] sm:$0xff]  ;;  %v6630_v54 = vld [vmem:[%s10667_s19 + $0x570] sm:$0xff] }
 0xc8e   :  { %v6702_v23 = vld [vmem:[%s10667_s19 + $0x7b0] sm:$0xff] }
 0xc8f   :  { %7723 = vmatpush3.bf16.msra.mxu0 %v7722_v44  ;;  %7755 = vmatpush3.bf16.msra.mxu1 %v7754_v45  ;;  %v6622_v44 = vld [vmem:[%s10667_s19 + $0x530] sm:$0xff]  ;;  %v7804_v45 = vpack.c.bf16 %v6639_v34, %v6638_v46  ;;  %v6631_v46 = vld [vmem:[%s10667_s19 + $0x578] sm:$0xff]  ;;  %v6664_v34 = vld [vmem:[%s10667_s19 + $0x680] sm:$0xff] }
 0xc90   :  { %7725 = vmatprep.subr.bf16.mxu0 %v7724_v48  ;;  %7757 = vmatprep.subr.bf16.mxu1 %v7756_v49  ;;  %v6609_v48 = vld [vmem:[%s10667_s19 + $0x4c8] sm:$0xff]  ;;  %v6640_v49 = vld [vmem:[%s10667_s19 + $0x5c0] sm:$0xff]  ;;  %v7806_v51 = vpack.c.bf16 %v6623_v52, %v6622_v44  ;;  %v7822_v43 = vpack.c.bf16 %v6631_v46, %v6630_v54 }
 0xc91   :  { %v7776_v59 = vpack.c.bf16 %v6609_v48, %v6608_v47  ;;  %v6649_v52 = vld [vmem:[%s10667_s19 + $0x608] sm:$0xff]  ;;  %v6680_v48 = vld [vmem:[%s10667_s19 + $0x700] sm:$0xff] }
 0xc92   :  { %v6704_v54 = vld [vmem:[%s10667_s19 + $0x7c0] sm:$0xff] }
 0xc93   :  { %7727 = vmatpush3.bf16.msra.mxu0 %v7726_v35  ;;  %7759 = vmatpush3.bf16.msra.mxu1 %v7758_v56  ;;  %v6624_v35 = vld [vmem:[%s10667_s19 + $0x540] sm:$0xff]  ;;  %v7808_v56 = vpack.c.bf16 %v6641_v60, %v6640_v49  ;;  %v6681_v49 = vld [vmem:[%s10667_s19 + $0x708] sm:$0xff]  ;;  %v6666_v60 = vld [vmem:[%s10667_s19 + $0x690] sm:$0xff] }
 0xc94   :  { %7761 = vmatprep.subr.bf16.mxu0 %v7760_v57  ;;  %7793 = vmatprep.subr.bf16.mxu1 %v7792_v58  ;;  %v6625_v57 = vld [vmem:[%s10667_s19 + $0x548] sm:$0xff]  ;;  %v6610_v58 = vld [vmem:[%s10667_s19 + $0x4d0] sm:$0xff] }
 0xc95   :  { %v7810_v3 = vpack.c.bf16 %v6625_v57, %v6624_v35  ;;  %v7780_v40 = vpack.c.bf16 %v6611_v62, %v6610_v58  ;;  %v4992_v35 = vrot.slane %v9426_v5, %v9205_v12  ;;  %v6650_v57 = vld [vmem:[%s10667_s19 + $0x610] sm:$0xff]  ;;  %v6651_v58 = vld [vmem:[%s10667_s19 + $0x618] sm:$0xff] }
 0xc96   :  { %4845 = vmatmul.mubr.f32.vlgmr.msra.gmra.mrb[66].mxu0 %v4763_v7  ;;  %4915 = vmatmul.mubr.f32.vlgmr.msra.gmra.mrb[36].mxu1 %v4771_v10  ;;  %v7812_v7 = vpack.c.bf16 %v6643_v63, %v6642_v61  ;;  %v6627_v10 = vld [vmem:[%s10667_s19 + $0x558] sm:$0xff]  ;;  %v6682_v62 = vld [vmem:[%s10667_s19 + $0x710] sm:$0xff]  ;;  %v5000_v61 = vrot.slane %v9426_v5, %v9207_v13  ;;  %v6700_v5 = vld [vmem:[%s10667_s19 + $0x7a0] sm:$0xff] }
 0xc97   :  { %7763 = vmatpush3.bf16.msra.mxu0 %v7762_v8  ;;  %5073 = vmatprep.mubr.f32.mxu0 %v4996_v19  ;;  %v6626_v8 = vld [vmem:[%s10667_s19 + $0x550] sm:$0xff]  ;;  %v7782_v19 = vpack.c.bf16 %v6595_v55, %v6594_v6  ;;  %v7860_v55 = vpack.c.bf16 %v6699_v53, %v6698_v33  ;;  %v6659_v33 = vld [vmem:[%s10667_s19 + $0x658] sm:$0xff] }
 0xc98   :  { %7795 = vmatpush3.bf16.msra.mxu1 %v7794_v14  ;;  %5143 = vmatprep.mubr.f32.mxu1 %v5004_v24  ;;  %v6612_v14 = vld [vmem:[%s10667_s19 + $0x4e0] sm:$0xff]  ;;  %v7816_v24 = vpack.c.bf16 %v6645_v17, %v6644_v16  ;;  %v6653_v17 = vld [vmem:[%s10667_s19 + $0x628] sm:$0xff]  ;;  %v6690_v53 = vld [vmem:[%s10667_s19 + $0x750] sm:$0xff] }
 0xc99   :  { %7765 = vmatprep.subr.bf16.mxu0 %v7764_v20  ;;  %7797 = vmatprep.subr.bf16.mxu1 %v7796_v38  ;;  %v7814_v20 = vpack.c.bf16 %v6627_v10, %v6626_v8  ;;  %v7784_v38 = vpack.c.bf16 %v6613_v15, %v6612_v14  ;;  %v6701_v8 = vld [vmem:[%s10667_s19 + $0x7a8] sm:$0xff]  ;;  %v7830_v10 = vpack.c.bf16 %v6651_v58, %v6650_v57  ;;  %v6652_v16 = vld [vmem:[%s10667_s19 + $0x620] sm:$0xff] }
 0xc9a   :  { %v7834_v25 = vpack.c.bf16 %v6653_v17, %v6652_v16  ;;  %v6676_v57 = vld [vmem:[%s10667_s19 + $0x6e0] sm:$0xff]  ;;  %v6677_v58 = vld [vmem:[%s10667_s19 + $0x6e8] sm:$0xff] }
 0xc9b   :  { %7767 = vmatpush3.bf16.msra.mxu0 %v7766_v27  ;;  %v6615_v27 = vld [vmem:[%s10667_s19 + $0x4f8] sm:$0xff] }
 0xc9c   :  { %7799 = vmatpush3.bf16.msra.mxu1 %v7798_v28  ;;  %7769 = vmatprep.subr.bf16.mxu0 %v7768_v29  ;;  %v6646_v28 = vld [vmem:[%s10667_s19 + $0x5f0] sm:$0xff]  ;;  %v6647_v29 = vld [vmem:[%s10667_s19 + $0x5f8] sm:$0xff]  ;;  %v7788_v31 = vpack.c.bf16 %v6615_v27, %v6614_v26  ;;  %v7836_v27 = vpack.c.bf16 %v6671_v22, %v6670_v21 }
 0xc9d   :  { %7801 = vmatprep.subr.bf16.mxu1 %v7800_v32  ;;  %v6598_v32 = vld [vmem:[%s10667_s19 + $0x470] sm:$0xff]  ;;  %v7820_v36 = vpack.c.bf16 %v6647_v29, %v6646_v28  ;;  %v6655_v29 = vld [vmem:[%s10667_s19 + $0x638] sm:$0xff] }
 0xc9e   :  { %v7790_v18 = vpack.c.bf16 %v6599_v1, %v6598_v32  ;;  %v6654_v28 = vld [vmem:[%s10667_s19 + $0x630] sm:$0xff]  ;;  %v6672_v32 = vld [vmem:[%s10667_s19 + $0x6c0] sm:$0xff]  ;;  %v6673_v1 = vld [vmem:[%s10667_s19 + $0x6c8] sm:$0xff] }
 0xc9f   :  { %7771 = vmatpush3.bf16.msra.mxu0 %v7770_v39  ;;  %v6665_v39 = vld [vmem:[%s10667_s19 + $0x688] sm:$0xff]  ;;  %v7838_v46 = vpack.c.bf16 %v6655_v29, %v6654_v28  ;;  %v6694_v21 = vld [vmem:[%s10667_s19 + $0x770] sm:$0xff] }
 0xca0   :  { %7803 = vmatpush3.bf16.msra.mxu1 %v7802_v41  ;;  %7773 = vmatprep.subr.bf16.mxu0 %v7772_v42  ;;  %v6696_v41 = vld [vmem:[%s10667_s19 + $0x780] sm:$0xff]  ;;  %v6697_v42 = vld [vmem:[%s10667_s19 + $0x788] sm:$0xff]  ;;  %v7824_v44 = vpack.c.bf16 %v6665_v39, %v6664_v34  ;;  %v7840_v39 = vpack.c.bf16 %v6673_v1, %v6672_v32 }
 0xca1   :  { %7805 = vmatprep.subr.bf16.mxu1 %v7804_v45  ;;  %v6648_v45 = vld [vmem:[%s10667_s19 + $0x600] sm:$0xff]  ;;  %v7856_v47 = vpack.c.bf16 %v6697_v42, %v6696_v41  ;;  %v6657_v42 = vld [vmem:[%s10667_s19 + $0x648] sm:$0xff] }
 0xca2   :  { %v6656_v41 = vld [vmem:[%s10667_s19 + $0x640] sm:$0xff] }
 0xca3   :  { %7775 = vmatpush3.bf16.msra.mxu0 %v7774_v50  ;;  %v6667_v50 = vld [vmem:[%s10667_s19 + $0x698] sm:$0xff]  ;;  %v6744_v1 = vld [vmem:[%s10667_s19 + $0x900] sm:$0xff] }
 0xca4   :  { %7807 = vmatpush3.bf16.msra.mxu1 %v7806_v51  ;;  %7777 = vmatprep.subr.bf16.mxu0 %v7776_v59  ;;  %v7826_v51 = vpack.c.bf16 %v6649_v52, %v6648_v45  ;;  %v9628_v59 = vld [vmem:[#allocation3 + $0x3] ss:$8 sm:$0xf]  ;;  %v7828_v63 = vpack.c.bf16 %v6667_v50, %v6666_v60 }
 0xca5   :  { %7809 = vmatprep.subr.bf16.mxu1 %v7808_v56  ;;  %v7858_v56 = vpack.c.bf16 %v6681_v49, %v6680_v48  ;;  %v5225_v6 = vrot.slane %v9628_v59, %v9198_v9  ;;  %v6674_v45 = vld [vmem:[%s10667_s19 + $0x6d0] sm:$0xff]  ;;  %v6675_v52 = vld [vmem:[%s10667_s19 + $0x6d8] sm:$0xff]  ;;  %v7842_v49 = vpack.c.bf16 %v6657_v42, %v6656_v41 }
 0xca6   :  { %v6707_v48 = vld [vmem:[%s10667_s19 + $0x7d8] sm:$0xff]  ;;  %v7844_v50 = vpack.c.bf16 %v6675_v52, %v6674_v45  ;;  %v6762_v41 = vld [vmem:[%s10667_s19 + $0x990] sm:$0xff] }
 0xca7   :  { %7779 = vmatpush3.bf16.msra.mxu0 %v7778_v2  ;;  %v6683_v2 = vld [vmem:[%s10667_s19 + $0x718] sm:$0xff]  ;;  %v6746_v52 = vld [vmem:[%s10667_s19 + $0x910] sm:$0xff] }
 0xca8   :  { %7811 = vmatpush3.bf16.msra.mxu1 %v7810_v3  ;;  %7781 = vmatprep.subr.bf16.mxu0 %v7780_v40  ;;  %v6668_v3 = vld [vmem:[%s10667_s19 + $0x6a0] sm:$0xff]  ;;  %v6669_v40 = vld [vmem:[%s10667_s19 + $0x6a8] sm:$0xff]  ;;  %v7862_v14 = vpack.c.bf16 %v6683_v2, %v6682_v62  ;;  %v6763_v42 = vld [vmem:[%s10667_s19 + $0x998] sm:$0xff] }
 0xca9   :  { %7813 = vmatprep.subr.bf16.mxu1 %v7812_v7  ;;  %v5233_v7 = vrot.slane %v9628_v59, %v9203_v11  ;;  %v7832_v15 = vpack.c.bf16 %v6669_v40, %v6668_v3  ;;  %v6708_v62 = vld [vmem:[%s10667_s19 + $0x7e0] sm:$0xff]  ;;  %v7848_v3 = vpack.c.bf16 %v6677_v58, %v6676_v57  ;;  %v6715_v45 = vld [vmem:[%s10667_s19 + $0x818] sm:$0xff] }
 0xcaa   :  { %v6660_v40 = vld [vmem:[%s10667_s19 + $0x660] sm:$0xff] }
 0xcab   :  { %7783 = vmatpush3.bf16.msra.mxu0 %v7782_v19  ;;  %v6684_v19 = vld [vmem:[%s10667_s19 + $0x720] sm:$0xff] }
 0xcac   :  { %7815 = vmatpush3.bf16.msra.mxu1 %v7814_v20  ;;  %7785 = vmatprep.subr.bf16.mxu0 %v7784_v38  ;;  %v7864_v20 = vpack.c.bf16 %v6701_v8, %v6700_v5  ;;  %v6685_v38 = vld [vmem:[%s10667_s19 + $0x728] sm:$0xff] }
 0xcad   :  { %7817 = vmatprep.subr.bf16.mxu1 %v7816_v24  ;;  %v6703_v24 = vld [vmem:[%s10667_s19 + $0x7b8] sm:$0xff]  ;;  %v7866_v26 = vpack.c.bf16 %v6685_v38, %v6684_v19  ;;  %v6693_v8 = vld [vmem:[%s10667_s19 + $0x768] sm:$0xff] }
 0xcae   :  { %v6663_v38 = vld [vmem:[%s10667_s19 + $0x678] sm:$0xff] }
 0xcaf   :  { %7787 = vmatpush3.bf16.msra.mxu0 %v7786_v37  ;;  %v6686_v37 = vld [vmem:[%s10667_s19 + $0x730] sm:$0xff] }
 0xcb0   :  { %7819 = vmatpush3.bf16.msra.mxu1 %v7818_v30  ;;  %7789 = vmatprep.subr.bf16.mxu0 %v7788_v31  ;;  %v7868_v30 = vpack.c.bf16 %v6703_v24, %v6702_v23  ;;  %v6687_v31 = vld [vmem:[%s10667_s19 + $0x738] sm:$0xff]  ;;  %v6728_v24 = vld [vmem:[%s10667_s19 + $0x880] sm:$0xff] }
 0xcb1   :  { %7821 = vmatprep.subr.bf16.mxu1 %v7820_v36  ;;  %v6705_v36 = vld [vmem:[%s10667_s19 + $0x7c8] sm:$0xff]  ;;  %v7870_v34 = vpack.c.bf16 %v6687_v31, %v6686_v37  ;;  %v6695_v23 = vld [vmem:[%s10667_s19 + $0x778] sm:$0xff] }
 0xcb2   :  { %v7886_v29 = vpack.c.bf16 %v6695_v23, %v6694_v21  ;;  %v6713_v31 = vld [vmem:[%s10667_s19 + $0x808] sm:$0xff]  ;;  %v6768_v21 = vld [vmem:[%s10667_s19 + $0x9c0] sm:$0xff] }
 0xcb3   :  { %7791 = vmatpush3.bf16.msra.mxu0 %v7790_v18  ;;  %v6688_v18 = vld [vmem:[%s10667_s19 + $0x740] sm:$0xff] }
 0xcb4   :  { %7823 = vmatpush3.bf16.msra.mxu1 %v7822_v43  ;;  %7825 = vmatprep.subr.bf16.mxu0 %v7824_v44  ;;  %v7872_v43 = vpack.c.bf16 %v6705_v36, %v6704_v54  ;;  %v6689_v44 = vld [vmem:[%s10667_s19 + $0x748] sm:$0xff]  ;;  %v6730_v36 = vld [vmem:[%s10667_s19 + $0x890] sm:$0xff] }
 0xcb5   :  { %7857 = vmatprep.subr.bf16.mxu1 %v7856_v47  ;;  %v6706_v47 = vld [vmem:[%s10667_s19 + $0x7d0] sm:$0xff]  ;;  %v7874_v60 = vpack.c.bf16 %v6689_v44, %v6688_v18  ;;  %v6745_v54 = vld [vmem:[%s10667_s19 + $0x908] sm:$0xff]  ;;  %v5221_v18 = vrot.slane %v9628_v59, %v9205_v12 }
 0xcb6   :  { %5074 = vmatmul.mubr.f32.vlgmr.msra.gmra.mrb[68].mxu0 %v4992_v35  ;;  %v7876_v35 = vpack.c.bf16 %v6707_v48, %v6706_v47  ;;  %v6714_v44 = vld [vmem:[%s10667_s19 + $0x810] sm:$0xff]  ;;  %v5229_v47 = vrot.slane %v9628_v59, %v9207_v13  ;;  %v6764_v59 = vld [vmem:[%s10667_s19 + $0x9a0] sm:$0xff] }
 0xcb7   :  { %5144 = vmatmul.mubr.f32.vlgmr.msra.gmra.mrb[38].mxu1 %v5000_v61  ;;  %7827 = vmatpush3.bf16.msra.mxu0 %v7826_v51  ;;  %v6658_v51 = vld [vmem:[%s10667_s19 + $0x650] sm:$0xff]  ;;  %v6709_v61 = vld [vmem:[%s10667_s19 + $0x7e8] sm:$0xff] }
 0xcb8   :  { %5302 = vmatprep.mubr.f32.mxu0 %v5225_v6  ;;  %7859 = vmatpush3.bf16.msra.mxu1 %v7858_v56  ;;  %v6691_v56 = vld [vmem:[%s10667_s19 + $0x758] sm:$0xff]  ;;  %v6661_v6 = vld [vmem:[%s10667_s19 + $0x668] sm:$0xff]  ;;  %v7880_v5 = vpack.c.bf16 %v6709_v61, %v6708_v62  ;;  %v6716_v62 = vld [vmem:[%s10667_s19 + $0x820] sm:$0xff] }
 0xcb9   :  { %5372 = vmatprep.mubr.f32.mxu1 %v5233_v7  ;;  %7829 = vmatprep.subr.bf16.mxu0 %v7828_v63  ;;  %v7846_v63 = vpack.c.bf16 %v6659_v33, %v6658_v51  ;;  %v7878_v2 = vpack.c.bf16 %v6691_v56, %v6690_v53  ;;  %v6678_v7 = vld [vmem:[%s10667_s19 + $0x6f0] sm:$0xff]  ;;  %v7850_v16 = vpack.c.bf16 %v6661_v6, %v6660_v40  ;;  %v6765_v53 = vld [vmem:[%s10667_s19 + $0x9a8] sm:$0xff]  ;;  %v6735_v6 = vld [vmem:[%s10667_s19 + $0x8b8] sm:$0xff] }
 0xcba   :  { %7861 = vmatprep.subr.bf16.mxu1 %v7860_v55  ;;  %v6692_v55 = vld [vmem:[%s10667_s19 + $0x760] sm:$0xff]  ;;  %v7924_v33 = vpack.c.bf16 %v6763_v42, %v6762_v41  ;;  %v7894_v56 = vpack.c.bf16 %v6715_v45, %v6714_v44  ;;  %v6717_v61 = vld [vmem:[%s10667_s19 + $0x828] sm:$0xff]  ;;  %v6734_v40 = vld [vmem:[%s10667_s19 + $0x8b0] sm:$0xff] }
 0xcbb   :  { %7831 = vmatpush3.bf16.msra.mxu0 %v7830_v10  ;;  %v6679_v10 = vld [vmem:[%s10667_s19 + $0x6f8] sm:$0xff]  ;;  %v7882_v17 = vpack.c.bf16 %v6693_v8, %v6692_v55  ;;  %v6766_v55 = vld [vmem:[%s10667_s19 + $0x9b0] sm:$0xff]  ;;  %v7898_v8 = vpack.c.bf16 %v6717_v61, %v6716_v62  ;;  %v6740_v44 = vld [vmem:[%s10667_s19 + $0x8e0] sm:$0xff] }
 0xcbc   :  { %7863 = vmatpush3.bf16.msra.mxu1 %v7862_v14  ;;  %7833 = vmatprep.subr.bf16.mxu0 %v7832_v15  ;;  %v6710_v14 = vld [vmem:[%s10667_s19 + $0x7f0] sm:$0xff]  ;;  %v6711_v15 = vld [vmem:[%s10667_s19 + $0x7f8] sm:$0xff]  ;;  %v7852_v19 = vpack.c.bf16 %v6679_v10, %v6678_v7  ;;  %v7900_v10 = vpack.c.bf16 %v6735_v6, %v6734_v40  ;;  %v6741_v45 = vld [vmem:[%s10667_s19 + $0x8e8] sm:$0xff] }
 0xcbd   :  { %7865 = vmatprep.subr.bf16.mxu1 %v7864_v20  ;;  %v6662_v20 = vld [vmem:[%s10667_s19 + $0x670] sm:$0xff]  ;;  %v7884_v22 = vpack.c.bf16 %v6711_v15, %v6710_v14  ;;  %v6719_v15 = vld [vmem:[%s10667_s19 + $0x838] sm:$0xff] }
 0xcbe   :  { %v7854_v28 = vpack.c.bf16 %v6663_v38, %v6662_v20  ;;  %v6718_v14 = vld [vmem:[%s10667_s19 + $0x830] sm:$0xff]  ;;  %v6736_v20 = vld [vmem:[%s10667_s19 + $0x8c0] sm:$0xff]  ;;  %v6737_v38 = vld [vmem:[%s10667_s19 + $0x8c8] sm:$0xff] }
 0xcbf   :  { %7835 = vmatpush3.bf16.msra.mxu0 %v7834_v25  ;;  %v6729_v25 = vld [vmem:[%s10667_s19 + $0x888] sm:$0xff]  ;;  %v7902_v23 = vpack.c.bf16 %v6719_v15, %v6718_v14  ;;  %v6723_v41 = vld [vmem:[%s10667_s19 + $0x858] sm:$0xff]  ;;  %v6754_v42 = vld [vmem:[%s10667_s19 + $0x950] sm:$0xff] }
 0xcc0   :  { %7867 = vmatpush3.bf16.msra.mxu1 %v7866_v26  ;;  %7837 = vmatprep.subr.bf16.mxu0 %v7836_v27  ;;  %v6760_v26 = vld [vmem:[%s10667_s19 + $0x980] sm:$0xff]  ;;  %v6761_v27 = vld [vmem:[%s10667_s19 + $0x988] sm:$0xff]  ;;  %v7888_v37 = vpack.c.bf16 %v6729_v25, %v6728_v24  ;;  %v7904_v25 = vpack.c.bf16 %v6737_v38, %v6736_v20  ;;  %v6758_v40 = vld [vmem:[%s10667_s19 + $0x970] sm:$0xff] }
 0xcc1   :  { %7869 = vmatprep.subr.bf16.mxu1 %v7868_v30  ;;  %v6712_v30 = vld [vmem:[%s10667_s19 + $0x800] sm:$0xff]  ;;  %v7920_v32 = vpack.c.bf16 %v6761_v27, %v6760_v26  ;;  %v6721_v27 = vld [vmem:[%s10667_s19 + $0x848] sm:$0xff] }
 0xcc2   :  { %v6720_v26 = vld [vmem:[%s10667_s19 + $0x840] sm:$0xff] }
 0xcc3   :  { %7839 = vmatpush3.bf16.msra.mxu0 %v7838_v46  ;;  %v6731_v46 = vld [vmem:[%s10667_s19 + $0x898] sm:$0xff]  ;;  %v6808_v38 = vld [vmem:[%s10667_s19 + $0xb00] sm:$0xff] }
 0xcc4   :  { %7871 = vmatpush3.bf16.msra.mxu1 %v7870_v34  ;;  %7841 = vmatprep.subr.bf16.mxu0 %v7840_v39  ;;  %v7890_v34 = vpack.c.bf16 %v6713_v31, %v6712_v30  ;;  %v9830_v39 = vld [vmem:[#allocation3 + $0x4] ss:$8 sm:$0xf]  ;;  %v7892_v48 = vpack.c.bf16 %v6731_v46, %v6730_v36 }
 0xcc5   :  { %7873 = vmatprep.subr.bf16.mxu1 %v7872_v43  ;;  %v7922_v43 = vpack.c.bf16 %v6745_v54, %v6744_v1  ;;  %v5454_v51 = vrot.slane %v9830_v39, %v9198_v9  ;;  %v6738_v30 = vld [vmem:[%s10667_s19 + $0x8d0] sm:$0xff]  ;;  %v6739_v31 = vld [vmem:[%s10667_s19 + $0x8d8] sm:$0xff]  ;;  %v7906_v54 = vpack.c.bf16 %v6721_v27, %v6720_v26 }
 0xcc6   :  { %v6771_v1 = vld [vmem:[%s10667_s19 + $0x9d8] sm:$0xff]  ;;  %v7908_v46 = vpack.c.bf16 %v6739_v31, %v6738_v30  ;;  %v6826_v26 = vld [vmem:[%s10667_s19 + $0xb90] sm:$0xff] }
 0xcc7   :  { %7843 = vmatpush3.bf16.msra.mxu0 %v7842_v49  ;;  %v6747_v49 = vld [vmem:[%s10667_s19 + $0x918] sm:$0xff]  ;;  %v6810_v31 = vld [vmem:[%s10667_s19 + $0xb10] sm:$0xff] }
 0xcc8   :  { %7875 = vmatpush3.bf16.msra.mxu1 %v7874_v60  ;;  %7845 = vmatprep.subr.bf16.mxu0 %v7844_v50  ;;  %v6732_v60 = vld [vmem:[%s10667_s19 + $0x8a0] sm:$0xff]  ;;  %v6733_v50 = vld [vmem:[%s10667_s19 + $0x8a8] sm:$0xff]  ;;  %v7926_v57 = vpack.c.bf16 %v6747_v49, %v6746_v52  ;;  %v6827_v27 = vld [vmem:[%s10667_s19 + $0xb98] sm:$0xff] }
 0xcc9   :  { %7877 = vmatprep.subr.bf16.mxu1 %v7876_v35  ;;  %v5462_v35 = vrot.slane %v9830_v39, %v9203_v11  ;;  %v7896_v58 = vpack.c.bf16 %v6733_v50, %v6732_v60  ;;  %v6772_v52 = vld [vmem:[%s10667_s19 + $0x9e0] sm:$0xff]  ;;  %v7912_v60 = vpack.c.bf16 %v6741_v45, %v6740_v44  ;;  %v6779_v30 = vld [vmem:[%s10667_s19 + $0xa18] sm:$0xff] }
 0xcca   :  { %v6724_v50 = vld [vmem:[%s10667_s19 + $0x860] sm:$0xff] }
 0xccb   :  { %7847 = vmatpush3.bf16.msra.mxu0 %v7846_v63  ;;  %v6748_v63 = vld [vmem:[%s10667_s19 + $0x920] sm:$0xff] }
 0xccc   :  { %7879 = vmatpush3.bf16.msra.mxu1 %v7878_v2  ;;  %7849 = vmatprep.subr.bf16.mxu0 %v7848_v3  ;;  %v7928_v2 = vpack.c.bf16 %v6765_v53, %v6764_v59  ;;  %v6749_v3 = vld [vmem:[%s10667_s19 + $0x928] sm:$0xff] }
 0xccd   :  { %7881 = vmatprep.subr.bf16.mxu1 %v7880_v5  ;;  %v6767_v5 = vld [vmem:[%s10667_s19 + $0x9b8] sm:$0xff]  ;;  %v7930_v7 = vpack.c.bf16 %v6749_v3, %v6748_v63  ;;  %v6757_v53 = vld [vmem:[%s10667_s19 + $0x968] sm:$0xff] }
 0xcce   :  { %v6727_v3 = vld [vmem:[%s10667_s19 + $0x878] sm:$0xff] }
 0xccf   :  { %7851 = vmatpush3.bf16.msra.mxu0 %v7850_v16  ;;  %v6750_v16 = vld [vmem:[%s10667_s19 + $0x930] sm:$0xff] }
 0xcd0   :  { %7883 = vmatpush3.bf16.msra.mxu1 %v7882_v17  ;;  %7853 = vmatprep.subr.bf16.mxu0 %v7852_v19  ;;  %v7932_v17 = vpack.c.bf16 %v6767_v5, %v6766_v55  ;;  %v6751_v19 = vld [vmem:[%s10667_s19 + $0x938] sm:$0xff]  ;;  %v6792_v5 = vld [vmem:[%s10667_s19 + $0xa80] sm:$0xff] }
 0xcd1   :  { %7885 = vmatprep.subr.bf16.mxu1 %v7884_v22  ;;  %v6769_v22 = vld [vmem:[%s10667_s19 + $0x9c8] sm:$0xff]  ;;  %v7934_v24 = vpack.c.bf16 %v6751_v19, %v6750_v16  ;;  %v6759_v55 = vld [vmem:[%s10667_s19 + $0x978] sm:$0xff] }
 0xcd2   :  { %v7950_v15 = vpack.c.bf16 %v6759_v55, %v6758_v40  ;;  %v6777_v19 = vld [vmem:[%s10667_s19 + $0xa08] sm:$0xff]  ;;  %v6832_v40 = vld [vmem:[%s10667_s19 + $0xbc0] sm:$0xff] }
 0xcd3   :  { %7855 = vmatpush3.bf16.msra.mxu0 %v7854_v28  ;;  %v6752_v28 = vld [vmem:[%s10667_s19 + $0x940] sm:$0xff] }
 0xcd4   :  { %7887 = vmatpush3.bf16.msra.mxu1 %v7886_v29  ;;  %7889 = vmatprep.subr.bf16.mxu0 %v7888_v37  ;;  %v7936_v29 = vpack.c.bf16 %v6769_v22, %v6768_v21  ;;  %v6753_v37 = vld [vmem:[%s10667_s19 + $0x948] sm:$0xff]  ;;  %v6794_v22 = vld [vmem:[%s10667_s19 + $0xa90] sm:$0xff] }
 0xcd5   :  { %7921 = vmatprep.subr.bf16.mxu1 %v7920_v32  ;;  %v6770_v32 = vld [vmem:[%s10667_s19 + $0x9d0] sm:$0xff]  ;;  %v7938_v36 = vpack.c.bf16 %v6753_v37, %v6752_v28  ;;  %v6809_v21 = vld [vmem:[%s10667_s19 + $0xb08] sm:$0xff]  ;;  %v5450_v28 = vrot.slane %v9830_v39, %v9205_v12 }
 0xcd6   :  { %5303 = vmatmul.mubr.f32.vlgmr.msra.gmra.mrb[70].mxu0 %v5221_v18  ;;  %v7940_v18 = vpack.c.bf16 %v6771_v1, %v6770_v32  ;;  %v6778_v37 = vld [vmem:[%s10667_s19 + $0xa10] sm:$0xff]  ;;  %v5458_v32 = vrot.slane %v9830_v39, %v9207_v13  ;;  %v6828_v39 = vld [vmem:[%s10667_s19 + $0xba0] sm:$0xff] }
 0xcd7   :  { %5373 = vmatmul.mubr.f32.vlgmr.msra.gmra.mrb[40].mxu1 %v5229_v47  ;;  %7891 = vmatpush3.bf16.msra.mxu0 %v7890_v34  ;;  %v6722_v34 = vld [vmem:[%s10667_s19 + $0x850] sm:$0xff]  ;;  %v6773_v47 = vld [vmem:[%s10667_s19 + $0x9e8] sm:$0xff] }
 0xcd8   :  { %5531 = vmatprep.mubr.f32.mxu0 %v5454_v51  ;;  %7923 = vmatpush3.bf16.msra.mxu1 %v7922_v43  ;;  %v6755_v43 = vld [vmem:[%s10667_s19 + $0x958] sm:$0xff]  ;;  %v6725_v51 = vld [vmem:[%s10667_s19 + $0x868] sm:$0xff]  ;;  %v7944_v59 = vpack.c.bf16 %v6773_v47, %v6772_v52  ;;  %v6780_v52 = vld [vmem:[%s10667_s19 + $0xa20] sm:$0xff] }
 0xcd9   :  { %5601 = vmatprep.mubr.f32.mxu1 %v5462_v35  ;;  %7893 = vmatprep.subr.bf16.mxu0 %v7892_v48  ;;  %v7910_v48 = vpack.c.bf16 %v6723_v41, %v6722_v34  ;;  %v7942_v49 = vpack.c.bf16 %v6755_v43, %v6754_v42  ;;  %v6742_v35 = vld [vmem:[%s10667_s19 + $0x8f0] sm:$0xff]  ;;  %v7914_v62 = vpack.c.bf16 %v6725_v51, %v6724_v50  ;;  %v6829_v42 = vld [vmem:[%s10667_s19 + $0xba8] sm:$0xff]  ;;  %v6799_v51 = vld [vmem:[%s10667_s19 + $0xab8] sm:$0xff] }
 0xcda   :  { %7925 = vmatprep.subr.bf16.mxu1 %v7924_v33  ;;  %v6756_v33 = vld [vmem:[%s10667_s19 + $0x960] sm:$0xff]  ;;  %v7988_v41 = vpack.c.bf16 %v6827_v27, %v6826_v26  ;;  %v7958_v43 = vpack.c.bf16 %v6779_v30, %v6778_v37  ;;  %v6781_v47 = vld [vmem:[%s10667_s19 + $0xa28] sm:$0xff]  ;;  %v6798_v50 = vld [vmem:[%s10667_s19 + $0xab0] sm:$0xff] }
 0xcdb   :  { %7895 = vmatpush3.bf16.msra.mxu0 %v7894_v56  ;;  %v6743_v56 = vld [vmem:[%s10667_s19 + $0x8f8] sm:$0xff]  ;;  %v7946_v61 = vpack.c.bf16 %v6757_v53, %v6756_v33  ;;  %v6830_v33 = vld [vmem:[%s10667_s19 + $0xbb0] sm:$0xff]  ;;  %v7962_v53 = vpack.c.bf16 %v6781_v47, %v6780_v52  ;;  %v6804_v37 = vld [vmem:[%s10667_s19 + $0xae0] sm:$0xff] }
 0xcdc   :  { %7927 = vmatpush3.bf16.msra.mxu1 %v7926_v57  ;;  %7897 = vmatprep.subr.bf16.mxu0 %v7896_v58  ;;  %v6774_v57 = vld [vmem:[%s10667_s19 + $0x9f0] sm:$0xff]  ;;  %v6775_v58 = vld [vmem:[%s10667_s19 + $0x9f8] sm:$0xff]  ;;  %v7916_v63 = vpack.c.bf16 %v6743_v56, %v6742_v35  ;;  %v7964_v56 = vpack.c.bf16 %v6799_v51, %v6798_v50  ;;  %v6805_v30 = vld [vmem:[%s10667_s19 + $0xae8] sm:$0xff] }
 0xcdd   :  { %7929 = vmatprep.subr.bf16.mxu1 %v7928_v2  ;;  %v6726_v2 = vld [vmem:[%s10667_s19 + $0x870] sm:$0xff]  ;;  %v7948_v6 = vpack.c.bf16 %v6775_v58, %v6774_v57  ;;  %v6783_v58 = vld [vmem:[%s10667_s19 + $0xa38] sm:$0xff] }
 0xcde   :  { %v7918_v14 = vpack.c.bf16 %v6727_v3, %v6726_v2  ;;  %v6782_v57 = vld [vmem:[%s10667_s19 + $0xa30] sm:$0xff]  ;;  %v6800_v2 = vld [vmem:[%s10667_s19 + $0xac0] sm:$0xff]  ;;  %v6801_v3 = vld [vmem:[%s10667_s19 + $0xac8] sm:$0xff] }
 0xcdf   :  { %7899 = vmatpush3.bf16.msra.mxu0 %v7898_v8  ;;  %v6793_v8 = vld [vmem:[%s10667_s19 + $0xa88] sm:$0xff]  ;;  %v7966_v55 = vpack.c.bf16 %v6783_v58, %v6782_v57  ;;  %v6787_v26 = vld [vmem:[%s10667_s19 + $0xa58] sm:$0xff]  ;;  %v6818_v27 = vld [vmem:[%s10667_s19 + $0xb50] sm:$0xff] }
 0xce0   :  { %7931 = vmatpush3.bf16.msra.mxu1 %v7930_v7  ;;  %7901 = vmatprep.subr.bf16.mxu0 %v7900_v10  ;;  %v6824_v7 = vld [vmem:[%s10667_s19 + $0xb80] sm:$0xff]  ;;  %v6825_v10 = vld [vmem:[%s10667_s19 + $0xb88] sm:$0xff]  ;;  %v7952_v16 = vpack.c.bf16 %v6793_v8, %v6792_v5  ;;  %v7968_v8 = vpack.c.bf16 %v6801_v3, %v6800_v2  ;;  %v6822_v50 = vld [vmem:[%s10667_s19 + $0xb70] sm:$0xff] }
 0xce1   :  { %7933 = vmatprep.subr.bf16.mxu1 %v7932_v17  ;;  %v6776_v17 = vld [vmem:[%s10667_s19 + $0xa00] sm:$0xff]  ;;  %v7984_v20 = vpack.c.bf16 %v6825_v10, %v6824_v7  ;;  %v6785_v10 = vld [vmem:[%s10667_s19 + $0xa48] sm:$0xff] }
 0xce2   :  { %v6784_v7 = vld [vmem:[%s10667_s19 + $0xa40] sm:$0xff] }
 0xce3   :  { %7903 = vmatpush3.bf16.msra.mxu0 %v7902_v23  ;;  %v6795_v23 = vld [vmem:[%s10667_s19 + $0xa98] sm:$0xff]  ;;  %v6872_v3 = vld [vmem:[%s10667_s19 + $0xd00] sm:$0xff] }
 0xce4   :  { %7935 = vmatpush3.bf16.msra.mxu1 %v7934_v24  ;;  %7905 = vmatprep.subr.bf16.mxu0 %v7904_v25  ;;  %v7954_v24 = vpack.c.bf16 %v6777_v19, %v6776_v17  ;;  %v10032_v25 = vld [vmem:[#allocation3 + $0x5] ss:$8 sm:$0xf]  ;;  %v7956_v1 = vpack.c.bf16 %v6795_v23, %v6794_v22 }
 0xce5   :  { %7937 = vmatprep.subr.bf16.mxu1 %v7936_v29  ;;  %v7986_v29 = vpack.c.bf16 %v6809_v21, %v6808_v38  ;;  %v5683_v34 = vrot.slane %v10032_v25, %v9198_v9  ;;  %v6802_v17 = vld [vmem:[%s10667_s19 + $0xad0] sm:$0xff]  ;;  %v6803_v19 = vld [vmem:[%s10667_s19 + $0xad8] sm:$0xff]  ;;  %v7970_v21 = vpack.c.bf16 %v6785_v10, %v6784_v7 }
 0xce6   :  { %v6835_v38 = vld [vmem:[%s10667_s19 + $0xbd8] sm:$0xff]  ;;  %v7972_v23 = vpack.c.bf16 %v6803_v19, %v6802_v17  ;;  %v6890_v7 = vld [vmem:[%s10667_s19 + $0xd90] sm:$0xff] }
 0xce7   :  { %7907 = vmatpush3.bf16.msra.mxu0 %v7906_v54  ;;  %v6811_v54 = vld [vmem:[%s10667_s19 + $0xb18] sm:$0xff]  ;;  %v6874_v19 = vld [vmem:[%s10667_s19 + $0xd10] sm:$0xff] }
 0xce8   :  { %7939 = vmatpush3.bf16.msra.mxu1 %v7938_v36  ;;  %7909 = vmatprep.subr.bf16.mxu0 %v7908_v46  ;;  %v6796_v36 = vld [vmem:[%s10667_s19 + $0xaa0] sm:$0xff]  ;;  %v6797_v46 = vld [vmem:[%s10667_s19 + $0xaa8] sm:$0xff]  ;;  %v7990_v44 = vpack.c.bf16 %v6811_v54, %v6810_v31  ;;  %v6891_v10 = vld [vmem:[%s10667_s19 + $0xd98] sm:$0xff] }
 0xce9   :  { %7941 = vmatprep.subr.bf16.mxu1 %v7940_v18  ;;  %v5691_v18 = vrot.slane %v10032_v25, %v9203_v11  ;;  %v7960_v45 = vpack.c.bf16 %v6797_v46, %v6796_v36  ;;  %v6836_v31 = vld [vmem:[%s10667_s19 + $0xbe0] sm:$0xff]  ;;  %v7976_v36 = vpack.c.bf16 %v6805_v30, %v6804_v37  ;;  %v6843_v17 = vld [vmem:[%s10667_s19 + $0xc18] sm:$0xff] }
 0xcea   :  { %v6788_v46 = vld [vmem:[%s10667_s19 + $0xa60] sm:$0xff] }
 0xceb   :  { %7911 = vmatpush3.bf16.msra.mxu0 %v7910_v48  ;;  %v6812_v48 = vld [vmem:[%s10667_s19 + $0xb20] sm:$0xff] }
 0xcec   :  { %7943 = vmatpush3.bf16.msra.mxu1 %v7942_v49  ;;  %7913 = vmatprep.subr.bf16.mxu0 %v7912_v60  ;;  %v7992_v49 = vpack.c.bf16 %v6829_v42, %v6828_v39  ;;  %v6813_v60 = vld [vmem:[%s10667_s19 + $0xb28] sm:$0xff] }
 0xced   :  { %7945 = vmatprep.subr.bf16.mxu1 %v7944_v59  ;;  %v6831_v59 = vld [vmem:[%s10667_s19 + $0xbb8] sm:$0xff]  ;;  %v7994_v35 = vpack.c.bf16 %v6813_v60, %v6812_v48  ;;  %v6821_v42 = vld [vmem:[%s10667_s19 + $0xb68] sm:$0xff] }
 0xcee   :  { %v6791_v60 = vld [vmem:[%s10667_s19 + $0xa78] sm:$0xff] }
 0xcef   :  { %7915 = vmatpush3.bf16.msra.mxu0 %v7914_v62  ;;  %v6814_v62 = vld [vmem:[%s10667_s19 + $0xb30] sm:$0xff] }
 0xcf0   :  { %7947 = vmatpush3.bf16.msra.mxu1 %v7946_v61  ;;  %7917 = vmatprep.subr.bf16.mxu0 %v7916_v63  ;;  %v7996_v61 = vpack.c.bf16 %v6831_v59, %v6830_v33  ;;  %v6815_v63 = vld [vmem:[%s10667_s19 + $0xb38] sm:$0xff]  ;;  %v6856_v59 = vld [vmem:[%s10667_s19 + $0xc80] sm:$0xff] }
 0xcf1   :  { %7949 = vmatprep.subr.bf16.mxu1 %v7948_v6  ;;  %v6833_v6 = vld [vmem:[%s10667_s19 + $0xbc8] sm:$0xff]  ;;  %v7998_v5 = vpack.c.bf16 %v6815_v63, %v6814_v62  ;;  %v6823_v33 = vld [vmem:[%s10667_s19 + $0xb78] sm:$0xff] }
 0xcf2   :  { %v8014_v58 = vpack.c.bf16 %v6823_v33, %v6822_v50  ;;  %v6841_v63 = vld [vmem:[%s10667_s19 + $0xc08] sm:$0xff]  ;;  %v6896_v50 = vld [vmem:[%s10667_s19 + $0xdc0] sm:$0xff] }
 0xcf3   :  { %7919 = vmatpush3.bf16.msra.mxu0 %v7918_v14  ;;  %v6816_v14 = vld [vmem:[%s10667_s19 + $0xb40] sm:$0xff] }
 0xcf4   :  { %7951 = vmatpush3.bf16.msra.mxu1 %v7950_v15  ;;  %7953 = vmatprep.subr.bf16.mxu0 %v7952_v16  ;;  %v8000_v15 = vpack.c.bf16 %v6833_v6, %v6832_v40  ;;  %v6817_v16 = vld [vmem:[%s10667_s19 + $0xb48] sm:$0xff]  ;;  %v6858_v6 = vld [vmem:[%s10667_s19 + $0xc90] sm:$0xff] }
 0xcf5   :  { %7985 = vmatprep.subr.bf16.mxu1 %v7984_v20  ;;  %v6834_v20 = vld [vmem:[%s10667_s19 + $0xbd0] sm:$0xff]  ;;  %v8002_v22 = vpack.c.bf16 %v6817_v16, %v6816_v14  ;;  %v6873_v40 = vld [vmem:[%s10667_s19 + $0xd08] sm:$0xff]  ;;  %v5679_v14 = vrot.slane %v10032_v25, %v9205_v12 }
 0xcf6   :  { %5532 = vmatmul.mubr.f32.vlgmr.msra.gmra.mrb[72].mxu0 %v5450_v28  ;;  %v8004_v28 = vpack.c.bf16 %v6835_v38, %v6834_v20  ;;  %v6842_v16 = vld [vmem:[%s10667_s19 + $0xc10] sm:$0xff]  ;;  %v5687_v20 = vrot.slane %v10032_v25, %v9207_v13  ;;  %v6892_v25 = vld [vmem:[%s10667_s19 + $0xda0] sm:$0xff] }
 0xcf7   :  { %5602 = vmatmul.mubr.f32.vlgmr.msra.gmra.mrb[42].mxu1 %v5458_v32  ;;  %7955 = vmatpush3.bf16.msra.mxu0 %v7954_v24  ;;  %v6786_v24 = vld [vmem:[%s10667_s19 + $0xa50] sm:$0xff]  ;;  %v6837_v32 = vld [vmem:[%s10667_s19 + $0xbe8] sm:$0xff] }
 0xcf8   :  { %5760 = vmatprep.mubr.f32.mxu0 %v5683_v34  ;;  %7987 = vmatpush3.bf16.msra.mxu1 %v7986_v29  ;;  %v6819_v29 = vld [vmem:[%s10667_s19 + $0xb58] sm:$0xff]  ;;  %v6789_v34 = vld [vmem:[%s10667_s19 + $0xa68] sm:$0xff]  ;;  %v8008_v39 = vpack.c.bf16 %v6837_v32, %v6836_v31  ;;  %v6844_v31 = vld [vmem:[%s10667_s19 + $0xc20] sm:$0xff] }
 0xcf9   :  { %5830 = vmatprep.mubr.f32.mxu1 %v5691_v18  ;;  %7957 = vmatprep.subr.bf16.mxu0 %v7956_v1  ;;  %v7974_v1 = vpack.c.bf16 %v6787_v26, %v6786_v24  ;;  %v8006_v54 = vpack.c.bf16 %v6819_v29, %v6818_v27  ;;  %v6806_v18 = vld [vmem:[%s10667_s19 + $0xaf0] sm:$0xff]  ;;  %v7978_v52 = vpack.c.bf16 %v6789_v34, %v6788_v46  ;;  %v6893_v27 = vld [vmem:[%s10667_s19 + $0xda8] sm:$0xff]  ;;  %v6863_v34 = vld [vmem:[%s10667_s19 + $0xcb8] sm:$0xff] }
 0xcfa   :  { %7989 = vmatprep.subr.bf16.mxu1 %v7988_v41  ;;  %v6820_v41 = vld [vmem:[%s10667_s19 + $0xb60] sm:$0xff]  ;;  %v8052_v26 = vpack.c.bf16 %v6891_v10, %v6890_v7  ;;  %v8022_v29 = vpack.c.bf16 %v6843_v17, %v6842_v16  ;;  %v6845_v32 = vld [vmem:[%s10667_s19 + $0xc28] sm:$0xff]  ;;  %v6862_v46 = vld [vmem:[%s10667_s19 + $0xcb0] sm:$0xff] }
 0xcfb   :  { %7959 = vmatpush3.bf16.msra.mxu0 %v7958_v43  ;;  %v6807_v43 = vld [vmem:[%s10667_s19 + $0xaf8] sm:$0xff]  ;;  %v8010_v47 = vpack.c.bf16 %v6821_v42, %v6820_v41  ;;  %v6894_v41 = vld [vmem:[%s10667_s19 + $0xdb0] sm:$0xff]  ;;  %v8026_v42 = vpack.c.bf16 %v6845_v32, %v6844_v31  ;;  %v6868_v16 = vld [vmem:[%s10667_s19 + $0xce0] sm:$0xff] }
 0xcfc   :  { %7991 = vmatpush3.bf16.msra.mxu1 %v7990_v44  ;;  %7961 = vmatprep.subr.bf16.mxu0 %v7960_v45  ;;  %v6838_v44 = vld [vmem:[%s10667_s19 + $0xbf0] sm:$0xff]  ;;  %v6839_v45 = vld [vmem:[%s10667_s19 + $0xbf8] sm:$0xff]  ;;  %v7980_v48 = vpack.c.bf16 %v6807_v43, %v6806_v18  ;;  %v8028_v43 = vpack.c.bf16 %v6863_v34, %v6862_v46  ;;  %v6869_v17 = vld [vmem:[%s10667_s19 + $0xce8] sm:$0xff] }
 0xcfd   :  { %7993 = vmatprep.subr.bf16.mxu1 %v7992_v49  ;;  %v6790_v49 = vld [vmem:[%s10667_s19 + $0xa70] sm:$0xff]  ;;  %v8012_v51 = vpack.c.bf16 %v6839_v45, %v6838_v44  ;;  %v6847_v45 = vld [vmem:[%s10667_s19 + $0xc38] sm:$0xff] }
 0xcfe   :  { %v7982_v57 = vpack.c.bf16 %v6791_v60, %v6790_v49  ;;  %v6846_v44 = vld [vmem:[%s10667_s19 + $0xc30] sm:$0xff]  ;;  %v6864_v49 = vld [vmem:[%s10667_s19 + $0xcc0] sm:$0xff]  ;;  %v6865_v60 = vld [vmem:[%s10667_s19 + $0xcc8] sm:$0xff] }
 0xcff   :  { %7963 = vmatpush3.bf16.msra.mxu0 %v7962_v53  ;;  %v6857_v53 = vld [vmem:[%s10667_s19 + $0xc88] sm:$0xff]  ;;  %v8030_v33 = vpack.c.bf16 %v6847_v45, %v6846_v44  ;;  %v6851_v7 = vld [vmem:[%s10667_s19 + $0xc58] sm:$0xff]  ;;  %v6882_v10 = vld [vmem:[%s10667_s19 + $0xd50] sm:$0xff] }
 0xd00   :  { %7995 = vmatpush3.bf16.msra.mxu1 %v7994_v35  ;;  %7965 = vmatprep.subr.bf16.mxu0 %v7964_v56  ;;  %v6888_v35 = vld [vmem:[%s10667_s19 + $0xd80] sm:$0xff]  ;;  %v6889_v56 = vld [vmem:[%s10667_s19 + $0xd88] sm:$0xff]  ;;  %v8016_v62 = vpack.c.bf16 %v6857_v53, %v6856_v59  ;;  %v8032_v53 = vpack.c.bf16 %v6865_v60, %v6864_v49  ;;  %v6886_v46 = vld [vmem:[%s10667_s19 + $0xd70] sm:$0xff] }
 0xd01   :  { %7997 = vmatprep.subr.bf16.mxu1 %v7996_v61  ;;  %v6840_v61 = vld [vmem:[%s10667_s19 + $0xc00] sm:$0xff]  ;;  %v8048_v2 = vpack.c.bf16 %v6889_v56, %v6888_v35  ;;  %v6849_v56 = vld [vmem:[%s10667_s19 + $0xc48] sm:$0xff] }
 0xd02   :  { %v6848_v35 = vld [vmem:[%s10667_s19 + $0xc40] sm:$0xff] }
 0xd03   :  { %7967 = vmatpush3.bf16.msra.mxu0 %v7966_v55  ;;  %v6859_v55 = vld [vmem:[%s10667_s19 + $0xc98] sm:$0xff]  ;;  %v6936_v60 = vld [vmem:[%s10667_s19 + $0xf00] sm:$0xff] }
 0xd04   :  { %7999 = vmatpush3.bf16.msra.mxu1 %v7998_v5  ;;  %7969 = vmatprep.subr.bf16.mxu0 %v7968_v8  ;;  %v8018_v5 = vpack.c.bf16 %v6841_v63, %v6840_v61  ;;  %v10234_v8 = vld [vmem:[#allocation3 + $0x6] ss:$8 sm:$0xf]  ;;  %v8020_v38 = vpack.c.bf16 %v6859_v55, %v6858_v6 }
 0xd05   :  { %8001 = vmatprep.subr.bf16.mxu1 %v8000_v15  ;;  %v8050_v15 = vpack.c.bf16 %v6873_v40, %v6872_v3  ;;  %v5912_v24 = vrot.slane %v10234_v8, %v9198_v9  ;;  %v6866_v61 = vld [vmem:[%s10667_s19 + $0xcd0] sm:$0xff]  ;;  %v6867_v63 = vld [vmem:[%s10667_s19 + $0xcd8] sm:$0xff]  ;;  %v8034_v40 = vpack.c.bf16 %v6849_v56, %v6848_v35 }
 0xd06   :  { %v6899_v3 = vld [vmem:[%s10667_s19 + $0xdd8] sm:$0xff]  ;;  %v8036_v55 = vpack.c.bf16 %v6867_v63, %v6866_v61  ;;  %v6954_v35 = vld [vmem:[%s10667_s19 + $0xf90] sm:$0xff] }
 0xd07   :  { %7971 = vmatpush3.bf16.msra.mxu0 %v7970_v21  ;;  %v6875_v21 = vld [vmem:[%s10667_s19 + $0xd18] sm:$0xff]  ;;  %v6938_v63 = vld [vmem:[%s10667_s19 + $0xf10] sm:$0xff] }
 0xd08   :  { %8003 = vmatpush3.bf16.msra.mxu1 %v8002_v22  ;;  %7973 = vmatprep.subr.bf16.mxu0 %v7972_v23  ;;  %v6860_v22 = vld [vmem:[%s10667_s19 + $0xca0] sm:$0xff]  ;;  %v6861_v23 = vld [vmem:[%s10667_s19 + $0xca8] sm:$0xff]  ;;  %v8054_v37 = vpack.c.bf16 %v6875_v21, %v6874_v19  ;;  %v6955_v56 = vld [vmem:[%s10667_s19 + $0xf98] sm:$0xff] }
 0xd09   :  { %8005 = vmatprep.subr.bf16.mxu1 %v8004_v28  ;;  %v5920_v28 = vrot.slane %v10234_v8, %v9203_v11  ;;  %v8024_v30 = vpack.c.bf16 %v6861_v23, %v6860_v22  ;;  %v6900_v19 = vld [vmem:[%s10667_s19 + $0xde0] sm:$0xff]  ;;  %v8040_v22 = vpack.c.bf16 %v6869_v17, %v6868_v16  ;;  %v6907_v61 = vld [vmem:[%s10667_s19 + $0xe18] sm:$0xff] }
 0xd0a   :  { %v6852_v23 = vld [vmem:[%s10667_s19 + $0xc60] sm:$0xff] }
 0xd0b   :  { %7975 = vmatpush3.bf16.msra.mxu0 %v7974_v1  ;;  %v6876_v1 = vld [vmem:[%s10667_s19 + $0xd20] sm:$0xff] }
 0xd0c   :  { %8007 = vmatpush3.bf16.msra.mxu1 %v8006_v54  ;;  %7977 = vmatprep.subr.bf16.mxu0 %v7976_v36  ;;  %v8056_v54 = vpack.c.bf16 %v6893_v27, %v6892_v25  ;;  %v6877_v36 = vld [vmem:[%s10667_s19 + $0xd28] sm:$0xff] }
 0xd0d   :  { %8009 = vmatprep.subr.bf16.mxu1 %v8008_v39  ;;  %v6895_v39 = vld [vmem:[%s10667_s19 + $0xdb8] sm:$0xff]  ;;  %v8058_v18 = vpack.c.bf16 %v6877_v36, %v6876_v1  ;;  %v6885_v27 = vld [vmem:[%s10667_s19 + $0xd68] sm:$0xff] }
 0xd0e   :  { %v6855_v36 = vld [vmem:[%s10667_s19 + $0xc78] sm:$0xff] }
 0xd0f   :  { %7979 = vmatpush3.bf16.msra.mxu0 %v7978_v52  ;;  %v6878_v52 = vld [vmem:[%s10667_s19 + $0xd30] sm:$0xff] }
 0xd10   :  { %8011 = vmatpush3.bf16.msra.mxu1 %v8010_v47  ;;  %7981 = vmatprep.subr.bf16.mxu0 %v7980_v48  ;;  %v8060_v47 = vpack.c.bf16 %v6895_v39, %v6894_v41  ;;  %v6879_v48 = vld [vmem:[%s10667_s19 + $0xd38] sm:$0xff]  ;;  %v6920_v39 = vld [vmem:[%s10667_s19 + $0xe80] sm:$0xff] }
 0xd11   :  { %8013 = vmatprep.subr.bf16.mxu1 %v8012_v51  ;;  %v6897_v51 = vld [vmem:[%s10667_s19 + $0xdc8] sm:$0xff]  ;;  %v8062_v59 = vpack.c.bf16 %v6879_v48, %v6878_v52  ;;  %v6887_v41 = vld [vmem:[%s10667_s19 + $0xd78] sm:$0xff] }
 0xd12   :  { %v8078_v45 = vpack.c.bf16 %v6887_v41, %v6886_v46  ;;  %v6905_v48 = vld [vmem:[%s10667_s19 + $0xe08] sm:$0xff] }
 0xd13   :  { %7983 = vmatpush3.bf16.msra.mxu0 %v7982_v57  ;;  %v6880_v57 = vld [vmem:[%s10667_s19 + $0xd40] sm:$0xff] }
 0xd14   :  { %8015 = vmatpush3.bf16.msra.mxu1 %v8014_v58  ;;  %8017 = vmatprep.subr.bf16.mxu0 %v8016_v62  ;;  %v8064_v58 = vpack.c.bf16 %v6897_v51, %v6896_v50  ;;  %v6881_v62 = vld [vmem:[%s10667_s19 + $0xd48] sm:$0xff]  ;;  %v6922_v51 = vld [vmem:[%s10667_s19 + $0xe90] sm:$0xff] }
 0xd15   :  { %8049 = vmatprep.subr.bf16.mxu1 %v8048_v2  ;;  %v6898_v2 = vld [vmem:[%s10667_s19 + $0xdd0] sm:$0xff]  ;;  %v8066_v6 = vpack.c.bf16 %v6881_v62, %v6880_v57  ;;  %v6937_v50 = vld [vmem:[%s10667_s19 + $0xf08] sm:$0xff]  ;;  %v5908_v57 = vrot.slane %v10234_v8, %v9205_v12 }
 0xd16   :  { %5761 = vmatmul.mubr.f32.vlgmr.msra.gmra.mrb[74].mxu0 %v5679_v14  ;;  %v8068_v14 = vpack.c.bf16 %v6899_v3, %v6898_v2  ;;  %v6906_v62 = vld [vmem:[%s10667_s19 + $0xe10] sm:$0xff]  ;;  %v5916_v2 = vrot.slane %v10234_v8, %v9207_v13  ;;  %v6956_v8 = vld [vmem:[%s10667_s19 + $0xfa0] sm:$0xff] }
 0xd17   :  { %5831 = vmatmul.mubr.f32.vlgmr.msra.gmra.mrb[44].mxu1 %v5687_v20  ;;  %8019 = vmatpush3.bf16.msra.mxu0 %v8018_v5  ;;  %v6850_v5 = vld [vmem:[%s10667_s19 + $0xc50] sm:$0xff]  ;;  %v6901_v20 = vld [vmem:[%s10667_s19 + $0xde8] sm:$0xff] }
 0xd18   :  { %5989 = vmatprep.mubr.f32.mxu0 %v5912_v24  ;;  %8051 = vmatpush3.bf16.msra.mxu1 %v8050_v15  ;;  %v6883_v15 = vld [vmem:[%s10667_s19 + $0xd58] sm:$0xff]  ;;  %v6853_v24 = vld [vmem:[%s10667_s19 + $0xc68] sm:$0xff]  ;;  %v8072_v25 = vpack.c.bf16 %v6901_v20, %v6900_v19  ;;  %v6940_v20 = vld [vmem:[%s10667_s19 + $0xf20] sm:$0xff] }
 0xd19   :  { %6059 = vmatprep.mubr.f32.mxu1 %v5920_v28  ;;  %8021 = vmatprep.subr.bf16.mxu0 %v8020_v38  ;;  %v8038_v38 = vpack.c.bf16 %v6851_v7, %v6850_v5  ;;  %v8070_v21 = vpack.c.bf16 %v6883_v15, %v6882_v10  ;;  %v6870_v28 = vld [vmem:[%s10667_s19 + $0xcf0] sm:$0xff]  ;;  %v8042_v31 = vpack.c.bf16 %v6853_v24, %v6852_v23  ;;  %v6957_v10 = vld [vmem:[%s10667_s19 + $0xfa8] sm:$0xff]  ;;  %v6959_v24 = vld [vmem:[%s10667_s19 + $0xfb8] sm:$0xff] }
 0xd1a   :  { %8053 = vmatprep.subr.bf16.mxu1 %v8052_v26  ;;  %v6884_v26 = vld [vmem:[%s10667_s19 + $0xd60] sm:$0xff]  ;;  %v8116_v7 = vpack.c.bf16 %v6955_v56, %v6954_v35  ;;  %v8086_v15 = vpack.c.bf16 %v6907_v61, %v6906_v62  ;;  %v6909_v19 = vld [vmem:[%s10667_s19 + $0xe28] sm:$0xff]  ;;  %v6958_v23 = vld [vmem:[%s10667_s19 + $0xfb0] sm:$0xff] }
 0xd1b   :  { %8023 = vmatpush3.bf16.msra.mxu0 %v8022_v29  ;;  %v6871_v29 = vld [vmem:[%s10667_s19 + $0xcf8] sm:$0xff]  ;;  %v8074_v32 = vpack.c.bf16 %v6885_v27, %v6884_v26  ;;  %v6964_v62 = vld [vmem:[%s10667_s19 + $0xfe0] sm:$0xff]  ;;  %v6965_v61 = vld [vmem:[%s10667_s19 + $0xfe8] sm:$0xff] }
 0xd1c   :  { %8055 = vmatpush3.bf16.msra.mxu1 %v8054_v37  ;;  %8025 = vmatprep.subr.bf16.mxu0 %v8024_v30  ;;  %v6902_v37 = vld [vmem:[%s10667_s19 + $0xdf0] sm:$0xff]  ;;  %v6903_v30 = vld [vmem:[%s10667_s19 + $0xdf8] sm:$0xff]  ;;  %v8044_v1 = vpack.c.bf16 %v6871_v29, %v6870_v28 }
 0xd1d   :  { %8057 = vmatprep.subr.bf16.mxu1 %v8056_v54  ;;  %v6854_v54 = vld [vmem:[%s10667_s19 + $0xc70] sm:$0xff]  ;;  %v8076_v34 = vpack.c.bf16 %v6903_v30, %v6902_v37  ;;  %v6911_v29 = vld [vmem:[%s10667_s19 + $0xe38] sm:$0xff]  ;;  %v8124_v30 = vpack.c.bf16 %v6959_v24, %v6958_v23 }
 0xd1e   :  { %v8046_v44 = vpack.c.bf16 %v6855_v36, %v6854_v54  ;;  %v6910_v28 = vld [vmem:[%s10667_s19 + $0xe30] sm:$0xff]  ;;  %v6960_v54 = vld [vmem:[%s10667_s19 + $0xfc0] sm:$0xff]  ;;  %v6961_v36 = vld [vmem:[%s10667_s19 + $0xfc8] sm:$0xff] }
 0xd1f   :  { %8027 = vmatpush3.bf16.msra.mxu0 %v8026_v42  ;;  %v6921_v42 = vld [vmem:[%s10667_s19 + $0xe88] sm:$0xff]  ;;  %v6942_v37 = vld [vmem:[%s10667_s19 + $0xf30] sm:$0xff]  ;;  %v8094_v46 = vpack.c.bf16 %v6911_v29, %v6910_v28  ;;  %v6947_v56 = vld [vmem:[%s10667_s19 + $0xf58] sm:$0xff] }
 0xd20   :  { %8059 = vmatpush3.bf16.msra.mxu1 %v8058_v18  ;;  %8029 = vmatprep.subr.bf16.mxu0 %v8028_v43  ;;  %v6952_v18 = vld [vmem:[%s10667_s19 + $0xf80] sm:$0xff]  ;;  %v6953_v43 = vld [vmem:[%s10667_s19 + $0xf88] sm:$0xff]  ;;  %v8080_v52 = vpack.c.bf16 %v6921_v42, %v6920_v39  ;;  %v6918_v23 = vld [vmem:[%s10667_s19 + $0xe70] sm:$0xff] }
 0xd21   :  { %8061 = vmatprep.subr.bf16.mxu1 %v8060_v47  ;;  %v6904_v47 = vld [vmem:[%s10667_s19 + $0xe00] sm:$0xff]  ;;  %v8112_v49 = vpack.c.bf16 %v6953_v43, %v6952_v18  ;;  %v6913_v42 = vld [vmem:[%s10667_s19 + $0xe48] sm:$0xff]  ;;  %v8128_v43 = vpack.c.bf16 %v6961_v36, %v6960_v54  ;;  %v6919_v24 = vld [vmem:[%s10667_s19 + $0xe78] sm:$0xff] }
 0xd22   :  { %v6912_v39 = vld [vmem:[%s10667_s19 + $0xe40] sm:$0xff]  ;;  %v6951_v28 = vld [vmem:[%s10667_s19 + $0xf78] sm:$0xff]  ;;  %v8110_v29 = vpack.c.bf16 %v6919_v24, %v6918_v23 }
 0xd23   :  { %8031 = vmatpush3.bf16.msra.mxu0 %v8030_v33  ;;  %v6923_v33 = vld [vmem:[%s10667_s19 + $0xe98] sm:$0xff]  ;;  %v6944_v18 = vld [vmem:[%s10667_s19 + $0xf40] sm:$0xff] }
 0xd24   :  { %8063 = vmatpush3.bf16.msra.mxu1 %v8062_v59  ;;  %8033 = vmatprep.subr.bf16.mxu0 %v8032_v53  ;;  %v8082_v59 = vpack.c.bf16 %v6905_v48, %v6904_v47  ;;  %v10436_v53 = vld [vmem:[#allocation3 + $0x7] ss:$8 sm:$0xf]  ;;  %v8084_v3 = vpack.c.bf16 %v6923_v33, %v6922_v51  ;;  %v4464_v54 = vld [vmem:[%s10668_s20] sm:$0x1] }
 0xd25   :  { %8065 = vmatprep.subr.bf16.mxu1 %v8064_v58  ;;  %v8114_v58 = vpack.c.bf16 %v6937_v50, %v6936_v60  ;;  %v6141_v5 = vrot.slane %v10436_v53, %v9198_v9  ;;  %v6908_v9 = vld [vmem:[%s10667_s19 + $0xe20] sm:$0xff]  ;;  %v6962_v47 = vld [vmem:[%s10667_s19 + $0xfd0] sm:$0xff]  ;;  %v6963_v48 = vld [vmem:[%s10667_s19 + $0xfd8] sm:$0xff] }
 0xd26   :  { %v8090_v26 = vpack.c.bf16 %v6909_v19, %v6908_v9  ;;  %v6914_v51 = vld [vmem:[%s10667_s19 + $0xe50] sm:$0xff]  ;;  %v6915_v33 = vld [vmem:[%s10667_s19 + $0xe58] sm:$0xff]  ;;  %v8132_v35 = vpack.c.bf16 %v6963_v48, %v6962_v47  ;;  %v6296_v47 = vld [vmem:[%s10669_s21] sm:$0xff] }
 0xd27   :  { %8035 = vmatpush3.bf16.msra.mxu0 %v8034_v40  ;;  %v6939_v40 = vld [vmem:[%s10667_s19 + $0xf18] sm:$0xff]  ;;  %v6966_v9 = vld [vmem:[%s10667_s19 + $0xff0] sm:$0xff]  ;;  %v6297_v48 = vld [vmem:[%s10669_s21 + $0x8] sm:$0xff] }
 0xd28   :  { %8067 = vmatpush3.bf16.msra.mxu1 %v8066_v6  ;;  %8037 = vmatprep.subr.bf16.mxu0 %v8036_v55  ;;  %v6924_v6 = vld [vmem:[%s10667_s19 + $0xea0] sm:$0xff]  ;;  %v6925_v55 = vld [vmem:[%s10667_s19 + $0xea8] sm:$0xff]  ;;  %v8118_v16 = vpack.c.bf16 %v6939_v40, %v6938_v63  ;;  %v8102_v63 = vpack.c.bf16 %v6915_v33, %v6914_v51  ;;  %v6967_v19 = vld [vmem:[%s10667_s19 + $0xff8] sm:$0xff] }
 0xd29   :  { %8069 = vmatprep.subr.bf16.mxu1 %v8068_v14  ;;  %v6149_v14 = vrot.slane %v10436_v53, %v9203_v11  ;;  %v8088_v17 = vpack.c.bf16 %v6925_v55, %v6924_v6  ;;  %v8120_v11 = vpack.c.bf16 %v6957_v10, %v6956_v8  ;;  %v6916_v40 = vld [vmem:[%s10667_s19 + $0xe60] sm:$0xff]  ;;  %v6917_v6 = vld [vmem:[%s10667_s19 + $0xe68] sm:$0xff]  ;;  %v8136_v8 = vpack.c.bf16 %v6965_v61, %v6964_v62 }
 0xd2a   :  { %v6948_v55 = vld [vmem:[%s10667_s19 + $0xf60] sm:$0xff]  ;;  %v6949_v10 = vld [vmem:[%s10667_s19 + $0xf68] sm:$0xff] }
 0xd2b   :  { %8039 = vmatpush3.bf16.msra.mxu0 %v8038_v38  ;;  %v6941_v38 = vld [vmem:[%s10667_s19 + $0xf28] sm:$0xff] }
 0xd2c   :  { %8071 = vmatpush3.bf16.msra.mxu1 %v8070_v21  ;;  %8041 = vmatprep.subr.bf16.mxu0 %v8040_v22  ;;  %v6926_v21 = vld [vmem:[%s10667_s19 + $0xeb0] sm:$0xff]  ;;  %v6927_v22 = vld [vmem:[%s10667_s19 + $0xeb8] sm:$0xff] }
 0xd2d   :  { %8073 = vmatprep.subr.bf16.mxu1 %v8072_v25  ;;  %v8122_v25 = vpack.c.bf16 %v6941_v38, %v6940_v20  ;;  %v8092_v27 = vpack.c.bf16 %v6927_v22, %v6926_v21  ;;  %v8106_v38 = vpack.c.bf16 %v6917_v6, %v6916_v40  ;;  %v8138_v21 = vpack.c.bf16 %v6949_v10, %v6948_v55  ;;  %v6303_v6 = vld [vmem:[%s10669_s21 + $0x38] sm:$0xff] }
 0xd2f   :  { %8043 = vmatpush3.bf16.msra.mxu0 %v8042_v31  ;;  %v6943_v31 = vld [vmem:[%s10667_s19 + $0xf38] sm:$0xff] }
 0xd30   :  { %8075 = vmatpush3.bf16.msra.mxu1 %v8074_v32  ;;  %8045 = vmatprep.subr.bf16.mxu0 %v8044_v1  ;;  %v6928_v32 = vld [vmem:[%s10667_s19 + $0xec0] sm:$0xff]  ;;  %v6929_v1 = vld [vmem:[%s10667_s19 + $0xec8] sm:$0xff] }
 0xd31   :  { %8077 = vmatprep.subr.bf16.mxu1 %v8076_v34  ;;  %v8126_v34 = vpack.c.bf16 %v6943_v31, %v6942_v37  ;;  %v8096_v41 = vpack.c.bf16 %v6929_v1, %v6928_v32  ;;  %v6145_v31 = vrot.slane %v10436_v53, %v9207_v13 }
 0xd33   :  { %8047 = vmatpush3.bf16.msra.mxu0 %v8046_v44  ;;  %v6945_v44 = vld [vmem:[%s10667_s19 + $0xf48] sm:$0xff] }
 0xd34   :  { %8079 = vmatpush3.bf16.msra.mxu1 %v8078_v45  ;;  %8081 = vmatprep.subr.bf16.mxu0 %v8080_v52  ;;  %v6930_v45 = vld [vmem:[%s10667_s19 + $0xed0] sm:$0xff]  ;;  %v6931_v52 = vld [vmem:[%s10667_s19 + $0xed8] sm:$0xff]  ;;  %v8130_v60 = vpack.c.bf16 %v6945_v44, %v6944_v18 }
 0xd35   :  { %8113 = vmatprep.subr.bf16.mxu1 %v8112_v49  ;;  %v8098_v49 = vpack.c.bf16 %v6913_v42, %v6912_v39  ;;  %v8100_v50 = vpack.c.bf16 %v6931_v52, %v6930_v45 }
 0xd36   :  { %5990 = vmatmul.mubr.f32.vlgmr.msra.gmra.mrb[76].mxu0 %v5908_v57  ;;  %v6932_v57 = vld [vmem:[%s10667_s19 + $0xee0] sm:$0xff] }
 0xd37   :  { %6060 = vmatmul.mubr.f32.vlgmr.msra.gmra.mrb[46].mxu1 %v5916_v2  ;;  %8083 = vmatpush3.bf16.msra.mxu0 %v8082_v59  ;;  %v6946_v59 = vld [vmem:[%s10667_s19 + $0xf50] sm:$0xff] }
 0xd38   :  { %6218 = vmatprep.mubr.f32.mxu0 %v6141_v5  ;;  %8115 = vmatpush3.bf16.msra.mxu1 %v8114_v58  ;;  %v6933_v58 = vld [vmem:[%s10667_s19 + $0xee8] sm:$0xff]  ;;  %v8134_v2 = vpack.c.bf16 %v6947_v56, %v6946_v59 }
 0xd39   :  { %6288 = vmatprep.mubr.f32.mxu1 %v6149_v14  ;;  %8085 = vmatprep.subr.bf16.mxu0 %v8084_v3  ;;  %v8104_v3 = vpack.c.bf16 %v6933_v58, %v6932_v57  ;;  %v6934_v14 = vld [vmem:[%s10667_s19 + $0xef0] sm:$0xff] }
 0xd3a   :  { %8117 = vmatprep.subr.bf16.mxu1 %v8116_v7 }
 0xd3b   :  { %8087 = vmatpush3.bf16.msra.mxu0 %v8086_v15  ;;  %v6935_v15 = vld [vmem:[%s10667_s19 + $0xef8] sm:$0xff] }
 0xd3c   :  { %8119 = vmatpush3.bf16.msra.mxu1 %v8118_v16  ;;  %8089 = vmatprep.subr.bf16.mxu0 %v8088_v17  ;;  %v8108_v22 = vpack.c.bf16 %v6935_v15, %v6934_v14 }
 0xd3d   :  { %8121 = vmatprep.subr.bf16.mxu1 %v8120_v11 }
 0xd3f   :  { %8091 = vmatpush3.bf16.msra.mxu0 %v8090_v26 }
 0xd40   :  { %8123 = vmatpush3.bf16.msra.mxu1 %v8122_v25  ;;  %8093 = vmatprep.subr.bf16.mxu0 %v8092_v27  ;;  %v8140_v25 = vpack.c.bf16 %v6967_v19, %v6966_v9  ;;  %v6950_v27 = vld [vmem:[%s10667_s19 + $0xf70] sm:$0xff] }
 0xd41   :  { %8125 = vmatprep.subr.bf16.mxu1 %v8124_v30  ;;  %v8142_v37 = vpack.c.bf16 %v6951_v28, %v6950_v27  ;;  %v6137_v30 = vrot.slane %v10436_v53, %v9205_v12 }
 0xd43   :  { %8095 = vmatpush3.bf16.msra.mxu0 %v8094_v46 }
 0xd44   :  { %8127 = vmatpush3.bf16.msra.mxu1 %v8126_v34  ;;  %8097 = vmatprep.subr.bf16.mxu0 %v8096_v41 }
 0xd45   :  { %8129 = vmatprep.subr.bf16.mxu1 %v8128_v43 }
 0xd47   :  { %8099 = vmatpush3.bf16.msra.mxu0 %v8098_v49  ;;  %v6298_v49 = vld [vmem:[%s10669_s21 + $0x10] sm:$0xff] }
 0xd48   :  { %8131 = vmatpush3.bf16.msra.mxu1 %v8130_v60  ;;  %8101 = vmatprep.subr.bf16.mxu0 %v8100_v50  ;;  %v8145_v60 = vpack.c.bf16 %v6297_v48, %v6296_v47  ;;  %v6299_v50 = vld [vmem:[%s10669_s21 + $0x18] sm:$0xff] }
 0xd49   :  { %v7006_v5 = vpop.f32.mrb[64].mxu0  ;;  %v7041_v7 = vpop.f32.mrb[34].mxu1  ;;  %8133 = vmatprep.subr.bf16.mxu1 %v8132_v35  ;;  %v8148_v51 = vpack.c.bf16 %v6299_v50, %v6298_v49 }
 0xd4a   :  { %v7007_v16 = vpop.f32.mrb[65].mxu0  ;;  %v7042_v17 = vpop.f32.mrb[35].mxu1 }
 0xd4b   :  { %v7008_v20 = vadd.f32 %v7007_v16, %v7006_v5  ;;  %v7043_v11 = vadd.f32 %v7042_v17, %v7041_v7  ;;  %8103 = vmatpush3.bf16.msra.mxu0 %v8102_v63  ;;  %v6300_v63 = vld [vmem:[%s10669_s21 + $0x20] sm:$0xff] }
 0xd4c   :  { %8135 = vmatpush3.bf16.msra.mxu1 %v8134_v2  ;;  %8105 = vmatprep.subr.bf16.mxu0 %v8104_v3  ;;  %v6301_v2 = vld [vmem:[%s10669_s21 + $0x28] sm:$0xff]  ;;  %v6302_v3 = vld [vmem:[%s10669_s21 + $0x30] sm:$0xff] }
 0xd4d   :  { %v4688_v26 = vadd.f32 %v7043_v11, %v7008_v20  ;;  %8137 = vmatprep.subr.bf16.mxu1 %v8136_v8  ;;  %v8151_v40 = vpack.c.bf16 %v6301_v2, %v6300_v63  ;;  %v8154_v55 = vpack.c.bf16 %v6303_v6, %v6302_v3 }
 0xd4f   :  { %8107 = vmatpush3.bf16.msra.mxu0 %v8106_v38  ;;  %v4691_v41 = vadd.f32 %v4688_v26, %v4464_v54 }
 0xd50   :  { %8139 = vmatpush3.bf16.msra.mxu1 %v8138_v21  ;;  %8109 = vmatprep.subr.bf16.mxu0 %v8108_v22 }
 0xd51   :  { %8141 = vmatprep.subr.bf16.mxu1 %v8140_v25 }
 0xd53   :  { %8111 = vmatpush3.bf16.msra.mxu0 %v8110_v29 }
 0xd54   :  { %8143 = vmatpush3.bf16.msra.mxu1 %v8142_v37  ;;  %8144 = vmatprep.subr.bf16.mxu0 %v8267_v0 }
 0xd56   :  { %6219 = vmatmul.mubr.f32.vlgmr.msra.gmra.mrb[78].mxu0 %v6137_v30 }
 0xd57   :  { %6289 = vmatmul.mubr.f32.vlgmr.msra.gmra.mrb[48].mxu1 %v6145_v31  ;;  %7570 = vmatprep.mubr.msk.f32.mxu0 %vm8269_vm1, %v8268_v4  ;;  %vm6304_vm1 = vcmask 523264  }
 0xd58   :  { %8146 = vmatpush3.bf16.msra.mxu0 %v8145_v60 }
 0xd59   :  { %8147 = vmatprep.subr.bf16.mxu0 %v8267_v0 }
 0xd5c   :  { %8149 = vmatpush3.bf16.msra.mxu0 %v8148_v51 }
 0xd5d   :  { %8150 = vmatprep.subr.bf16.mxu0 %v8267_v0 }
 0xd60   :  { %8152 = vmatpush3.bf16.msra.mxu0 %v8151_v40 }
 0xd61   :  { %8153 = vmatprep.subr.bf16.mxu0 %v8267_v0 }
 0xd64   :  { %8155 = vmatpush3.bf16.msra.mxu0 %v8154_v55 }
 0xd69   :  { %v7076_v32 = vpop.f32.mrb[66].mxu0  ;;  %v7111_v1 = vpop.f32.mrb[36].mxu1 }
 0xd6a   :  { %v7077_v36 = vpop.f32.mrb[67].mxu0  ;;  %v7112_v46 = vpop.f32.mrb[37].mxu1 }
 0xd6b   :  { %v7078_v34 = vadd.f32 %v7077_v36, %v7076_v32  ;;  %v7113_v12 = vadd.f32 %v7112_v46, %v7111_v1 }
 0xd6d   :  { %v4917_v39 = vadd.f32 %v7113_v12, %v7078_v34 }
 0xd6f   :  { %v4920_v42 = vadd.f32 %v4917_v39, %v4691_v41 }
 0xd89   :  { %v7146_v18 = vpop.f32.mrb[68].mxu0 }
 0xd8a   :  { %v7181_v13 = vpop.f32.mrb[38].mxu1  ;;  %v7147_v53 = vpop.f32.mrb[69].mxu0 }
 0xd8b   :  { %v7148_v43 = vadd.f32 %v7147_v53, %v7146_v18  ;;  %v7182_v44 = vpop.f32.mrb[39].mxu1 }
 0xd8c   :  { %v7183_v45 = vadd.f32 %v7182_v44, %v7181_v13 }
 0xd8e   :  { %v5146_v4 = vadd.f32 %v7183_v45, %v7148_v43 }
 0xd90   :  { %v5149_v52 = vadd.f32 %v5146_v4, %v4920_v42 }
 0xda9   :  { %v7216_v33 = vpop.f32.mrb[70].mxu0 }
 0xdaa   :  { %v7251_v59 = vpop.f32.mrb[40].mxu1  ;;  %v7217_v35 = vpop.f32.mrb[71].mxu0 }
 0xdab   :  { %v7218_v56 = vadd.f32 %v7217_v35, %v7216_v33  ;;  %v7252_v57 = vpop.f32.mrb[41].mxu1 }
 0xdac   :  { %v7253_v58 = vadd.f32 %v7252_v57, %v7251_v59 }
 0xdae   :  { %v5375_v62 = vadd.f32 %v7253_v58, %v7218_v56 }
 0xdb0   :  { %v5378_v61 = vadd.f32 %v5375_v62, %v5149_v52 }
 0xdc9   :  { %v7286_v5 = vpop.f32.mrb[72].mxu0 }
 0xdca   :  { %v7321_v7 = vpop.f32.mrb[42].mxu1  ;;  %v7287_v8 = vpop.f32.mrb[73].mxu0 }
 0xdcb   :  { %v7288_v10 = vadd.f32 %v7287_v8, %v7286_v5  ;;  %v7322_v14 = vpop.f32.mrb[43].mxu1 }
 0xdcc   :  { %v7323_v15 = vadd.f32 %v7322_v14, %v7321_v7 }
 0xdce   :  { %v5604_v16 = vadd.f32 %v7323_v15, %v7288_v10 }
 0xdd0   :  { %v5607_v17 = vadd.f32 %v5604_v16, %v5378_v61 }
 0xde9   :  { %v7356_v9 = vpop.f32.mrb[74].mxu0 }
 0xdea   :  { %v7391_v19 = vpop.f32.mrb[44].mxu1  ;;  %v7357_v20 = vpop.f32.mrb[75].mxu0 }
 0xdeb   :  { %v7358_v11 = vadd.f32 %v7357_v20, %v7356_v9  ;;  %v7392_v38 = vpop.f32.mrb[45].mxu1 }
 0xdec   :  { %v7393_v21 = vadd.f32 %v7392_v38, %v7391_v19 }
 0xdee   :  { %v5833_v22 = vadd.f32 %v7393_v21, %v7358_v11 }
 0xdf0   :  { %v5836_v23 = vadd.f32 %v5833_v22, %v5607_v17 }
 0xe09   :  { %v7426_v24 = vpop.f32.mrb[76].mxu0 }
 0xe0a   :  { %v7461_v26 = vpop.f32.mrb[46].mxu1  ;;  %v7427_v0 = vpop.f32.mrb[77].mxu0 }
 0xe0b   :  { %v7428_v25 = vadd.f32 %v7427_v0, %v7426_v24  ;;  %v7462_v27 = vpop.f32.mrb[47].mxu1 }
 0xe0c   :  { %v7463_v28 = vadd.f32 %v7462_v27, %v7461_v26 }
 0xe0e   :  { %v6062_v29 = vadd.f32 %v7463_v28, %v7428_v25 }
 0xe10   :  { %v6065_v37 = vadd.f32 %v6062_v29, %v5836_v23 }
 0xe29   :  { %v7496_v30 = vpop.f32.mrb[78].mxu0 }
 0xe2a   :  { %v7531_v31 = vpop.f32.mrb[48].mxu1  ;;  %v7497_v32 = vpop.f32.mrb[79].mxu0 }
 0xe2b   :  { %v7498_v1 = vadd.f32 %v7497_v32, %v7496_v30  ;;  %v7532_v54 = vpop.f32.mrb[49].mxu1 }
 0xe2c   :  { %v7533_v36 = vadd.f32 %v7532_v54, %v7531_v31 }
 0xe2e   :  { %v6291_v46 = vadd.f32 %v7533_v36, %v7498_v1 }
 0xe30   :  { %v6294_v34 = vadd.f32 %v6291_v46, %v6065_v37 }
 0xe32   :  { %v6295_v12 = vmax.f32 %v6294_v34, 0.0 }
 0xe34   :  { %7571 = vmatmul.mubr.msk.f32.vlgmr.msra.gmra.mrb[80].mxu0 %vm6304_vm1, %v6295_v12 }
 0xf07   :  { %v6374_v41 = vpop.f32.mrb[80].mxu0 }
 0xf08   :  { %6379 = vst.msk [vmem:[%s10670_s22] sm:$0x1] %vm6378_vm3, %v6374_v41  ;;  %v7572_v39 = vpop.f32.mrb[81].mxu0 }

</bundles_post_ra>
